<compile_context>
chip_gen: v7x
topology: tpu7x:2x2x1
jax: 0.10.0
libtpu: 0.0.40
codegen_flags: <defaults>
</compile_context>

<pallas_src>
import functools

import numpy as np

import jax
import jax.numpy as jnp
from jax.experimental import pallas as pl
from jax.experimental.pallas import tpu as pltpu

NEG_SLOPE = 0.25     # act_layer('leakyrelu') default neg_slope
RES_SCALE = 0.2
NUM_BLOCKS = 3       # DUDB = 3 SkipUpDownBlocks


# ----------------------------------------------------------------------------
# Fused kernel: whole DUDB forward for one batch element.
# Activations live as (C, H*W) f32 (H*W on lanes); everything stays in VMEM.
# ----------------------------------------------------------------------------
def _dudb_kernel(x_ref, masks_ref,
                 w1_ref, b1_ref, w2x_ref, w2x1_ref, b2_ref, w3_ref, b3_ref,
                 o_ref, *, H, W, nc, neg_slope, res_scale):
    HW = H * W
    masks = masks_ref[...]                                   # (9, HW) of {0,1}

    def lrelu(v):
        return jnp.where(v >= 0, v, neg_slope * v)

    def im2col(act):
        """(C, H*W) -> (9*C, H*W) patch matrix of a 3x3 SAME conv.

        Tap (dy, dx) is a constant offset s = (dy-1)*W + (dx-1) on the
        flattened spatial axis; a flat zero apron plus a precomputed validity
        mask realizes the zero padding, so no (C,H,W)<->(C,HW) reshapes and
        no padded scratch buffer are needed.
        """
        C = act.shape[0]
        apron = jnp.zeros((C, W + 1), jnp.float32)
        apad = jnp.concatenate([apron, act, apron], axis=1)  # (C, HW + 2W + 2)
        taps = []
        t = 0
        for oy in (-1, 0, 1):
            for ox in (-1, 0, 1):
                if oy == 0 and ox == 0:
                    taps.append(act)                         # center tap
                else:
                    s = oy * W + ox
                    shifted = apad[:, W + 1 + s: W + 1 + s + HW]
                    taps.append(shifted * masks[t:t + 1, :])
                t += 1
        return jnp.concatenate(taps, axis=0)                 # (9C, HW)

    def matmul(wt, patches):
        # Single MXU matmul per conv: (Cout, 9*Cin) @ (9*Cin, HW), f32 acc,
        # lane-dense (HW-wide) output.
        return jnp.dot(wt, patches, preferred_element_type=jnp.float32)

    x0 = x_ref[...]                                          # (nc, HW)
    u = x0
    for blk in range(NUM_BLOCKS):                            # static unroll
        # conv1: nc -> nc
        pu = im2col(u)
        x1 = lrelu(matmul(w1_ref[blk], pu) + b1_ref[blk])
        # conv2 on cat(u, x1): K-split contraction, reuses im2col(u); no cat.
        p1 = im2col(x1)
        x2 = lrelu(matmul(w2x_ref[blk], pu)
                   + matmul(w2x1_ref[blk], p1)
                   + b2_ref[blk])                            # (2nc, HW)

        # PixelShuffle(2) followed by MaxPool2d(2) == max over groups of 4
        # consecutive channels of cat(u, x1, x2)  (computed in VMEM).
        cat = jnp.concatenate([u, x1, x2], axis=0)           # (4nc, HW)
        groups = []
        for c in range(nc):
            g = cat[4 * c:4 * c + 4, :]
            groups.append(jnp.maximum(jnp.maximum(g[0:1], g[1:2]),
                                      jnp.maximum(g[2:3], g[3:4])))
        pooled = jnp.concatenate(groups, axis=0)             # (nc, HW)

        # conv3: nc -> nc, fused block residual
        x3 = lrelu(matmul(w3_ref[blk], im2col(pooled)) + b3_ref[blk])
        u = x3 * res_scale + u

    # Final DUDB residual, fused into the same kernel (lane-dense store).
    o_ref[...] = u * res_scale + x0


# ----------------------------------------------------------------------------
# Host-side helpers + wrapper
# ----------------------------------------------------------------------------
def _build_tap_masks(H, W):
    """masks[t, h*W + w] = 1 iff (h + oy, w + ox) lies inside the HxW image,
    with t = (oy+1)*3 + (ox+1) enumerating the 3x3 taps."""
    m = np.zeros((9, H, W), np.float32)
    t = 0
    for oy in (-1, 0, 1):
        for ox in (-1, 0, 1):
            m[t, max(0, -oy):H - max(0, oy), max(0, -ox):W - max(0, ox)] = 1.0
            t += 1
    return m.reshape(9, H * W)


def dudb_forward(x_nchw, params, res_scale=RES_SCALE):
    """DUDB forward. x_nchw: (N, nc, H, W) float32 (PyTorch layout).
    params: list of NUM_BLOCKS dicts with HWIO conv weights w1,b1,w2,b2,w3,b3."""
    N, nc, H, W = x_nchw.shape
    HW = H * W
    assert len(params) == NUM_BLOCKS

    x2d = x_nchw.reshape(N, nc, HW)            # free reshape, no transpose

    # One-time (tiny) repack of HWIO weights into im2col matmul form:
    #   wT[co, (dy*3+dx)*Cin + ci] = w[dy, dx, ci, co].
    # conv2's weight is split along its input channels (x part / x1 part).
    w1 = jnp.stack([p["w1"].reshape(9 * nc, nc).T for p in params])
    b1 = jnp.stack([p["b1"].reshape(nc, 1) for p in params])
    w2x = jnp.stack([p["w2"][:, :, :nc, :].reshape(9 * nc, 2 * nc).T
                     for p in params])
    w2x1 = jnp.stack([p["w2"][:, :, nc:, :].reshape(9 * nc, 2 * nc).T
                      for p in params])
    b2 = jnp.stack([p["b2"].reshape(2 * nc, 1) for p in params])
    w3 = jnp.stack([p["w3"].reshape(9 * nc, nc).T for p in params])
    b3 = jnp.stack([p["b3"].reshape(nc, 1) for p in params])
    masks = jnp.asarray(_build_tap_masks(H, W))              # (9, HW)

    kernel = functools.partial(_dudb_kernel, H=H, W=W, nc=nc,
                               neg_slope=NEG_SLOPE, res_scale=res_scale)

    full2 = lambda n: (0, 0)
    full3 = lambda n: (0, 0, 0)
    out2d = pl.pallas_call(
        kernel,
        out_shape=jax.ShapeDtypeStruct((N, nc, HW), jnp.float32),
        grid=(N,),
        in_specs=[
            pl.BlockSpec((pl.Squeezed(), nc, HW), lambda n: (n, 0, 0)),
            pl.BlockSpec((9, HW), full2),
            pl.BlockSpec((NUM_BLOCKS, nc, 9 * nc), full3),
            pl.BlockSpec((NUM_BLOCKS, nc, 1), full3),
            pl.BlockSpec((NUM_BLOCKS, 2 * nc, 9 * nc), full3),
            pl.BlockSpec((NUM_BLOCKS, 2 * nc, 9 * nc), full3),
            pl.BlockSpec((NUM_BLOCKS, 2 * nc, 1), full3),
            pl.BlockSpec((NUM_BLOCKS, nc, 9 * nc), full3),
            pl.BlockSpec((NUM_BLOCKS, nc, 1), full3),
        ],
        out_specs=pl.BlockSpec((pl.Squeezed(), nc, HW), lambda n: (n, 0, 0)),
        compiler_params=pltpu.CompilerParams(
            dimension_semantics=("parallel",)),
    )(x2d, masks, w1, b1, w2x, w2x1, b2, w3, b3)

    return out2d.reshape(N, nc, H, W)


# ----------------------------------------------------------------------------
# Parameter init & full-fidelity pure-JAX reference (real PixelShuffle+MaxPool)
# ----------------------------------------------------------------------------
def init_params(key, nc):
    params = []
    for _ in range(NUM_BLOCKS):
        keys = jax.random.split(key, 7)
        key = keys[0]
        params.append({
            "w1": 0.05 * jax.random.normal(keys[1], (3, 3, nc, nc), jnp.float32),
            "b1": 0.05 * jax.random.normal(keys[2], (nc,), jnp.float32),
            "w2": 0.05 * jax.random.normal(keys[3], (3, 3, 2 * nc, 2 * nc), jnp.float32),
            "b2": 0.05 * jax.random.normal(keys[4], (2 * nc,), jnp.float32),
            "w3": 0.05 * jax.random.normal(keys[5], (3, 3, nc, nc), jnp.float32),
            "b3": 0.05 * jax.random.normal(keys[6], (nc,), jnp.float32),
        })
    return params


def _lrelu(v):
    return jnp.where(v >= 0, v, NEG_SLOPE * v)


def _conv_ref(x, w, b):
    y = jax.lax.conv_general_dilated(
        x, w, window_strides=(1, 1), padding="SAME",
        dimension_numbers=("NCHW", "HWIO", "NCHW"),
        precision=jax.lax.Precision.HIGHEST)
    return y + b.reshape(1, -1, 1, 1)


def _pixel_shuffle_ref(x, r=2):
    # PyTorch semantics: out[n, c, h*r+i, w*r+j] = in[n, c*r*r + i*r + j, h, w]
    N, C, H, W = x.shape
    co = C // (r * r)
    x = x.reshape(N, co, r, r, H, W).transpose(0, 1, 4, 2, 5, 3)
    return x.reshape(N, co, H * r, W * r)


def _maxpool2_ref(x):
    N, C, H, W = x.shape
    return x.reshape(N, C, H // 2, 2, W // 2, 2).max(axis=(3, 5))


def dudb_reference(x, params, res_scale=RES_SCALE):
    u = x
    for p in params:
        x1 = _lrelu(_conv_ref(u, p["w1"], p["b1"]))
        x2 = _lrelu(_conv_ref(jnp.concatenate([u, x1], axis=1), p["w2"], p["b2"]))
        x3 = _maxpool2_ref(_pixel_shuffle_ref(jnp.concatenate([u, x1, x2], axis=1)))
        x3 = _lrelu(_conv_ref(x3, p["w3"], p["b3"]))
        u = x3 * res_scale + u
    return u * res_scale + x


# ----------------------------------------------------------------------------
if __name__ == "__main__":
    nc, N, H, W = 4, 2, 16, 16

    key = jax.random.PRNGKey(0)
    kx, kp = jax.random.split(key)
    x = jax.random.normal(kx, (N, nc, H, W), jnp.float32)   # NCHW like PyTorch
    params = init_params(kp, nc)

    out = jax.block_until_ready(jax.jit(dudb_forward)(x, params))
    assert out.shape == (N, nc, H, W), out.shape

    ref = jax.block_until_ready(dudb_reference(x, params))
    max_err = float(jnp.max(jnp.abs(out - ref)))
    assert max_err < 5e-3, f"mismatch vs reference: {max_err}"

    print("KERNEL_OK")
</pallas_src>

<mosaic_0001>
module attributes {stable_mosaic.version = 11 : i64} {
  func.func @_dudb_kernel(%arg0: i32, %arg1: memref<1x4x256xf32, #tpu.memory_space<vmem>>, %arg2: memref<9x256xf32, #tpu.memory_space<vmem>>, %arg3: memref<3x4x36xf32, #tpu.memory_space<vmem>>, %arg4: memref<3x4x1xf32, #tpu.memory_space<vmem>>, %arg5: memref<3x8x36xf32, #tpu.memory_space<vmem>>, %arg6: memref<3x8x36xf32, #tpu.memory_space<vmem>>, %arg7: memref<3x8x1xf32, #tpu.memory_space<vmem>>, %arg8: memref<3x4x36xf32, #tpu.memory_space<vmem>>, %arg9: memref<3x4x1xf32, #tpu.memory_space<vmem>>, %arg10: memref<1x4x256xf32, #tpu.memory_space<vmem>>) attributes {dimension_semantics = [#tpu.dimension_semantics<parallel>], iteration_bounds = array<i64: 2>, scalar_prefetch = 0 : i64, scratch_operands = 0 : i64, tpu.core_type = #tpu.core_type<tc>, window_params = [{transform_indices = @transform_0, window_bounds = array<i64: 1, 4, 256>}, {pipeline_mode = #tpu.pipeline_mode<synchronous>, transform_indices = @transform_1, window_bounds = array<i64: 9, 256>}, {pipeline_mode = #tpu.pipeline_mode<synchronous>, transform_indices = @transform_2, window_bounds = array<i64: 3, 4, 36>}, {pipeline_mode = #tpu.pipeline_mode<synchronous>, transform_indices = @transform_3, window_bounds = array<i64: 3, 4, 1>}, {pipeline_mode = #tpu.pipeline_mode<synchronous>, transform_indices = @transform_4, window_bounds = array<i64: 3, 8, 36>}, {pipeline_mode = #tpu.pipeline_mode<synchronous>, transform_indices = @transform_5, window_bounds = array<i64: 3, 8, 36>}, {pipeline_mode = #tpu.pipeline_mode<synchronous>, transform_indices = @transform_6, window_bounds = array<i64: 3, 8, 1>}, {pipeline_mode = #tpu.pipeline_mode<synchronous>, transform_indices = @transform_7, window_bounds = array<i64: 3, 4, 36>}, {pipeline_mode = #tpu.pipeline_mode<synchronous>, transform_indices = @transform_8, window_bounds = array<i64: 3, 4, 1>}, {transform_indices = @transform_9, window_bounds = array<i64: 1, 4, 256>}]} {
    %c0 = arith.constant 0 : index
    %c0_0 = arith.constant 0 : index
    %0 = vector.load %arg2[%c0, %c0_0] : memref<9x256xf32, #tpu.memory_space<vmem>>, vector<9x256xf32>
    %c0_1 = arith.constant 0 : index
    %c0_2 = arith.constant 0 : index
    %c0_3 = arith.constant 0 : index
    %1 = vector.load %arg1[%c0_1, %c0_2, %c0_3] : memref<1x4x256xf32, #tpu.memory_space<vmem>>, vector<1x4x256xf32>
    %2 = vector.shape_cast %1 : vector<1x4x256xf32> to vector<4x256xf32>
    %cst = arith.constant 0.000000e+00 : f32
    %3 = vector.broadcast %cst : f32 to vector<4x17xf32>
    %4 = tpu.concatenate %3, %2, %3 in 1 : vector<4x17xf32>, vector<4x256xf32>, vector<4x17xf32> -> vector<4x290xf32>
    %5 = vector.extract_strided_slice %4 {offsets = [0, 0], sizes = [4, 256], strides = [1, 1]} : vector<4x290xf32> to vector<4x256xf32>
    %6 = vector.extract_strided_slice %0 {offsets = [0, 0], sizes = [1, 256], strides = [1, 1]} : vector<9x256xf32> to vector<1x256xf32>
    %7 = vector.broadcast %6 : vector<1x256xf32> to vector<4x256xf32>
    %8 = arith.mulf %5, %7 : vector<4x256xf32>
    %9 = vector.extract_strided_slice %4 {offsets = [0, 1], sizes = [4, 256], strides = [1, 1]} : vector<4x290xf32> to vector<4x256xf32>
    %10 = vector.extract_strided_slice %0 {offsets = [1, 0], sizes = [1, 256], strides = [1, 1]} : vector<9x256xf32> to vector<1x256xf32>
    %11 = vector.broadcast %10 : vector<1x256xf32> to vector<4x256xf32>
    %12 = arith.mulf %9, %11 : vector<4x256xf32>
    %13 = vector.extract_strided_slice %4 {offsets = [0, 2], sizes = [4, 256], strides = [1, 1]} : vector<4x290xf32> to vector<4x256xf32>
    %14 = vector.extract_strided_slice %0 {offsets = [2, 0], sizes = [1, 256], strides = [1, 1]} : vector<9x256xf32> to vector<1x256xf32>
    %15 = vector.broadcast %14 : vector<1x256xf32> to vector<4x256xf32>
    %16 = arith.mulf %13, %15 : vector<4x256xf32>
    %17 = vector.extract_strided_slice %4 {offsets = [0, 16], sizes = [4, 256], strides = [1, 1]} : vector<4x290xf32> to vector<4x256xf32>
    %18 = vector.extract_strided_slice %0 {offsets = [3, 0], sizes = [1, 256], strides = [1, 1]} : vector<9x256xf32> to vector<1x256xf32>
    %19 = vector.broadcast %18 : vector<1x256xf32> to vector<4x256xf32>
    %20 = arith.mulf %17, %19 : vector<4x256xf32>
    %21 = vector.extract_strided_slice %4 {offsets = [0, 18], sizes = [4, 256], strides = [1, 1]} : vector<4x290xf32> to vector<4x256xf32>
    %22 = vector.extract_strided_slice %0 {offsets = [5, 0], sizes = [1, 256], strides = [1, 1]} : vector<9x256xf32> to vector<1x256xf32>
    %23 = vector.broadcast %22 : vector<1x256xf32> to vector<4x256xf32>
    %24 = arith.mulf %21, %23 : vector<4x256xf32>
    %25 = vector.extract_strided_slice %4 {offsets = [0, 32], sizes = [4, 256], strides = [1, 1]} : vector<4x290xf32> to vector<4x256xf32>
    %26 = vector.extract_strided_slice %0 {offsets = [6, 0], sizes = [1, 256], strides = [1, 1]} : vector<9x256xf32> to vector<1x256xf32>
    %27 = vector.broadcast %26 : vector<1x256xf32> to vector<4x256xf32>
    %28 = arith.mulf %25, %27 : vector<4x256xf32>
    %29 = vector.extract_strided_slice %4 {offsets = [0, 33], sizes = [4, 256], strides = [1, 1]} : vector<4x290xf32> to vector<4x256xf32>
    %30 = vector.extract_strided_slice %0 {offsets = [7, 0], sizes = [1, 256], strides = [1, 1]} : vector<9x256xf32> to vector<1x256xf32>
    %31 = vector.broadcast %30 : vector<1x256xf32> to vector<4x256xf32>
    %32 = arith.mulf %29, %31 : vector<4x256xf32>
    %33 = vector.extract_strided_slice %4 {offsets = [0, 34], sizes = [4, 256], strides = [1, 1]} : vector<4x290xf32> to vector<4x256xf32>
    %34 = vector.extract_strided_slice %0 {offsets = [8, 0], sizes = [1, 256], strides = [1, 1]} : vector<9x256xf32> to vector<1x256xf32>
    %35 = vector.broadcast %34 : vector<1x256xf32> to vector<4x256xf32>
    %36 = arith.mulf %33, %35 : vector<4x256xf32>
    %37 = tpu.concatenate %8, %12, %16, %20, %2, %24, %28, %32, %36 in 0 : vector<4x256xf32>, vector<4x256xf32>, vector<4x256xf32>, vector<4x256xf32>, vector<4x256xf32>, vector<4x256xf32>, vector<4x256xf32>, vector<4x256xf32>, vector<4x256xf32> -> vector<36x256xf32>
    %c0_4 = arith.constant 0 : index
    %c0_5 = arith.constant 0 : index
    %c0_6 = arith.constant 0 : index
    %38 = vector.load %arg3[%c0_4, %c0_5, %c0_6] : memref<3x4x36xf32, #tpu.memory_space<vmem>>, vector<1x4x36xf32>
    %39 = vector.shape_cast %38 : vector<1x4x36xf32> to vector<4x36xf32>
    %cst_7 = arith.constant dense<0.000000e+00> : vector<4x256xf32>
    %40 = tpu.matmul %39, %37, %cst_7 {dimension_numbers = #tpu.dot_dimension_numbers<[1], [0], [0], [1], [0, 0, 1, 1], [], []>} : vector<4x36xf32>, vector<36x256xf32>, vector<4x256xf32> -> vector<4x256xf32>
    %c0_8 = arith.constant 0 : index
    %c0_9 = arith.constant 0 : index
    %c0_10 = arith.constant 0 : index
    %41 = vector.load %arg4[%c0_8, %c0_9, %c0_10] : memref<3x4x1xf32, #tpu.memory_space<vmem>>, vector<1x4x1xf32>
    %42 = vector.shape_cast %41 : vector<1x4x1xf32> to vector<4x1xf32>
    %43 = vector.broadcast %42 : vector<4x1xf32> to vector<4x256xf32>
    %44 = arith.addf %40, %43 : vector<4x256xf32>
    %cst_11 = arith.constant 0.000000e+00 : f32
    %45 = vector.broadcast %cst_11 : f32 to vector<4x256xf32>
    %46 = arith.cmpf oge, %44, %45 : vector<4x256xf32>
    %cst_12 = arith.constant 2.500000e-01 : f32
    %47 = vector.broadcast %cst_12 : f32 to vector<4x256xf32>
    %48 = arith.mulf %47, %44 : vector<4x256xf32>
    %49 = arith.select %46, %44, %48 : vector<4x256xi1>, vector<4x256xf32>
    %cst_13 = arith.constant 0.000000e+00 : f32
    %50 = vector.broadcast %cst_13 : f32 to vector<4x17xf32>
    %51 = tpu.concatenate %50, %49, %50 in 1 : vector<4x17xf32>, vector<4x256xf32>, vector<4x17xf32> -> vector<4x290xf32>
    %52 = vector.extract_strided_slice %51 {offsets = [0, 0], sizes = [4, 256], strides = [1, 1]} : vector<4x290xf32> to vector<4x256xf32>
    %53 = vector.extract_strided_slice %0 {offsets = [0, 0], sizes = [1, 256], strides = [1, 1]} : vector<9x256xf32> to vector<1x256xf32>
    %54 = vector.broadcast %53 : vector<1x256xf32> to vector<4x256xf32>
    %55 = arith.mulf %52, %54 : vector<4x256xf32>
    %56 = vector.extract_strided_slice %51 {offsets = [0, 1], sizes = [4, 256], strides = [1, 1]} : vector<4x290xf32> to vector<4x256xf32>
    %57 = vector.extract_strided_slice %0 {offsets = [1, 0], sizes = [1, 256], strides = [1, 1]} : vector<9x256xf32> to vector<1x256xf32>
    %58 = vector.broadcast %57 : vector<1x256xf32> to vector<4x256xf32>
    %59 = arith.mulf %56, %58 : vector<4x256xf32>
    %60 = vector.extract_strided_slice %51 {offsets = [0, 2], sizes = [4, 256], strides = [1, 1]} : vector<4x290xf32> to vector<4x256xf32>
    %61 = vector.extract_strided_slice %0 {offsets = [2, 0], sizes = [1, 256], strides = [1, 1]} : vector<9x256xf32> to vector<1x256xf32>
    %62 = vector.broadcast %61 : vector<1x256xf32> to vector<4x256xf32>
    %63 = arith.mulf %60, %62 : vector<4x256xf32>
    %64 = vector.extract_strided_slice %51 {offsets = [0, 16], sizes = [4, 256], strides = [1, 1]} : vector<4x290xf32> to vector<4x256xf32>
    %65 = vector.extract_strided_slice %0 {offsets = [3, 0], sizes = [1, 256], strides = [1, 1]} : vector<9x256xf32> to vector<1x256xf32>
    %66 = vector.broadcast %65 : vector<1x256xf32> to vector<4x256xf32>
    %67 = arith.mulf %64, %66 : vector<4x256xf32>
    %68 = vector.extract_strided_slice %51 {offsets = [0, 18], sizes = [4, 256], strides = [1, 1]} : vector<4x290xf32> to vector<4x256xf32>
    %69 = vector.extract_strided_slice %0 {offsets = [5, 0], sizes = [1, 256], strides = [1, 1]} : vector<9x256xf32> to vector<1x256xf32>
    %70 = vector.broadcast %69 : vector<1x256xf32> to vector<4x256xf32>
    %71 = arith.mulf %68, %70 : vector<4x256xf32>
    %72 = vector.extract_strided_slice %51 {offsets = [0, 32], sizes = [4, 256], strides = [1, 1]} : vector<4x290xf32> to vector<4x256xf32>
    %73 = vector.extract_strided_slice %0 {offsets = [6, 0], sizes = [1, 256], strides = [1, 1]} : vector<9x256xf32> to vector<1x256xf32>
    %74 = vector.broadcast %73 : vector<1x256xf32> to vector<4x256xf32>
    %75 = arith.mulf %72, %74 : vector<4x256xf32>
    %76 = vector.extract_strided_slice %51 {offsets = [0, 33], sizes = [4, 256], strides = [1, 1]} : vector<4x290xf32> to vector<4x256xf32>
    %77 = vector.extract_strided_slice %0 {offsets = [7, 0], sizes = [1, 256], strides = [1, 1]} : vector<9x256xf32> to vector<1x256xf32>
    %78 = vector.broadcast %77 : vector<1x256xf32> to vector<4x256xf32>
    %79 = arith.mulf %76, %78 : vector<4x256xf32>
    %80 = vector.extract_strided_slice %51 {offsets = [0, 34], sizes = [4, 256], strides = [1, 1]} : vector<4x290xf32> to vector<4x256xf32>
    %81 = vector.extract_strided_slice %0 {offsets = [8, 0], sizes = [1, 256], strides = [1, 1]} : vector<9x256xf32> to vector<1x256xf32>
    %82 = vector.broadcast %81 : vector<1x256xf32> to vector<4x256xf32>
    %83 = arith.mulf %80, %82 : vector<4x256xf32>
    %84 = tpu.concatenate %55, %59, %63, %67, %49, %71, %75, %79, %83 in 0 : vector<4x256xf32>, vector<4x256xf32>, vector<4x256xf32>, vector<4x256xf32>, vector<4x256xf32>, vector<4x256xf32>, vector<4x256xf32>, vector<4x256xf32>, vector<4x256xf32> -> vector<36x256xf32>
    %c0_14 = arith.constant 0 : index
    %c0_15 = arith.constant 0 : index
    %c0_16 = arith.constant 0 : index
    %85 = vector.load %arg5[%c0_14, %c0_15, %c0_16] : memref<3x8x36xf32, #tpu.memory_space<vmem>>, vector<1x8x36xf32>
    %86 = vector.shape_cast %85 : vector<1x8x36xf32> to vector<8x36xf32>
    %cst_17 = arith.constant dense<0.000000e+00> : vector<8x256xf32>
    %87 = tpu.matmul %86, %37, %cst_17 {dimension_numbers = #tpu.dot_dimension_numbers<[1], [0], [0], [1], [0, 0, 1, 1], [], []>} : vector<8x36xf32>, vector<36x256xf32>, vector<8x256xf32> -> vector<8x256xf32>
    %c0_18 = arith.constant 0 : index
    %c0_19 = arith.constant 0 : index
    %c0_20 = arith.constant 0 : index
    %88 = vector.load %arg6[%c0_18, %c0_19, %c0_20] : memref<3x8x36xf32, #tpu.memory_space<vmem>>, vector<1x8x36xf32>
    %89 = vector.shape_cast %88 : vector<1x8x36xf32> to vector<8x36xf32>
    %cst_21 = arith.constant dense<0.000000e+00> : vector<8x256xf32>
    %90 = tpu.matmul %89, %84, %cst_21 {dimension_numbers = #tpu.dot_dimension_numbers<[1], [0], [0], [1], [0, 0, 1, 1], [], []>} : vector<8x36xf32>, vector<36x256xf32>, vector<8x256xf32> -> vector<8x256xf32>
    %91 = arith.addf %87, %90 : vector<8x256xf32>
    %c0_22 = arith.constant 0 : index
    %c0_23 = arith.constant 0 : index
    %c0_24 = arith.constant 0 : index
    %92 = vector.load %arg7[%c0_22, %c0_23, %c0_24] : memref<3x8x1xf32, #tpu.memory_space<vmem>>, vector<1x8x1xf32>
    %93 = vector.shape_cast %92 : vector<1x8x1xf32> to vector<8x1xf32>
    %94 = vector.broadcast %93 : vector<8x1xf32> to vector<8x256xf32>
    %95 = arith.addf %91, %94 : vector<8x256xf32>
    %cst_25 = arith.constant 0.000000e+00 : f32
    %96 = vector.broadcast %cst_25 : f32 to vector<8x256xf32>
    %97 = arith.cmpf oge, %95, %96 : vector<8x256xf32>
    %cst_26 = arith.constant 2.500000e-01 : f32
    %98 = vector.broadcast %cst_26 : f32 to vector<8x256xf32>
    %99 = arith.mulf %98, %95 : vector<8x256xf32>
    %100 = arith.select %97, %95, %99 : vector<8x256xi1>, vector<8x256xf32>
    %101 = tpu.concatenate %2, %49, %100 in 0 : vector<4x256xf32>, vector<4x256xf32>, vector<8x256xf32> -> vector<16x256xf32>
    %102 = vector.extract_strided_slice %101 {offsets = [0, 0], sizes = [4, 256], strides = [1, 1]} : vector<16x256xf32> to vector<4x256xf32>
    %103 = vector.extract_strided_slice %102 {offsets = [0, 0], sizes = [1, 256], strides = [1, 1]} : vector<4x256xf32> to vector<1x256xf32>
    %104 = vector.extract_strided_slice %102 {offsets = [1, 0], sizes = [1, 256], strides = [1, 1]} : vector<4x256xf32> to vector<1x256xf32>
    %105 = arith.maximumf %103, %104 : vector<1x256xf32>
    %106 = vector.extract_strided_slice %102 {offsets = [2, 0], sizes = [1, 256], strides = [1, 1]} : vector<4x256xf32> to vector<1x256xf32>
    %107 = vector.extract_strided_slice %102 {offsets = [3, 0], sizes = [1, 256], strides = [1, 1]} : vector<4x256xf32> to vector<1x256xf32>
    %108 = arith.maximumf %106, %107 : vector<1x256xf32>
    %109 = arith.maximumf %105, %108 : vector<1x256xf32>
    %110 = vector.extract_strided_slice %101 {offsets = [4, 0], sizes = [4, 256], strides = [1, 1]} : vector<16x256xf32> to vector<4x256xf32>
    %111 = vector.extract_strided_slice %110 {offsets = [0, 0], sizes = [1, 256], strides = [1, 1]} : vector<4x256xf32> to vector<1x256xf32>
    %112 = vector.extract_strided_slice %110 {offsets = [1, 0], sizes = [1, 256], strides = [1, 1]} : vector<4x256xf32> to vector<1x256xf32>
    %113 = arith.maximumf %111, %112 : vector<1x256xf32>
    %114 = vector.extract_strided_slice %110 {offsets = [2, 0], sizes = [1, 256], strides = [1, 1]} : vector<4x256xf32> to vector<1x256xf32>
    %115 = vector.extract_strided_slice %110 {offsets = [3, 0], sizes = [1, 256], strides = [1, 1]} : vector<4x256xf32> to vector<1x256xf32>
    %116 = arith.maximumf %114, %115 : vector<1x256xf32>
    %117 = arith.maximumf %113, %116 : vector<1x256xf32>
    %118 = vector.extract_strided_slice %101 {offsets = [8, 0], sizes = [4, 256], strides = [1, 1]} : vector<16x256xf32> to vector<4x256xf32>
    %119 = vector.extract_strided_slice %118 {offsets = [0, 0], sizes = [1, 256], strides = [1, 1]} : vector<4x256xf32> to vector<1x256xf32>
    %120 = vector.extract_strided_slice %118 {offsets = [1, 0], sizes = [1, 256], strides = [1, 1]} : vector<4x256xf32> to vector<1x256xf32>
    %121 = arith.maximumf %119, %120 : vector<1x256xf32>
    %122 = vector.extract_strided_slice %118 {offsets = [2, 0], sizes = [1, 256], strides = [1, 1]} : vector<4x256xf32> to vector<1x256xf32>
    %123 = vector.extract_strided_slice %118 {offsets = [3, 0], sizes = [1, 256], strides = [1, 1]} : vector<4x256xf32> to vector<1x256xf32>
    %124 = arith.maximumf %122, %123 : vector<1x256xf32>
    %125 = arith.maximumf %121, %124 : vector<1x256xf32>
    %126 = vector.extract_strided_slice %101 {offsets = [12, 0], sizes = [4, 256], strides = [1, 1]} : vector<16x256xf32> to vector<4x256xf32>
    %127 = vector.extract_strided_slice %126 {offsets = [0, 0], sizes = [1, 256], strides = [1, 1]} : vector<4x256xf32> to vector<1x256xf32>
    %128 = vector.extract_strided_slice %126 {offsets = [1, 0], sizes = [1, 256], strides = [1, 1]} : vector<4x256xf32> to vector<1x256xf32>
    %129 = arith.maximumf %127, %128 : vector<1x256xf32>
    %130 = vector.extract_strided_slice %126 {offsets = [2, 0], sizes = [1, 256], strides = [1, 1]} : vector<4x256xf32> to vector<1x256xf32>
    %131 = vector.extract_strided_slice %126 {offsets = [3, 0], sizes = [1, 256], strides = [1, 1]} : vector<4x256xf32> to vector<1x256xf32>
    %132 = arith.maximumf %130, %131 : vector<1x256xf32>
    %133 = arith.maximumf %129, %132 : vector<1x256xf32>
    %134 = tpu.concatenate %109, %117, %125, %133 in 0 : vector<1x256xf32>, vector<1x256xf32>, vector<1x256xf32>, vector<1x256xf32> -> vector<4x256xf32>
    %c0_27 = arith.constant 0 : index
    %c0_28 = arith.constant 0 : index
    %c0_29 = arith.constant 0 : index
    %135 = vector.load %arg8[%c0_27, %c0_28, %c0_29] : memref<3x4x36xf32, #tpu.memory_space<vmem>>, vector<1x4x36xf32>
    %136 = vector.shape_cast %135 : vector<1x4x36xf32> to vector<4x36xf32>
    %cst_30 = arith.constant 0.000000e+00 : f32
    %137 = vector.broadcast %cst_30 : f32 to vector<4x17xf32>
    %138 = tpu.concatenate %137, %134, %137 in 1 : vector<4x17xf32>, vector<4x256xf32>, vector<4x17xf32> -> vector<4x290xf32>
    %139 = vector.extract_strided_slice %138 {offsets = [0, 0], sizes = [4, 256], strides = [1, 1]} : vector<4x290xf32> to vector<4x256xf32>
    %140 = vector.extract_strided_slice %0 {offsets = [0, 0], sizes = [1, 256], strides = [1, 1]} : vector<9x256xf32> to vector<1x256xf32>
    %141 = vector.broadcast %140 : vector<1x256xf32> to vector<4x256xf32>
    %142 = arith.mulf %139, %141 : vector<4x256xf32>
    %143 = vector.extract_strided_slice %138 {offsets = [0, 1], sizes = [4, 256], strides = [1, 1]} : vector<4x290xf32> to vector<4x256xf32>
    %144 = vector.extract_strided_slice %0 {offsets = [1, 0], sizes = [1, 256], strides = [1, 1]} : vector<9x256xf32> to vector<1x256xf32>
    %145 = vector.broadcast %144 : vector<1x256xf32> to vector<4x256xf32>
    %146 = arith.mulf %143, %145 : vector<4x256xf32>
    %147 = vector.extract_strided_slice %138 {offsets = [0, 2], sizes = [4, 256], strides = [1, 1]} : vector<4x290xf32> to vector<4x256xf32>
    %148 = vector.extract_strided_slice %0 {offsets = [2, 0], sizes = [1, 256], strides = [1, 1]} : vector<9x256xf32> to vector<1x256xf32>
    %149 = vector.broadcast %148 : vector<1x256xf32> to vector<4x256xf32>
    %150 = arith.mulf %147, %149 : vector<4x256xf32>
    %151 = vector.extract_strided_slice %138 {offsets = [0, 16], sizes = [4, 256], strides = [1, 1]} : vector<4x290xf32> to vector<4x256xf32>
    %152 = vector.extract_strided_slice %0 {offsets = [3, 0], sizes = [1, 256], strides = [1, 1]} : vector<9x256xf32> to vector<1x256xf32>
    %153 = vector.broadcast %152 : vector<1x256xf32> to vector<4x256xf32>
    %154 = arith.mulf %151, %153 : vector<4x256xf32>
    %155 = vector.extract_strided_slice %138 {offsets = [0, 18], sizes = [4, 256], strides = [1, 1]} : vector<4x290xf32> to vector<4x256xf32>
    %156 = vector.extract_strided_slice %0 {offsets = [5, 0], sizes = [1, 256], strides = [1, 1]} : vector<9x256xf32> to vector<1x256xf32>
    %157 = vector.broadcast %156 : vector<1x256xf32> to vector<4x256xf32>
    %158 = arith.mulf %155, %157 : vector<4x256xf32>
    %159 = vector.extract_strided_slice %138 {offsets = [0, 32], sizes = [4, 256], strides = [1, 1]} : vector<4x290xf32> to vector<4x256xf32>
    %160 = vector.extract_strided_slice %0 {offsets = [6, 0], sizes = [1, 256], strides = [1, 1]} : vector<9x256xf32> to vector<1x256xf32>
    %161 = vector.broadcast %160 : vector<1x256xf32> to vector<4x256xf32>
    %162 = arith.mulf %159, %161 : vector<4x256xf32>
    %163 = vector.extract_strided_slice %138 {offsets = [0, 33], sizes = [4, 256], strides = [1, 1]} : vector<4x290xf32> to vector<4x256xf32>
    %164 = vector.extract_strided_slice %0 {offsets = [7, 0], sizes = [1, 256], strides = [1, 1]} : vector<9x256xf32> to vector<1x256xf32>
    %165 = vector.broadcast %164 : vector<1x256xf32> to vector<4x256xf32>
    %166 = arith.mulf %163, %165 : vector<4x256xf32>
    %167 = vector.extract_strided_slice %138 {offsets = [0, 34], sizes = [4, 256], strides = [1, 1]} : vector<4x290xf32> to vector<4x256xf32>
    %168 = vector.extract_strided_slice %0 {offsets = [8, 0], sizes = [1, 256], strides = [1, 1]} : vector<9x256xf32> to vector<1x256xf32>
    %169 = vector.broadcast %168 : vector<1x256xf32> to vector<4x256xf32>
    %170 = arith.mulf %167, %169 : vector<4x256xf32>
    %171 = tpu.concatenate %142, %146, %150, %154, %134, %158, %162, %166, %170 in 0 : vector<4x256xf32>, vector<4x256xf32>, vector<4x256xf32>, vector<4x256xf32>, vector<4x256xf32>, vector<4x256xf32>, vector<4x256xf32>, vector<4x256xf32>, vector<4x256xf32> -> vector<36x256xf32>
    %cst_31 = arith.constant dense<0.000000e+00> : vector<4x256xf32>
    %172 = tpu.matmul %136, %171, %cst_31 {dimension_numbers = #tpu.dot_dimension_numbers<[1], [0], [0], [1], [0, 0, 1, 1], [], []>} : vector<4x36xf32>, vector<36x256xf32>, vector<4x256xf32> -> vector<4x256xf32>
    %c0_32 = arith.constant 0 : index
    %c0_33 = arith.constant 0 : index
    %c0_34 = arith.constant 0 : index
    %173 = vector.load %arg9[%c0_32, %c0_33, %c0_34] : memref<3x4x1xf32, #tpu.memory_space<vmem>>, vector<1x4x1xf32>
    %174 = vector.shape_cast %173 : vector<1x4x1xf32> to vector<4x1xf32>
    %175 = vector.broadcast %174 : vector<4x1xf32> to vector<4x256xf32>
    %176 = arith.addf %172, %175 : vector<4x256xf32>
    %cst_35 = arith.constant 0.000000e+00 : f32
    %177 = vector.broadcast %cst_35 : f32 to vector<4x256xf32>
    %178 = arith.cmpf oge, %176, %177 : vector<4x256xf32>
    %cst_36 = arith.constant 2.500000e-01 : f32
    %179 = vector.broadcast %cst_36 : f32 to vector<4x256xf32>
    %180 = arith.mulf %179, %176 : vector<4x256xf32>
    %181 = arith.select %178, %176, %180 : vector<4x256xi1>, vector<4x256xf32>
    %cst_37 = arith.constant 2.000000e-01 : f32
    %182 = vector.broadcast %cst_37 : f32 to vector<4x256xf32>
    %183 = arith.mulf %181, %182 : vector<4x256xf32>
    %184 = arith.addf %183, %2 : vector<4x256xf32>
    %cst_38 = arith.constant 0.000000e+00 : f32
    %185 = vector.broadcast %cst_38 : f32 to vector<4x17xf32>
    %186 = tpu.concatenate %185, %184, %185 in 1 : vector<4x17xf32>, vector<4x256xf32>, vector<4x17xf32> -> vector<4x290xf32>
    %187 = vector.extract_strided_slice %186 {offsets = [0, 0], sizes = [4, 256], strides = [1, 1]} : vector<4x290xf32> to vector<4x256xf32>
    %188 = vector.extract_strided_slice %0 {offsets = [0, 0], sizes = [1, 256], strides = [1, 1]} : vector<9x256xf32> to vector<1x256xf32>
    %189 = vector.broadcast %188 : vector<1x256xf32> to vector<4x256xf32>
    %190 = arith.mulf %187, %189 : vector<4x256xf32>
    %191 = vector.extract_strided_slice %186 {offsets = [0, 1], sizes = [4, 256], strides = [1, 1]} : vector<4x290xf32> to vector<4x256xf32>
    %192 = vector.extract_strided_slice %0 {offsets = [1, 0], sizes = [1, 256], strides = [1, 1]} : vector<9x256xf32> to vector<1x256xf32>
    %193 = vector.broadcast %192 : vector<1x256xf32> to vector<4x256xf32>
    %194 = arith.mulf %191, %193 : vector<4x256xf32>
    %195 = vector.extract_strided_slice %186 {offsets = [0, 2], sizes = [4, 256], strides = [1, 1]} : vector<4x290xf32> to vector<4x256xf32>
    %196 = vector.extract_strided_slice %0 {offsets = [2, 0], sizes = [1, 256], strides = [1, 1]} : vector<9x256xf32> to vector<1x256xf32>
    %197 = vector.broadcast %196 : vector<1x256xf32> to vector<4x256xf32>
    %198 = arith.mulf %195, %197 : vector<4x256xf32>
    %199 = vector.extract_strided_slice %186 {offsets = [0, 16], sizes = [4, 256], strides = [1, 1]} : vector<4x290xf32> to vector<4x256xf32>
    %200 = vector.extract_strided_slice %0 {offsets = [3, 0], sizes = [1, 256], strides = [1, 1]} : vector<9x256xf32> to vector<1x256xf32>
    %201 = vector.broadcast %200 : vector<1x256xf32> to vector<4x256xf32>
    %202 = arith.mulf %199, %201 : vector<4x256xf32>
    %203 = vector.extract_strided_slice %186 {offsets = [0, 18], sizes = [4, 256], strides = [1, 1]} : vector<4x290xf32> to vector<4x256xf32>
    %204 = vector.extract_strided_slice %0 {offsets = [5, 0], sizes = [1, 256], strides = [1, 1]} : vector<9x256xf32> to vector<1x256xf32>
    %205 = vector.broadcast %204 : vector<1x256xf32> to vector<4x256xf32>
    %206 = arith.mulf %203, %205 : vector<4x256xf32>
    %207 = vector.extract_strided_slice %186 {offsets = [0, 32], sizes = [4, 256], strides = [1, 1]} : vector<4x290xf32> to vector<4x256xf32>
    %208 = vector.extract_strided_slice %0 {offsets = [6, 0], sizes = [1, 256], strides = [1, 1]} : vector<9x256xf32> to vector<1x256xf32>
    %209 = vector.broadcast %208 : vector<1x256xf32> to vector<4x256xf32>
    %210 = arith.mulf %207, %209 : vector<4x256xf32>
    %211 = vector.extract_strided_slice %186 {offsets = [0, 33], sizes = [4, 256], strides = [1, 1]} : vector<4x290xf32> to vector<4x256xf32>
    %212 = vector.extract_strided_slice %0 {offsets = [7, 0], sizes = [1, 256], strides = [1, 1]} : vector<9x256xf32> to vector<1x256xf32>
    %213 = vector.broadcast %212 : vector<1x256xf32> to vector<4x256xf32>
    %214 = arith.mulf %211, %213 : vector<4x256xf32>
    %215 = vector.extract_strided_slice %186 {offsets = [0, 34], sizes = [4, 256], strides = [1, 1]} : vector<4x290xf32> to vector<4x256xf32>
    %216 = vector.extract_strided_slice %0 {offsets = [8, 0], sizes = [1, 256], strides = [1, 1]} : vector<9x256xf32> to vector<1x256xf32>
    %217 = vector.broadcast %216 : vector<1x256xf32> to vector<4x256xf32>
    %218 = arith.mulf %215, %217 : vector<4x256xf32>
    %219 = tpu.concatenate %190, %194, %198, %202, %184, %206, %210, %214, %218 in 0 : vector<4x256xf32>, vector<4x256xf32>, vector<4x256xf32>, vector<4x256xf32>, vector<4x256xf32>, vector<4x256xf32>, vector<4x256xf32>, vector<4x256xf32>, vector<4x256xf32> -> vector<36x256xf32>
    %c1 = arith.constant 1 : index
    %c0_39 = arith.constant 0 : index
    %c0_40 = arith.constant 0 : index
    %220 = vector.load %arg3[%c1, %c0_39, %c0_40] : memref<3x4x36xf32, #tpu.memory_space<vmem>>, vector<1x4x36xf32>
    %221 = vector.shape_cast %220 : vector<1x4x36xf32> to vector<4x36xf32>
    %cst_41 = arith.constant dense<0.000000e+00> : vector<4x256xf32>
    %222 = tpu.matmul %221, %219, %cst_41 {dimension_numbers = #tpu.dot_dimension_numbers<[1], [0], [0], [1], [0, 0, 1, 1], [], []>} : vector<4x36xf32>, vector<36x256xf32>, vector<4x256xf32> -> vector<4x256xf32>
    %c1_42 = arith.constant 1 : index
    %c0_43 = arith.constant 0 : index
    %c0_44 = arith.constant 0 : index
    %223 = vector.load %arg4[%c1_42, %c0_43, %c0_44] : memref<3x4x1xf32, #tpu.memory_space<vmem>>, vector<1x4x1xf32>
    %224 = vector.shape_cast %223 : vector<1x4x1xf32> to vector<4x1xf32>
    %225 = vector.broadcast %224 : vector<4x1xf32> to vector<4x256xf32>
    %226 = arith.addf %222, %225 : vector<4x256xf32>
    %cst_45 = arith.constant 0.000000e+00 : f32
    %227 = vector.broadcast %cst_45 : f32 to vector<4x256xf32>
    %228 = arith.cmpf oge, %226, %227 : vector<4x256xf32>
    %cst_46 = arith.constant 2.500000e-01 : f32
    %229 = vector.broadcast %cst_46 : f32 to vector<4x256xf32>
    %230 = arith.mulf %229, %226 : vector<4x256xf32>
    %231 = arith.select %228, %226, %230 : vector<4x256xi1>, vector<4x256xf32>
    %cst_47 = arith.constant 0.000000e+00 : f32
    %232 = vector.broadcast %cst_47 : f32 to vector<4x17xf32>
    %233 = tpu.concatenate %232, %231, %232 in 1 : vector<4x17xf32>, vector<4x256xf32>, vector<4x17xf32> -> vector<4x290xf32>
    %234 = vector.extract_strided_slice %233 {offsets = [0, 0], sizes = [4, 256], strides = [1, 1]} : vector<4x290xf32> to vector<4x256xf32>
    %235 = vector.extract_strided_slice %0 {offsets = [0, 0], sizes = [1, 256], strides = [1, 1]} : vector<9x256xf32> to vector<1x256xf32>
    %236 = vector.broadcast %235 : vector<1x256xf32> to vector<4x256xf32>
    %237 = arith.mulf %234, %236 : vector<4x256xf32>
    %238 = vector.extract_strided_slice %233 {offsets = [0, 1], sizes = [4, 256], strides = [1, 1]} : vector<4x290xf32> to vector<4x256xf32>
    %239 = vector.extract_strided_slice %0 {offsets = [1, 0], sizes = [1, 256], strides = [1, 1]} : vector<9x256xf32> to vector<1x256xf32>
    %240 = vector.broadcast %239 : vector<1x256xf32> to vector<4x256xf32>
    %241 = arith.mulf %238, %240 : vector<4x256xf32>
    %242 = vector.extract_strided_slice %233 {offsets = [0, 2], sizes = [4, 256], strides = [1, 1]} : vector<4x290xf32> to vector<4x256xf32>
    %243 = vector.extract_strided_slice %0 {offsets = [2, 0], sizes = [1, 256], strides = [1, 1]} : vector<9x256xf32> to vector<1x256xf32>
    %244 = vector.broadcast %243 : vector<1x256xf32> to vector<4x256xf32>
    %245 = arith.mulf %242, %244 : vector<4x256xf32>
    %246 = vector.extract_strided_slice %233 {offsets = [0, 16], sizes = [4, 256], strides = [1, 1]} : vector<4x290xf32> to vector<4x256xf32>
    %247 = vector.extract_strided_slice %0 {offsets = [3, 0], sizes = [1, 256], strides = [1, 1]} : vector<9x256xf32> to vector<1x256xf32>
    %248 = vector.broadcast %247 : vector<1x256xf32> to vector<4x256xf32>
    %249 = arith.mulf %246, %248 : vector<4x256xf32>
    %250 = vector.extract_strided_slice %233 {offsets = [0, 18], sizes = [4, 256], strides = [1, 1]} : vector<4x290xf32> to vector<4x256xf32>
    %251 = vector.extract_strided_slice %0 {offsets = [5, 0], sizes = [1, 256], strides = [1, 1]} : vector<9x256xf32> to vector<1x256xf32>
    %252 = vector.broadcast %251 : vector<1x256xf32> to vector<4x256xf32>
    %253 = arith.mulf %250, %252 : vector<4x256xf32>
    %254 = vector.extract_strided_slice %233 {offsets = [0, 32], sizes = [4, 256], strides = [1, 1]} : vector<4x290xf32> to vector<4x256xf32>
    %255 = vector.extract_strided_slice %0 {offsets = [6, 0], sizes = [1, 256], strides = [1, 1]} : vector<9x256xf32> to vector<1x256xf32>
    %256 = vector.broadcast %255 : vector<1x256xf32> to vector<4x256xf32>
    %257 = arith.mulf %254, %256 : vector<4x256xf32>
    %258 = vector.extract_strided_slice %233 {offsets = [0, 33], sizes = [4, 256], strides = [1, 1]} : vector<4x290xf32> to vector<4x256xf32>
    %259 = vector.extract_strided_slice %0 {offsets = [7, 0], sizes = [1, 256], strides = [1, 1]} : vector<9x256xf32> to vector<1x256xf32>
    %260 = vector.broadcast %259 : vector<1x256xf32> to vector<4x256xf32>
    %261 = arith.mulf %258, %260 : vector<4x256xf32>
    %262 = vector.extract_strided_slice %233 {offsets = [0, 34], sizes = [4, 256], strides = [1, 1]} : vector<4x290xf32> to vector<4x256xf32>
    %263 = vector.extract_strided_slice %0 {offsets = [8, 0], sizes = [1, 256], strides = [1, 1]} : vector<9x256xf32> to vector<1x256xf32>
    %264 = vector.broadcast %263 : vector<1x256xf32> to vector<4x256xf32>
    %265 = arith.mulf %262, %264 : vector<4x256xf32>
    %266 = tpu.concatenate %237, %241, %245, %249, %231, %253, %257, %261, %265 in 0 : vector<4x256xf32>, vector<4x256xf32>, vector<4x256xf32>, vector<4x256xf32>, vector<4x256xf32>, vector<4x256xf32>, vector<4x256xf32>, vector<4x256xf32>, vector<4x256xf32> -> vector<36x256xf32>
    %c1_48 = arith.constant 1 : index
    %c0_49 = arith.constant 0 : index
    %c0_50 = arith.constant 0 : index
    %267 = vector.load %arg5[%c1_48, %c0_49, %c0_50] : memref<3x8x36xf32, #tpu.memory_space<vmem>>, vector<1x8x36xf32>
    %268 = vector.shape_cast %267 : vector<1x8x36xf32> to vector<8x36xf32>
    %cst_51 = arith.constant dense<0.000000e+00> : vector<8x256xf32>
    %269 = tpu.matmul %268, %219, %cst_51 {dimension_numbers = #tpu.dot_dimension_numbers<[1], [0], [0], [1], [0, 0, 1, 1], [], []>} : vector<8x36xf32>, vector<36x256xf32>, vector<8x256xf32> -> vector<8x256xf32>
    %c1_52 = arith.constant 1 : index
    %c0_53 = arith.constant 0 : index
    %c0_54 = arith.constant 0 : index
    %270 = vector.load %arg6[%c1_52, %c0_53, %c0_54] : memref<3x8x36xf32, #tpu.memory_space<vmem>>, vector<1x8x36xf32>
    %271 = vector.shape_cast %270 : vector<1x8x36xf32> to vector<8x36xf32>
    %cst_55 = arith.constant dense<0.000000e+00> : vector<8x256xf32>
    %272 = tpu.matmul %271, %266, %cst_55 {dimension_numbers = #tpu.dot_dimension_numbers<[1], [0], [0], [1], [0, 0, 1, 1], [], []>} : vector<8x36xf32>, vector<36x256xf32>, vector<8x256xf32> -> vector<8x256xf32>
    %273 = arith.addf %269, %272 : vector<8x256xf32>
    %c1_56 = arith.constant 1 : index
    %c0_57 = arith.constant 0 : index
    %c0_58 = arith.constant 0 : index
    %274 = vector.load %arg7[%c1_56, %c0_57, %c0_58] : memref<3x8x1xf32, #tpu.memory_space<vmem>>, vector<1x8x1xf32>
    %275 = vector.shape_cast %274 : vector<1x8x1xf32> to vector<8x1xf32>
    %276 = vector.broadcast %275 : vector<8x1xf32> to vector<8x256xf32>
    %277 = arith.addf %273, %276 : vector<8x256xf32>
    %cst_59 = arith.constant 0.000000e+00 : f32
    %278 = vector.broadcast %cst_59 : f32 to vector<8x256xf32>
    %279 = arith.cmpf oge, %277, %278 : vector<8x256xf32>
    %cst_60 = arith.constant 2.500000e-01 : f32
    %280 = vector.broadcast %cst_60 : f32 to vector<8x256xf32>
    %281 = arith.mulf %280, %277 : vector<8x256xf32>
    %282 = arith.select %279, %277, %281 : vector<8x256xi1>, vector<8x256xf32>
    %283 = tpu.concatenate %184, %231, %282 in 0 : vector<4x256xf32>, vector<4x256xf32>, vector<8x256xf32> -> vector<16x256xf32>
    %284 = vector.extract_strided_slice %283 {offsets = [0, 0], sizes = [4, 256], strides = [1, 1]} : vector<16x256xf32> to vector<4x256xf32>
    %285 = vector.extract_strided_slice %284 {offsets = [0, 0], sizes = [1, 256], strides = [1, 1]} : vector<4x256xf32> to vector<1x256xf32>
    %286 = vector.extract_strided_slice %284 {offsets = [1, 0], sizes = [1, 256], strides = [1, 1]} : vector<4x256xf32> to vector<1x256xf32>
    %287 = arith.maximumf %285, %286 : vector<1x256xf32>
    %288 = vector.extract_strided_slice %284 {offsets = [2, 0], sizes = [1, 256], strides = [1, 1]} : vector<4x256xf32> to vector<1x256xf32>
    %289 = vector.extract_strided_slice %284 {offsets = [3, 0], sizes = [1, 256], strides = [1, 1]} : vector<4x256xf32> to vector<1x256xf32>
    %290 = arith.maximumf %288, %289 : vector<1x256xf32>
    %291 = arith.maximumf %287, %290 : vector<1x256xf32>
    %292 = vector.extract_strided_slice %283 {offsets = [4, 0], sizes = [4, 256], strides = [1, 1]} : vector<16x256xf32> to vector<4x256xf32>
    %293 = vector.extract_strided_slice %292 {offsets = [0, 0], sizes = [1, 256], strides = [1, 1]} : vector<4x256xf32> to vector<1x256xf32>
    %294 = vector.extract_strided_slice %292 {offsets = [1, 0], sizes = [1, 256], strides = [1, 1]} : vector<4x256xf32> to vector<1x256xf32>
    %295 = arith.maximumf %293, %294 : vector<1x256xf32>
    %296 = vector.extract_strided_slice %292 {offsets = [2, 0], sizes = [1, 256], strides = [1, 1]} : vector<4x256xf32> to vector<1x256xf32>
    %297 = vector.extract_strided_slice %292 {offsets = [3, 0], sizes = [1, 256], strides = [1, 1]} : vector<4x256xf32> to vector<1x256xf32>
    %298 = arith.maximumf %296, %297 : vector<1x256xf32>
    %299 = arith.maximumf %295, %298 : vector<1x256xf32>
    %300 = vector.extract_strided_slice %283 {offsets = [8, 0], sizes = [4, 256], strides = [1, 1]} : vector<16x256xf32> to vector<4x256xf32>
    %301 = vector.extract_strided_slice %300 {offsets = [0, 0], sizes = [1, 256], strides = [1, 1]} : vector<4x256xf32> to vector<1x256xf32>
    %302 = vector.extract_strided_slice %300 {offsets = [1, 0], sizes = [1, 256], strides = [1, 1]} : vector<4x256xf32> to vector<1x256xf32>
    %303 = arith.maximumf %301, %302 : vector<1x256xf32>
    %304 = vector.extract_strided_slice %300 {offsets = [2, 0], sizes = [1, 256], strides = [1, 1]} : vector<4x256xf32> to vector<1x256xf32>
    %305 = vector.extract_strided_slice %300 {offsets = [3, 0], sizes = [1, 256], strides = [1, 1]} : vector<4x256xf32> to vector<1x256xf32>
    %306 = arith.maximumf %304, %305 : vector<1x256xf32>
    %307 = arith.maximumf %303, %306 : vector<1x256xf32>
    %308 = vector.extract_strided_slice %283 {offsets = [12, 0], sizes = [4, 256], strides = [1, 1]} : vector<16x256xf32> to vector<4x256xf32>
    %309 = vector.extract_strided_slice %308 {offsets = [0, 0], sizes = [1, 256], strides = [1, 1]} : vector<4x256xf32> to vector<1x256xf32>
    %310 = vector.extract_strided_slice %308 {offsets = [1, 0], sizes = [1, 256], strides = [1, 1]} : vector<4x256xf32> to vector<1x256xf32>
    %311 = arith.maximumf %309, %310 : vector<1x256xf32>
    %312 = vector.extract_strided_slice %308 {offsets = [2, 0], sizes = [1, 256], strides = [1, 1]} : vector<4x256xf32> to vector<1x256xf32>
    %313 = vector.extract_strided_slice %308 {offsets = [3, 0], sizes = [1, 256], strides = [1, 1]} : vector<4x256xf32> to vector<1x256xf32>
    %314 = arith.maximumf %312, %313 : vector<1x256xf32>
    %315 = arith.maximumf %311, %314 : vector<1x256xf32>
    %316 = tpu.concatenate %291, %299, %307, %315 in 0 : vector<1x256xf32>, vector<1x256xf32>, vector<1x256xf32>, vector<1x256xf32> -> vector<4x256xf32>
    %c1_61 = arith.constant 1 : index
    %c0_62 = arith.constant 0 : index
    %c0_63 = arith.constant 0 : index
    %317 = vector.load %arg8[%c1_61, %c0_62, %c0_63] : memref<3x4x36xf32, #tpu.memory_space<vmem>>, vector<1x4x36xf32>
    %318 = vector.shape_cast %317 : vector<1x4x36xf32> to vector<4x36xf32>
    %cst_64 = arith.constant 0.000000e+00 : f32
    %319 = vector.broadcast %cst_64 : f32 to vector<4x17xf32>
    %320 = tpu.concatenate %319, %316, %319 in 1 : vector<4x17xf32>, vector<4x256xf32>, vector<4x17xf32> -> vector<4x290xf32>
    %321 = vector.extract_strided_slice %320 {offsets = [0, 0], sizes = [4, 256], strides = [1, 1]} : vector<4x290xf32> to vector<4x256xf32>
    %322 = vector.extract_strided_slice %0 {offsets = [0, 0], sizes = [1, 256], strides = [1, 1]} : vector<9x256xf32> to vector<1x256xf32>
    %323 = vector.broadcast %322 : vector<1x256xf32> to vector<4x256xf32>
    %324 = arith.mulf %321, %323 : vector<4x256xf32>
    %325 = vector.extract_strided_slice %320 {offsets = [0, 1], sizes = [4, 256], strides = [1, 1]} : vector<4x290xf32> to vector<4x256xf32>
    %326 = vector.extract_strided_slice %0 {offsets = [1, 0], sizes = [1, 256], strides = [1, 1]} : vector<9x256xf32> to vector<1x256xf32>
    %327 = vector.broadcast %326 : vector<1x256xf32> to vector<4x256xf32>
    %328 = arith.mulf %325, %327 : vector<4x256xf32>
    %329 = vector.extract_strided_slice %320 {offsets = [0, 2], sizes = [4, 256], strides = [1, 1]} : vector<4x290xf32> to vector<4x256xf32>
    %330 = vector.extract_strided_slice %0 {offsets = [2, 0], sizes = [1, 256], strides = [1, 1]} : vector<9x256xf32> to vector<1x256xf32>
    %331 = vector.broadcast %330 : vector<1x256xf32> to vector<4x256xf32>
    %332 = arith.mulf %329, %331 : vector<4x256xf32>
    %333 = vector.extract_strided_slice %320 {offsets = [0, 16], sizes = [4, 256], strides = [1, 1]} : vector<4x290xf32> to vector<4x256xf32>
    %334 = vector.extract_strided_slice %0 {offsets = [3, 0], sizes = [1, 256], strides = [1, 1]} : vector<9x256xf32> to vector<1x256xf32>
    %335 = vector.broadcast %334 : vector<1x256xf32> to vector<4x256xf32>
    %336 = arith.mulf %333, %335 : vector<4x256xf32>
    %337 = vector.extract_strided_slice %320 {offsets = [0, 18], sizes = [4, 256], strides = [1, 1]} : vector<4x290xf32> to vector<4x256xf32>
    %338 = vector.extract_strided_slice %0 {offsets = [5, 0], sizes = [1, 256], strides = [1, 1]} : vector<9x256xf32> to vector<1x256xf32>
    %339 = vector.broadcast %338 : vector<1x256xf32> to vector<4x256xf32>
    %340 = arith.mulf %337, %339 : vector<4x256xf32>
    %341 = vector.extract_strided_slice %320 {offsets = [0, 32], sizes = [4, 256], strides = [1, 1]} : vector<4x290xf32> to vector<4x256xf32>
    %342 = vector.extract_strided_slice %0 {offsets = [6, 0], sizes = [1, 256], strides = [1, 1]} : vector<9x256xf32> to vector<1x256xf32>
    %343 = vector.broadcast %342 : vector<1x256xf32> to vector<4x256xf32>
    %344 = arith.mulf %341, %343 : vector<4x256xf32>
    %345 = vector.extract_strided_slice %320 {offsets = [0, 33], sizes = [4, 256], strides = [1, 1]} : vector<4x290xf32> to vector<4x256xf32>
    %346 = vector.extract_strided_slice %0 {offsets = [7, 0], sizes = [1, 256], strides = [1, 1]} : vector<9x256xf32> to vector<1x256xf32>
    %347 = vector.broadcast %346 : vector<1x256xf32> to vector<4x256xf32>
    %348 = arith.mulf %345, %347 : vector<4x256xf32>
    %349 = vector.extract_strided_slice %320 {offsets = [0, 34], sizes = [4, 256], strides = [1, 1]} : vector<4x290xf32> to vector<4x256xf32>
    %350 = vector.extract_strided_slice %0 {offsets = [8, 0], sizes = [1, 256], strides = [1, 1]} : vector<9x256xf32> to vector<1x256xf32>
    %351 = vector.broadcast %350 : vector<1x256xf32> to vector<4x256xf32>
    %352 = arith.mulf %349, %351 : vector<4x256xf32>
    %353 = tpu.concatenate %324, %328, %332, %336, %316, %340, %344, %348, %352 in 0 : vector<4x256xf32>, vector<4x256xf32>, vector<4x256xf32>, vector<4x256xf32>, vector<4x256xf32>, vector<4x256xf32>, vector<4x256xf32>, vector<4x256xf32>, vector<4x256xf32> -> vector<36x256xf32>
    %cst_65 = arith.constant dense<0.000000e+00> : vector<4x256xf32>
    %354 = tpu.matmul %318, %353, %cst_65 {dimension_numbers = #tpu.dot_dimension_numbers<[1], [0], [0], [1], [0, 0, 1, 1], [], []>} : vector<4x36xf32>, vector<36x256xf32>, vector<4x256xf32> -> vector<4x256xf32>
    %c1_66 = arith.constant 1 : index
    %c0_67 = arith.constant 0 : index
    %c0_68 = arith.constant 0 : index
    %355 = vector.load %arg9[%c1_66, %c0_67, %c0_68] : memref<3x4x1xf32, #tpu.memory_space<vmem>>, vector<1x4x1xf32>
    %356 = vector.shape_cast %355 : vector<1x4x1xf32> to vector<4x1xf32>
    %357 = vector.broadcast %356 : vector<4x1xf32> to vector<4x256xf32>
    %358 = arith.addf %354, %357 : vector<4x256xf32>
    %cst_69 = arith.constant 0.000000e+00 : f32
    %359 = vector.broadcast %cst_69 : f32 to vector<4x256xf32>
    %360 = arith.cmpf oge, %358, %359 : vector<4x256xf32>
    %cst_70 = arith.constant 2.500000e-01 : f32
    %361 = vector.broadcast %cst_70 : f32 to vector<4x256xf32>
    %362 = arith.mulf %361, %358 : vector<4x256xf32>
    %363 = arith.select %360, %358, %362 : vector<4x256xi1>, vector<4x256xf32>
    %cst_71 = arith.constant 2.000000e-01 : f32
    %364 = vector.broadcast %cst_71 : f32 to vector<4x256xf32>
    %365 = arith.mulf %363, %364 : vector<4x256xf32>
    %366 = arith.addf %365, %184 : vector<4x256xf32>
    %cst_72 = arith.constant 0.000000e+00 : f32
    %367 = vector.broadcast %cst_72 : f32 to vector<4x17xf32>
    %368 = tpu.concatenate %367, %366, %367 in 1 : vector<4x17xf32>, vector<4x256xf32>, vector<4x17xf32> -> vector<4x290xf32>
    %369 = vector.extract_strided_slice %368 {offsets = [0, 0], sizes = [4, 256], strides = [1, 1]} : vector<4x290xf32> to vector<4x256xf32>
    %370 = vector.extract_strided_slice %0 {offsets = [0, 0], sizes = [1, 256], strides = [1, 1]} : vector<9x256xf32> to vector<1x256xf32>
    %371 = vector.broadcast %370 : vector<1x256xf32> to vector<4x256xf32>
    %372 = arith.mulf %369, %371 : vector<4x256xf32>
    %373 = vector.extract_strided_slice %368 {offsets = [0, 1], sizes = [4, 256], strides = [1, 1]} : vector<4x290xf32> to vector<4x256xf32>
    %374 = vector.extract_strided_slice %0 {offsets = [1, 0], sizes = [1, 256], strides = [1, 1]} : vector<9x256xf32> to vector<1x256xf32>
    %375 = vector.broadcast %374 : vector<1x256xf32> to vector<4x256xf32>
    %376 = arith.mulf %373, %375 : vector<4x256xf32>
    %377 = vector.extract_strided_slice %368 {offsets = [0, 2], sizes = [4, 256], strides = [1, 1]} : vector<4x290xf32> to vector<4x256xf32>
    %378 = vector.extract_strided_slice %0 {offsets = [2, 0], sizes = [1, 256], strides = [1, 1]} : vector<9x256xf32> to vector<1x256xf32>
    %379 = vector.broadcast %378 : vector<1x256xf32> to vector<4x256xf32>
    %380 = arith.mulf %377, %379 : vector<4x256xf32>
    %381 = vector.extract_strided_slice %368 {offsets = [0, 16], sizes = [4, 256], strides = [1, 1]} : vector<4x290xf32> to vector<4x256xf32>
    %382 = vector.extract_strided_slice %0 {offsets = [3, 0], sizes = [1, 256], strides = [1, 1]} : vector<9x256xf32> to vector<1x256xf32>
    %383 = vector.broadcast %382 : vector<1x256xf32> to vector<4x256xf32>
    %384 = arith.mulf %381, %383 : vector<4x256xf32>
    %385 = vector.extract_strided_slice %368 {offsets = [0, 18], sizes = [4, 256], strides = [1, 1]} : vector<4x290xf32> to vector<4x256xf32>
    %386 = vector.extract_strided_slice %0 {offsets = [5, 0], sizes = [1, 256], strides = [1, 1]} : vector<9x256xf32> to vector<1x256xf32>
    %387 = vector.broadcast %386 : vector<1x256xf32> to vector<4x256xf32>
    %388 = arith.mulf %385, %387 : vector<4x256xf32>
    %389 = vector.extract_strided_slice %368 {offsets = [0, 32], sizes = [4, 256], strides = [1, 1]} : vector<4x290xf32> to vector<4x256xf32>
    %390 = vector.extract_strided_slice %0 {offsets = [6, 0], sizes = [1, 256], strides = [1, 1]} : vector<9x256xf32> to vector<1x256xf32>
    %391 = vector.broadcast %390 : vector<1x256xf32> to vector<4x256xf32>
    %392 = arith.mulf %389, %391 : vector<4x256xf32>
    %393 = vector.extract_strided_slice %368 {offsets = [0, 33], sizes = [4, 256], strides = [1, 1]} : vector<4x290xf32> to vector<4x256xf32>
    %394 = vector.extract_strided_slice %0 {offsets = [7, 0], sizes = [1, 256], strides = [1, 1]} : vector<9x256xf32> to vector<1x256xf32>
    %395 = vector.broadcast %394 : vector<1x256xf32> to vector<4x256xf32>
    %396 = arith.mulf %393, %395 : vector<4x256xf32>
    %397 = vector.extract_strided_slice %368 {offsets = [0, 34], sizes = [4, 256], strides = [1, 1]} : vector<4x290xf32> to vector<4x256xf32>
    %398 = vector.extract_strided_slice %0 {offsets = [8, 0], sizes = [1, 256], strides = [1, 1]} : vector<9x256xf32> to vector<1x256xf32>
    %399 = vector.broadcast %398 : vector<1x256xf32> to vector<4x256xf32>
    %400 = arith.mulf %397, %399 : vector<4x256xf32>
    %401 = tpu.concatenate %372, %376, %380, %384, %366, %388, %392, %396, %400 in 0 : vector<4x256xf32>, vector<4x256xf32>, vector<4x256xf32>, vector<4x256xf32>, vector<4x256xf32>, vector<4x256xf32>, vector<4x256xf32>, vector<4x256xf32>, vector<4x256xf32> -> vector<36x256xf32>
    %c2 = arith.constant 2 : index
    %c0_73 = arith.constant 0 : index
    %c0_74 = arith.constant 0 : index
    %402 = vector.load %arg3[%c2, %c0_73, %c0_74] : memref<3x4x36xf32, #tpu.memory_space<vmem>>, vector<1x4x36xf32>
    %403 = vector.shape_cast %402 : vector<1x4x36xf32> to vector<4x36xf32>
    %cst_75 = arith.constant dense<0.000000e+00> : vector<4x256xf32>
    %404 = tpu.matmul %403, %401, %cst_75 {dimension_numbers = #tpu.dot_dimension_numbers<[1], [0], [0], [1], [0, 0, 1, 1], [], []>} : vector<4x36xf32>, vector<36x256xf32>, vector<4x256xf32> -> vector<4x256xf32>
    %c2_76 = arith.constant 2 : index
    %c0_77 = arith.constant 0 : index
    %c0_78 = arith.constant 0 : index
    %405 = vector.load %arg4[%c2_76, %c0_77, %c0_78] : memref<3x4x1xf32, #tpu.memory_space<vmem>>, vector<1x4x1xf32>
    %406 = vector.shape_cast %405 : vector<1x4x1xf32> to vector<4x1xf32>
    %407 = vector.broadcast %406 : vector<4x1xf32> to vector<4x256xf32>
    %408 = arith.addf %404, %407 : vector<4x256xf32>
    %cst_79 = arith.constant 0.000000e+00 : f32
    %409 = vector.broadcast %cst_79 : f32 to vector<4x256xf32>
    %410 = arith.cmpf oge, %408, %409 : vector<4x256xf32>
    %cst_80 = arith.constant 2.500000e-01 : f32
    %411 = vector.broadcast %cst_80 : f32 to vector<4x256xf32>
    %412 = arith.mulf %411, %408 : vector<4x256xf32>
    %413 = arith.select %410, %408, %412 : vector<4x256xi1>, vector<4x256xf32>
    %cst_81 = arith.constant 0.000000e+00 : f32
    %414 = vector.broadcast %cst_81 : f32 to vector<4x17xf32>
    %415 = tpu.concatenate %414, %413, %414 in 1 : vector<4x17xf32>, vector<4x256xf32>, vector<4x17xf32> -> vector<4x290xf32>
    %416 = vector.extract_strided_slice %415 {offsets = [0, 0], sizes = [4, 256], strides = [1, 1]} : vector<4x290xf32> to vector<4x256xf32>
    %417 = vector.extract_strided_slice %0 {offsets = [0, 0], sizes = [1, 256], strides = [1, 1]} : vector<9x256xf32> to vector<1x256xf32>
    %418 = vector.broadcast %417 : vector<1x256xf32> to vector<4x256xf32>
    %419 = arith.mulf %416, %418 : vector<4x256xf32>
    %420 = vector.extract_strided_slice %415 {offsets = [0, 1], sizes = [4, 256], strides = [1, 1]} : vector<4x290xf32> to vector<4x256xf32>
    %421 = vector.extract_strided_slice %0 {offsets = [1, 0], sizes = [1, 256], strides = [1, 1]} : vector<9x256xf32> to vector<1x256xf32>
    %422 = vector.broadcast %421 : vector<1x256xf32> to vector<4x256xf32>
    %423 = arith.mulf %420, %422 : vector<4x256xf32>
    %424 = vector.extract_strided_slice %415 {offsets = [0, 2], sizes = [4, 256], strides = [1, 1]} : vector<4x290xf32> to vector<4x256xf32>
    %425 = vector.extract_strided_slice %0 {offsets = [2, 0], sizes = [1, 256], strides = [1, 1]} : vector<9x256xf32> to vector<1x256xf32>
    %426 = vector.broadcast %425 : vector<1x256xf32> to vector<4x256xf32>
    %427 = arith.mulf %424, %426 : vector<4x256xf32>
    %428 = vector.extract_strided_slice %415 {offsets = [0, 16], sizes = [4, 256], strides = [1, 1]} : vector<4x290xf32> to vector<4x256xf32>
    %429 = vector.extract_strided_slice %0 {offsets = [3, 0], sizes = [1, 256], strides = [1, 1]} : vector<9x256xf32> to vector<1x256xf32>
    %430 = vector.broadcast %429 : vector<1x256xf32> to vector<4x256xf32>
    %431 = arith.mulf %428, %430 : vector<4x256xf32>
    %432 = vector.extract_strided_slice %415 {offsets = [0, 18], sizes = [4, 256], strides = [1, 1]} : vector<4x290xf32> to vector<4x256xf32>
    %433 = vector.extract_strided_slice %0 {offsets = [5, 0], sizes = [1, 256], strides = [1, 1]} : vector<9x256xf32> to vector<1x256xf32>
    %434 = vector.broadcast %433 : vector<1x256xf32> to vector<4x256xf32>
    %435 = arith.mulf %432, %434 : vector<4x256xf32>
    %436 = vector.extract_strided_slice %415 {offsets = [0, 32], sizes = [4, 256], strides = [1, 1]} : vector<4x290xf32> to vector<4x256xf32>
    %437 = vector.extract_strided_slice %0 {offsets = [6, 0], sizes = [1, 256], strides = [1, 1]} : vector<9x256xf32> to vector<1x256xf32>
    %438 = vector.broadcast %437 : vector<1x256xf32> to vector<4x256xf32>
    %439 = arith.mulf %436, %438 : vector<4x256xf32>
    %440 = vector.extract_strided_slice %415 {offsets = [0, 33], sizes = [4, 256], strides = [1, 1]} : vector<4x290xf32> to vector<4x256xf32>
    %441 = vector.extract_strided_slice %0 {offsets = [7, 0], sizes = [1, 256], strides = [1, 1]} : vector<9x256xf32> to vector<1x256xf32>
    %442 = vector.broadcast %441 : vector<1x256xf32> to vector<4x256xf32>
    %443 = arith.mulf %440, %442 : vector<4x256xf32>
    %444 = vector.extract_strided_slice %415 {offsets = [0, 34], sizes = [4, 256], strides = [1, 1]} : vector<4x290xf32> to vector<4x256xf32>
    %445 = vector.extract_strided_slice %0 {offsets = [8, 0], sizes = [1, 256], strides = [1, 1]} : vector<9x256xf32> to vector<1x256xf32>
    %446 = vector.broadcast %445 : vector<1x256xf32> to vector<4x256xf32>
    %447 = arith.mulf %444, %446 : vector<4x256xf32>
    %448 = tpu.concatenate %419, %423, %427, %431, %413, %435, %439, %443, %447 in 0 : vector<4x256xf32>, vector<4x256xf32>, vector<4x256xf32>, vector<4x256xf32>, vector<4x256xf32>, vector<4x256xf32>, vector<4x256xf32>, vector<4x256xf32>, vector<4x256xf32> -> vector<36x256xf32>
    %c2_82 = arith.constant 2 : index
    %c0_83 = arith.constant 0 : index
    %c0_84 = arith.constant 0 : index
    %449 = vector.load %arg5[%c2_82, %c0_83, %c0_84] : memref<3x8x36xf32, #tpu.memory_space<vmem>>, vector<1x8x36xf32>
    %450 = vector.shape_cast %449 : vector<1x8x36xf32> to vector<8x36xf32>
    %cst_85 = arith.constant dense<0.000000e+00> : vector<8x256xf32>
    %451 = tpu.matmul %450, %401, %cst_85 {dimension_numbers = #tpu.dot_dimension_numbers<[1], [0], [0], [1], [0, 0, 1, 1], [], []>} : vector<8x36xf32>, vector<36x256xf32>, vector<8x256xf32> -> vector<8x256xf32>
    %c2_86 = arith.constant 2 : index
    %c0_87 = arith.constant 0 : index
    %c0_88 = arith.constant 0 : index
    %452 = vector.load %arg6[%c2_86, %c0_87, %c0_88] : memref<3x8x36xf32, #tpu.memory_space<vmem>>, vector<1x8x36xf32>
    %453 = vector.shape_cast %452 : vector<1x8x36xf32> to vector<8x36xf32>
    %cst_89 = arith.constant dense<0.000000e+00> : vector<8x256xf32>
    %454 = tpu.matmul %453, %448, %cst_89 {dimension_numbers = #tpu.dot_dimension_numbers<[1], [0], [0], [1], [0, 0, 1, 1], [], []>} : vector<8x36xf32>, vector<36x256xf32>, vector<8x256xf32> -> vector<8x256xf32>
    %455 = arith.addf %451, %454 : vector<8x256xf32>
    %c2_90 = arith.constant 2 : index
    %c0_91 = arith.constant 0 : index
    %c0_92 = arith.constant 0 : index
    %456 = vector.load %arg7[%c2_90, %c0_91, %c0_92] : memref<3x8x1xf32, #tpu.memory_space<vmem>>, vector<1x8x1xf32>
    %457 = vector.shape_cast %456 : vector<1x8x1xf32> to vector<8x1xf32>
    %458 = vector.broadcast %457 : vector<8x1xf32> to vector<8x256xf32>
    %459 = arith.addf %455, %458 : vector<8x256xf32>
    %cst_93 = arith.constant 0.000000e+00 : f32
    %460 = vector.broadcast %cst_93 : f32 to vector<8x256xf32>
    %461 = arith.cmpf oge, %459, %460 : vector<8x256xf32>
    %cst_94 = arith.constant 2.500000e-01 : f32
    %462 = vector.broadcast %cst_94 : f32 to vector<8x256xf32>
    %463 = arith.mulf %462, %459 : vector<8x256xf32>
    %464 = arith.select %461, %459, %463 : vector<8x256xi1>, vector<8x256xf32>
    %465 = tpu.concatenate %366, %413, %464 in 0 : vector<4x256xf32>, vector<4x256xf32>, vector<8x256xf32> -> vector<16x256xf32>
    %466 = vector.extract_strided_slice %465 {offsets = [0, 0], sizes = [4, 256], strides = [1, 1]} : vector<16x256xf32> to vector<4x256xf32>
    %467 = vector.extract_strided_slice %466 {offsets = [0, 0], sizes = [1, 256], strides = [1, 1]} : vector<4x256xf32> to vector<1x256xf32>
    %468 = vector.extract_strided_slice %466 {offsets = [1, 0], sizes = [1, 256], strides = [1, 1]} : vector<4x256xf32> to vector<1x256xf32>
    %469 = arith.maximumf %467, %468 : vector<1x256xf32>
    %470 = vector.extract_strided_slice %466 {offsets = [2, 0], sizes = [1, 256], strides = [1, 1]} : vector<4x256xf32> to vector<1x256xf32>
    %471 = vector.extract_strided_slice %466 {offsets = [3, 0], sizes = [1, 256], strides = [1, 1]} : vector<4x256xf32> to vector<1x256xf32>
    %472 = arith.maximumf %470, %471 : vector<1x256xf32>
    %473 = arith.maximumf %469, %472 : vector<1x256xf32>
    %474 = vector.extract_strided_slice %465 {offsets = [4, 0], sizes = [4, 256], strides = [1, 1]} : vector<16x256xf32> to vector<4x256xf32>
    %475 = vector.extract_strided_slice %474 {offsets = [0, 0], sizes = [1, 256], strides = [1, 1]} : vector<4x256xf32> to vector<1x256xf32>
    %476 = vector.extract_strided_slice %474 {offsets = [1, 0], sizes = [1, 256], strides = [1, 1]} : vector<4x256xf32> to vector<1x256xf32>
    %477 = arith.maximumf %475, %476 : vector<1x256xf32>
    %478 = vector.extract_strided_slice %474 {offsets = [2, 0], sizes = [1, 256], strides = [1, 1]} : vector<4x256xf32> to vector<1x256xf32>
    %479 = vector.extract_strided_slice %474 {offsets = [3, 0], sizes = [1, 256], strides = [1, 1]} : vector<4x256xf32> to vector<1x256xf32>
    %480 = arith.maximumf %478, %479 : vector<1x256xf32>
    %481 = arith.maximumf %477, %480 : vector<1x256xf32>
    %482 = vector.extract_strided_slice %465 {offsets = [8, 0], sizes = [4, 256], strides = [1, 1]} : vector<16x256xf32> to vector<4x256xf32>
    %483 = vector.extract_strided_slice %482 {offsets = [0, 0], sizes = [1, 256], strides = [1, 1]} : vector<4x256xf32> to vector<1x256xf32>
    %484 = vector.extract_strided_slice %482 {offsets = [1, 0], sizes = [1, 256], strides = [1, 1]} : vector<4x256xf32> to vector<1x256xf32>
    %485 = arith.maximumf %483, %484 : vector<1x256xf32>
    %486 = vector.extract_strided_slice %482 {offsets = [2, 0], sizes = [1, 256], strides = [1, 1]} : vector<4x256xf32> to vector<1x256xf32>
    %487 = vector.extract_strided_slice %482 {offsets = [3, 0], sizes = [1, 256], strides = [1, 1]} : vector<4x256xf32> to vector<1x256xf32>
    %488 = arith.maximumf %486, %487 : vector<1x256xf32>
    %489 = arith.maximumf %485, %488 : vector<1x256xf32>
    %490 = vector.extract_strided_slice %465 {offsets = [12, 0], sizes = [4, 256], strides = [1, 1]} : vector<16x256xf32> to vector<4x256xf32>
    %491 = vector.extract_strided_slice %490 {offsets = [0, 0], sizes = [1, 256], strides = [1, 1]} : vector<4x256xf32> to vector<1x256xf32>
    %492 = vector.extract_strided_slice %490 {offsets = [1, 0], sizes = [1, 256], strides = [1, 1]} : vector<4x256xf32> to vector<1x256xf32>
    %493 = arith.maximumf %491, %492 : vector<1x256xf32>
    %494 = vector.extract_strided_slice %490 {offsets = [2, 0], sizes = [1, 256], strides = [1, 1]} : vector<4x256xf32> to vector<1x256xf32>
    %495 = vector.extract_strided_slice %490 {offsets = [3, 0], sizes = [1, 256], strides = [1, 1]} : vector<4x256xf32> to vector<1x256xf32>
    %496 = arith.maximumf %494, %495 : vector<1x256xf32>
    %497 = arith.maximumf %493, %496 : vector<1x256xf32>
    %498 = tpu.concatenate %473, %481, %489, %497 in 0 : vector<1x256xf32>, vector<1x256xf32>, vector<1x256xf32>, vector<1x256xf32> -> vector<4x256xf32>
    %c2_95 = arith.constant 2 : index
    %c0_96 = arith.constant 0 : index
    %c0_97 = arith.constant 0 : index
    %499 = vector.load %arg8[%c2_95, %c0_96, %c0_97] : memref<3x4x36xf32, #tpu.memory_space<vmem>>, vector<1x4x36xf32>
    %500 = vector.shape_cast %499 : vector<1x4x36xf32> to vector<4x36xf32>
    %cst_98 = arith.constant 0.000000e+00 : f32
    %501 = vector.broadcast %cst_98 : f32 to vector<4x17xf32>
    %502 = tpu.concatenate %501, %498, %501 in 1 : vector<4x17xf32>, vector<4x256xf32>, vector<4x17xf32> -> vector<4x290xf32>
    %503 = vector.extract_strided_slice %502 {offsets = [0, 0], sizes = [4, 256], strides = [1, 1]} : vector<4x290xf32> to vector<4x256xf32>
    %504 = vector.extract_strided_slice %0 {offsets = [0, 0], sizes = [1, 256], strides = [1, 1]} : vector<9x256xf32> to vector<1x256xf32>
    %505 = vector.broadcast %504 : vector<1x256xf32> to vector<4x256xf32>
    %506 = arith.mulf %503, %505 : vector<4x256xf32>
    %507 = vector.extract_strided_slice %502 {offsets = [0, 1], sizes = [4, 256], strides = [1, 1]} : vector<4x290xf32> to vector<4x256xf32>
    %508 = vector.extract_strided_slice %0 {offsets = [1, 0], sizes = [1, 256], strides = [1, 1]} : vector<9x256xf32> to vector<1x256xf32>
    %509 = vector.broadcast %508 : vector<1x256xf32> to vector<4x256xf32>
    %510 = arith.mulf %507, %509 : vector<4x256xf32>
    %511 = vector.extract_strided_slice %502 {offsets = [0, 2], sizes = [4, 256], strides = [1, 1]} : vector<4x290xf32> to vector<4x256xf32>
    %512 = vector.extract_strided_slice %0 {offsets = [2, 0], sizes = [1, 256], strides = [1, 1]} : vector<9x256xf32> to vector<1x256xf32>
    %513 = vector.broadcast %512 : vector<1x256xf32> to vector<4x256xf32>
    %514 = arith.mulf %511, %513 : vector<4x256xf32>
    %515 = vector.extract_strided_slice %502 {offsets = [0, 16], sizes = [4, 256], strides = [1, 1]} : vector<4x290xf32> to vector<4x256xf32>
    %516 = vector.extract_strided_slice %0 {offsets = [3, 0], sizes = [1, 256], strides = [1, 1]} : vector<9x256xf32> to vector<1x256xf32>
    %517 = vector.broadcast %516 : vector<1x256xf32> to vector<4x256xf32>
    %518 = arith.mulf %515, %517 : vector<4x256xf32>
    %519 = vector.extract_strided_slice %502 {offsets = [0, 18], sizes = [4, 256], strides = [1, 1]} : vector<4x290xf32> to vector<4x256xf32>
    %520 = vector.extract_strided_slice %0 {offsets = [5, 0], sizes = [1, 256], strides = [1, 1]} : vector<9x256xf32> to vector<1x256xf32>
    %521 = vector.broadcast %520 : vector<1x256xf32> to vector<4x256xf32>
    %522 = arith.mulf %519, %521 : vector<4x256xf32>
    %523 = vector.extract_strided_slice %502 {offsets = [0, 32], sizes = [4, 256], strides = [1, 1]} : vector<4x290xf32> to vector<4x256xf32>
    %524 = vector.extract_strided_slice %0 {offsets = [6, 0], sizes = [1, 256], strides = [1, 1]} : vector<9x256xf32> to vector<1x256xf32>
    %525 = vector.broadcast %524 : vector<1x256xf32> to vector<4x256xf32>
    %526 = arith.mulf %523, %525 : vector<4x256xf32>
    %527 = vector.extract_strided_slice %502 {offsets = [0, 33], sizes = [4, 256], strides = [1, 1]} : vector<4x290xf32> to vector<4x256xf32>
    %528 = vector.extract_strided_slice %0 {offsets = [7, 0], sizes = [1, 256], strides = [1, 1]} : vector<9x256xf32> to vector<1x256xf32>
    %529 = vector.broadcast %528 : vector<1x256xf32> to vector<4x256xf32>
    %530 = arith.mulf %527, %529 : vector<4x256xf32>
    %531 = vector.extract_strided_slice %502 {offsets = [0, 34], sizes = [4, 256], strides = [1, 1]} : vector<4x290xf32> to vector<4x256xf32>
    %532 = vector.extract_strided_slice %0 {offsets = [8, 0], sizes = [1, 256], strides = [1, 1]} : vector<9x256xf32> to vector<1x256xf32>
    %533 = vector.broadcast %532 : vector<1x256xf32> to vector<4x256xf32>
    %534 = arith.mulf %531, %533 : vector<4x256xf32>
    %535 = tpu.concatenate %506, %510, %514, %518, %498, %522, %526, %530, %534 in 0 : vector<4x256xf32>, vector<4x256xf32>, vector<4x256xf32>, vector<4x256xf32>, vector<4x256xf32>, vector<4x256xf32>, vector<4x256xf32>, vector<4x256xf32>, vector<4x256xf32> -> vector<36x256xf32>
    %cst_99 = arith.constant dense<0.000000e+00> : vector<4x256xf32>
    %536 = tpu.matmul %500, %535, %cst_99 {dimension_numbers = #tpu.dot_dimension_numbers<[1], [0], [0], [1], [0, 0, 1, 1], [], []>} : vector<4x36xf32>, vector<36x256xf32>, vector<4x256xf32> -> vector<4x256xf32>
    %c2_100 = arith.constant 2 : index
    %c0_101 = arith.constant 0 : index
    %c0_102 = arith.constant 0 : index
    %537 = vector.load %arg9[%c2_100, %c0_101, %c0_102] : memref<3x4x1xf32, #tpu.memory_space<vmem>>, vector<1x4x1xf32>
    %538 = vector.shape_cast %537 : vector<1x4x1xf32> to vector<4x1xf32>
    %539 = vector.broadcast %538 : vector<4x1xf32> to vector<4x256xf32>
    %540 = arith.addf %536, %539 : vector<4x256xf32>
    %cst_103 = arith.constant 0.000000e+00 : f32
    %541 = vector.broadcast %cst_103 : f32 to vector<4x256xf32>
    %542 = arith.cmpf oge, %540, %541 : vector<4x256xf32>
    %cst_104 = arith.constant 2.500000e-01 : f32
    %543 = vector.broadcast %cst_104 : f32 to vector<4x256xf32>
    %544 = arith.mulf %543, %540 : vector<4x256xf32>
    %545 = arith.select %542, %540, %544 : vector<4x256xi1>, vector<4x256xf32>
    %cst_105 = arith.constant 2.000000e-01 : f32
    %546 = vector.broadcast %cst_105 : f32 to vector<4x256xf32>
    %547 = arith.mulf %545, %546 : vector<4x256xf32>
    %548 = arith.addf %547, %366 : vector<4x256xf32>
    %cst_106 = arith.constant 2.000000e-01 : f32
    %549 = vector.broadcast %cst_106 : f32 to vector<4x256xf32>
    %550 = arith.mulf %548, %549 : vector<4x256xf32>
    %551 = arith.addf %550, %2 : vector<4x256xf32>
    %c0_107 = arith.constant 0 : index
    %c0_108 = arith.constant 0 : index
    %c0_109 = arith.constant 0 : index
    %552 = vector.load %arg10[%c0_107, %c0_108, %c0_109] : memref<1x4x256xf32, #tpu.memory_space<vmem>>, vector<1x4x256xf32>
    %553 = vector.shape_cast %552 : vector<1x4x256xf32> to vector<4x256xf32>
    %554 = vector.shape_cast %551 : vector<4x256xf32> to vector<1x4x256xf32>
    tpu.vector_store %arg10[%c0_107, %c0_108, %c0_109], %554 {strides = array<i32>} : memref<1x4x256xf32, #tpu.memory_space<vmem>>, vector<1x4x256xf32>,
    return
  }
  func.func @transform_0(%arg0: i32) -> (i32, i32, i32) {
    %c0_i32 = arith.constant 0 : i32
    %c0_i32_0 = arith.constant 0 : i32
    %c0_i32_1 = arith.constant 0 : i32
    return %arg0, %c0_i32, %c0_i32_0 : i32, i32, i32
  }
  func.func @transform_1(%arg0: i32) -> (i32, i32) {
    %c0_i32 = arith.constant 0 : i32
    %c0_i32_0 = arith.constant 0 : i32
    %c0_i32_1 = arith.constant 0 : i32
    return %c0_i32, %c0_i32_0 : i32, i32
  }
  func.func @transform_2(%arg0: i32) -> (i32, i32, i32) {
    %c0_i32 = arith.constant 0 : i32
    %c0_i32_0 = arith.constant 0 : i32
    %c0_i32_1 = arith.constant 0 : i32
    %c0_i32_2 = arith.constant 0 : i32
    return %c0_i32, %c0_i32_0, %c0_i32_1 : i32, i32, i32
  }
  func.func @transform_3(%arg0: i32) -> (i32, i32, i32) {
    %c0_i32 = arith.constant 0 : i32
    %c0_i32_0 = arith.constant 0 : i32
    %c0_i32_1 = arith.constant 0 : i32
    %c0_i32_2 = arith.constant 0 : i32
    return %c0_i32, %c0_i32_0, %c0_i32_1 : i32, i32, i32
  }
  func.func @transform_4(%arg0: i32) -> (i32, i32, i32) {
    %c0_i32 = arith.constant 0 : i32
    %c0_i32_0 = arith.constant 0 : i32
    %c0_i32_1 = arith.constant 0 : i32
    %c0_i32_2 = arith.constant 0 : i32
    return %c0_i32, %c0_i32_0, %c0_i32_1 : i32, i32, i32
  }
  func.func @transform_5(%arg0: i32) -> (i32, i32, i32) {
    %c0_i32 = arith.constant 0 : i32
    %c0_i32_0 = arith.constant 0 : i32
    %c0_i32_1 = arith.constant 0 : i32
    %c0_i32_2 = arith.constant 0 : i32
    return %c0_i32, %c0_i32_0, %c0_i32_1 : i32, i32, i32
  }
  func.func @transform_6(%arg0: i32) -> (i32, i32, i32) {
    %c0_i32 = arith.constant 0 : i32
    %c0_i32_0 = arith.constant 0 : i32
    %c0_i32_1 = arith.constant 0 : i32
    %c0_i32_2 = arith.constant 0 : i32
    return %c0_i32, %c0_i32_0, %c0_i32_1 : i32, i32, i32
  }
  func.func @transform_7(%arg0: i32) -> (i32, i32, i32) {
    %c0_i32 = arith.constant 0 : i32
    %c0_i32_0 = arith.constant 0 : i32
    %c0_i32_1 = arith.constant 0 : i32
    %c0_i32_2 = arith.constant 0 : i32
    return %c0_i32, %c0_i32_0, %c0_i32_1 : i32, i32, i32
  }
  func.func @transform_8(%arg0: i32) -> (i32, i32, i32) {
    %c0_i32 = arith.constant 0 : i32
    %c0_i32_0 = arith.constant 0 : i32
    %c0_i32_1 = arith.constant 0 : i32
    %c0_i32_2 = arith.constant 0 : i32
    return %c0_i32, %c0_i32_0, %c0_i32_1 : i32, i32, i32
  }
  func.func @transform_9(%arg0: i32) -> (i32, i32, i32) {
    %c0_i32 = arith.constant 0 : i32
    %c0_i32_0 = arith.constant 0 : i32
    %c0_i32_1 = arith.constant 0 : i32
    return %arg0, %c0_i32, %c0_i32_0 : i32, i32, i32
  }
}

</mosaic_0001>

<bundles_post_ra>
// kernel: dudb_forward.1
= control target key start
LH: loop header
LB: loop body
LE: loop exit
PB: predicated region body
PF: predicated region fallthrough
CT: control target
= control target key end

     0   :  { %s3651_s30 = smov 0   ;;  %s4825_s0 = inlined_call_operand.vmem [shape: f32[2,4,256], index: 0, kind: input, shape index: {}]   ;;  %s4826_s1 = inlined_call_operand.vmem [shape: f32[9,256], index: 1, kind: input, shape index: {}]   ;;  %s4827_s2 = inlined_call_operand.vmem [shape: f32[3,4,36], index: 2, kind: input, shape index: {}]   ;;  %s4828_s3 = inlined_call_operand.vmem [shape: f32[3,4,1], index: 3, kind: input, shape index: {}]   ;;  %s4829_s4 = inlined_call_operand.vmem [shape: f32[3,8,36], index: 4, kind: input, shape index: {}]   ;;  %s4830_s5 = inlined_call_operand.vmem [shape: f32[3,8,36], index: 5, kind: input, shape index: {}]   ;;  %s4831_s6 = inlined_call_operand.vmem [shape: f32[3,8,1], index: 6, kind: input, shape index: {}]   ;;  %s4832_s7 = inlined_call_operand.vmem [shape: f32[3,4,36], index: 7, kind: input, shape index: {}]   ;;  %s4833_s8 = inlined_call_operand.vmem [shape: f32[3,4,1], index: 8, kind: input, shape index: {}]   ;;  %s4834_s9 = inlined_call_operand.vmem [shape: f32[2,4,256], index: 9, kind: output, shape index: {}]  }
   0x1 LB: > { %s3109_s10 = sadd.s32 4294967295, %s3582_s30   ;;  %p3113_p0 = scmp.ge.s32.totalorder %s3582_s30, 1  ;;  %s3582_s30 = sphi %s3651_s30, %s19_s30  }
   0x2   : > { %p287_p1 = scmp.lt.s32.totalorder %s3582_s30, 3 }
   0x4   : > { %p288_p2 = pnand %p3113_p0, %p287_p1 }
   0x5   : > { %p323_p3 = scmp.lt.s32.totalorder (!%p288_p2), %s3109_s10, 1  ;;  %v351_v0 = vlaneseq (!%p288_p2)  ;;  %v333_v2 = vld [vmem:[%s4826_s1] sm:$0xff] (!%p288_p2)  ;;  %v334_v6 = vld [vmem:[%s4826_s1 + $0x8] sm:$0xff] (!%p288_p2)  ;;  %s3584_s19 = smov (!%p288_p2), 17   ;;  %v3118_v27 = vld [vmem:[%s4826_s1 + $0x10] ss:$0 sm:$0xff] (!%p288_p2) }
   0x6   : > { %291 = sbr.rel (%p288_p2) target bundleno = 4460 (0x116c), region = 56  ;;  %s3585_s20 = smov (!%p288_p2), 1   ;;  %v3119_v28 = vld [vmem:[%s4826_s1 + $0x18] ss:$0 sm:$0xff] (!%p288_p2)  ;;  %vm344_vm0 = vcmask (!%p288_p2), 138240   ;;  %vm397_vm1 = vcmask (!%p288_p2), 15360  }
   0x7   : > { %v352_v1 = vshrl.u32 (!%p288_p2), %v351_v0, 7  ;;  %s3586_s21 = smov (!%p288_p2), 16   ;;  %s3587_s22 = smov (!%p288_p2), 2   ;;  %vm375_vm2 = vcmask (!%p288_p2), 7168   ;;  %vm419_vm3 = vcmask (!%p288_p2), 130048   ;;  %vm463_vm4 = vcmask (!%p288_p2), 261120  }
   0x8   : > { %s3588_s23 = smov (!%p288_p2), 18   ;;  %s3589_s24 = smov (!%p288_p2), 33   ;;  %vm441_vm5 = vcmask (!%p288_p2), 146432   ;;  %vm485_vm6 = vcmask (!%p288_p2), 269312   ;;  %vm507_vm7 = vcmask (!%p288_p2), 277504   ;;  %vm527_vm8 = vcmask (!%p288_p2), 1039360  }
   0x9   : > { %v353_v3 = vsub.s32 (!%p288_p2), 0, %v352_v1  ;;  %v363_v4 = vsub.s32 (!%p288_p2), 1, %v352_v1  ;;  %v407_v5 = vsub.s32 (!%p288_p2), 3, %v352_v1  ;;  %v385_v14 = vsub.s32 (!%p288_p2), 2, %v352_v1  ;;  %s3590_s25 = smov (!%p288_p2), 32   ;;  %s3591_s11 = smov (!%p288_p2), 34  }
   0xa   : > { %v429_v17 = vsub.s32 (!%p288_p2), 5, %v352_v1  ;;  %v473_v20 = vsub.s32 (!%p288_p2), 7, %v352_v1  ;;  %v451_v23 = vsub.s32 (!%p288_p2), 6, %v352_v1  ;;  %s3592_s12 = smov (!%p288_p2), 126   ;;  %s3593_s14 = smov (!%p288_p2), 127   ;;  %vm541_vm9 = vcmask (!%p288_p2), 1031168  }
   0xb   : > { %v364_v8 = vrot.slane (!%p288_p2), %v333_v2, %v363_v4  ;;  %v3678_v9 = vrot.slane (!%p288_p2), %v333_v2, %v353_v3  ;;  %v3680_v10 = vrot.slane (!%p288_p2), %v334_v6, %v353_v3  ;;  %v408_v11 = vrot.slane (!%p288_p2), %v333_v2, %v407_v5  ;;  %s3594_s15 = smov (!%p288_p2), 112   ;;  %s3595_s17 = smov (!%p288_p2), 96  }
   0xc   : > { %v368_v12 = vrot.slane (!%p288_p2), %v334_v6, %v363_v4  ;;  %v412_v15 = vrot.slane (!%p288_p2), %v334_v6, %v407_v5  ;;  %v386_v16 = vrot.slane (!%p288_p2), %v333_v2, %v385_v14  ;;  %v390_v18 = vrot.slane (!%p288_p2), %v334_v6, %v385_v14  ;;  %s3596_s18 = smov (!%p288_p2), 110  }
   0xd   : > { %s4836_s10 = smov (!%p323_p3, %s3109_s10), 1  ;;  %371 = vrot.lane.b32.xlu1 %v364_v8, %s3585_s20  ;;  %v430_v19 = vrot.slane %v333_v2, %v429_v17  ;;  %v434_v21 = vrot.slane %v334_v6, %v429_v17  ;;  %v474_v22 = vrot.slane %v333_v2, %v473_v20  ;;  %v478_v24 = vrot.slane %v334_v6, %v473_v20 }
   0xe   : > { %s3172_s13 = sshll.u32 %s4836_s10, 3  ;;  %v452_v25 = vrot.slane %v333_v2, %v451_v23  ;;  %v456_v26 = vrot.slane %v334_v6, %v451_v23  ;;  %vm558_vm10 = vcmask 916480   ;;  %vm624_vm11 = vcmask 1043456  }
   0xf   : > { %s3670_s16 = scalar_lea.vmem %s4825_s0, %s3172_s13  ;;  %vm576_vm12 = vcmask 900096   ;;  %vm590_vm13 = vcmask 785408   ;;  %vm607_vm14 = vcmask 777216   ;;  %vm621_vm15 = vcmask 769024  }
  0x10   : > { %v3676_v7 = vld [vmem:[%s3670_s16] sm:$0xff] }
  0x11   : > { %340 = vrot.lane.b32.xlu0 %v3676_v7, %s3584_s19  ;;  %v3686_v13 = vcombine.high %v3676_v7, %v3676_v7  ;;  %373 = vrot.lane.b32.xlu1 %v368_v12, %s3585_s20  ;;  %s3597_s20 = smov 95  }
  0x15   : > { %415 = vrot.lane.b32.xlu0 %v408_v11, %s3586_s21  ;;  %417 = vrot.lane.b32.xlu1 %v412_v15, %s3586_s21  ;;  %s3599_s21 = smov 94  }
  0x19   : > { %342 = vrot.lane.b32.xlu0 %v3686_v13, %s3584_s19  ;;  %395 = vrot.lane.b32.xlu1 %v390_v18, %s3587_s22 }
  0x1d   : > { %393 = vrot.lane.b32.xlu0 %v386_v16, %s3587_s22  ;;  %439 = vrot.lane.b32.xlu1 %v434_v21, %s3588_s23 }
  0x21   : > { %437 = vrot.lane.b32.xlu0 %v430_v19, %s3588_s23  ;;  %483 = vrot.lane.b32.xlu1 %v478_v24, %s3589_s24 }
  0x25   : > { %481 = vrot.lane.b32.xlu0 %v474_v22, %s3589_s24  ;;  %461 = vrot.lane.b32.xlu1 %v456_v26, %s3590_s25 }
  0x29   : > { %459 = vrot.lane.b32.xlu0 %v452_v25, %s3590_s25  ;;  %505 = vrot.lane.b32.xlu1 %v3119_v28, %s3591_s11 }
  0x2d   : > { %503 = vrot.lane.b32.xlu0 %v3118_v27, %s3591_s11 }
  0x7f   : > { %v3696_v30 = vpop.permute.xlu1 %371 }
  0x83   : > { %v341_v29 = vpop.permute.xlu0 %340  ;;  %v3700_v32 = vpop.permute.xlu1 %373 }
  0x84   : > { %v3705_v35 = vsel %vm344_vm0, 0.0, %v341_v29  ;;  %v3736_v48 = vsel %vm375_vm2, %v3696_v30, %v3700_v32 }
  0x85   : > { %v380_v45 = vmul.f32 %v3696_v30, %v3705_v35 }
  0x87   : > { %v3698_v31 = vpop.permute.xlu0 %415  ;;  %v3702_v34 = vpop.permute.xlu1 %417  ;;  %v518_v50 = vrot.slane %v380_v45, 4 }
  0x88   : > { %v424_v52 = vmul.f32 %v3698_v31, %v3705_v35  ;;  %v3751_v55 = vsel %vm419_vm3, %v3698_v31, %v3702_v34 }
  0x8a   : > { %v549_v60 = vrot.slane %v424_v52, 4 }
  0x8b   : > { %v343_v33 = vpop.permute.xlu0 %342  ;;  %v3712_v38 = vpop.permute.xlu1 %395 }
  0x8c   : > { %v3710_v37 = vsel %vm344_vm0, %v343_v33, 0.0  ;;  %v3717_v40 = vsel %vm344_vm0, %v341_v29, %v343_v33 }
  0x8d   : > { %v404_v42 = vmul.f32 %v3712_v38, %v3710_v37  ;;  %v381_v53 = vmul.f32 %v3736_v48, %v3717_v40  ;;  %v382_v54 = vmul.f32 %v3700_v32, %v3710_v37  ;;  %v425_v57 = vmul.f32 %v3751_v55, %v3717_v40 }
  0x8e   : > { %v426_v58 = vmul.f32 %v3702_v34, %v3710_v37 }
  0x8f   : > { %v3707_v36 = vpop.permute.xlu0 %393  ;;  %v3732_v46 = vpop.permute.xlu1 %439  ;;  %v519_v62 = vrot.slane %v381_v53, 4  ;;  %v520_v63 = vrot.slane %v382_v54, 4  ;;  %v550_v4 = vrot.slane %v425_v57, 4 }
  0x90   : > { %v402_v39 = vmul.f32 %v3707_v36, %v3705_v35  ;;  %v3721_v41 = vsel %vm397_vm1, %v3707_v36, %v3712_v38  ;;  %v551_v5 = vrot.slane %v426_v58, 4  ;;  %v448_v8 = vmul.f32 %v3732_v46, %v3710_v37 }
  0x91   : > { %v403_v43 = vmul.f32 %v3721_v41, %v3717_v40  ;;  %v3311_v11 = vpack.i.bf16 %v520_v63, %v519_v62  ;;  %vm640_vm1 = vcmask 293888  }
  0x92   : > { %535 = vrot.lane.b32.xlu0 %v402_v39, %s3592_s12  ;;  %v3316_v16 = vpack.i.bf16 %v551_v5, %v550_v4  ;;  %v569_v18 = vrot.slane %v448_v8, 4 }
  0x93   : > { %v3728_v44 = vpop.permute.xlu0 %437  ;;  %v3301_v47 = vpack.i.bf16 %v404_v42, %v403_v43  ;;  %v3741_v51 = vpop.permute.xlu1 %483  ;;  %v3598_v42 = vmov 0.0   ;;  %v3600_v43 = vmov 0  }
  0x94   : > { %v3772_v2 = vsel %vm441_vm5, %v3728_v44, %v3732_v46  ;;  %v446_v6 = vmul.f32 %v3728_v44, %v3705_v35  ;;  %v492_v22 = vmul.f32 %v3741_v51, %v3710_v37  ;;  %712 = vmatprep.mubr.f32.mxu0 %v3598_v42  ;;  %942 = vmatprep.mubr.f32.mxu1 %v3598_v42 }
  0x95   : > { %3302 = vrot.lane.b32.xlu1 %v3301_v47, %s3592_s12  ;;  %v447_v14 = vmul.f32 %v3772_v2, %v3717_v40  ;;  %3572 = vset.pattern.permute.xlu0 %v3600_v43 }
  0x96   : > { %v567_v17 = vrot.slane %v446_v6, 4  ;;  %v600_v26 = vrot.slane %v492_v22, 4  ;;  %3331 = vset.pattern.permute.xlu1 %v3600_v43 }
  0x97   : > { %v3739_v49 = vpop.permute.xlu0 %481  ;;  %v3760_v59 = vpop.permute.xlu1 %461  ;;  %v568_v19 = vrot.slane %v447_v14, 4 }
  0x98   : > { %v470_v1 = vmul.f32 %v3760_v59, %v3710_v37  ;;  %v3786_v15 = vsel %vm485_vm6, %v3739_v49, %v3741_v51  ;;  %v490_v20 = vmul.f32 %v3739_v49, %v3705_v35  ;;  %vm1091_vm6 = vcmask 1040384  }
  0x99   : > { %521 = vrot.lane.b32.xlu1 %v518_v50, %s3593_s14  ;;  %v491_v21 = vmul.f32 %v3786_v15, %v3717_v40  ;;  %v3321_v23 = vpack.i.bf16 %v569_v18, %v568_v19 }
  0x9a   : > { %v598_v24 = vrot.slane %v490_v20, 4 }
  0x9b   : > { %v3754_v56 = vpop.permute.xlu0 %459  ;;  %v599_v25 = vrot.slane %v491_v21, 4  ;;  %v3798_v27 = vpop.permute.xlu1 %505 }
  0x9c   : > { %v468_v61 = vmul.f32 %v3754_v56, %v3705_v35  ;;  %v3766_v0 = vsel %vm463_vm4, %v3754_v56, %v3760_v59  ;;  %v514_v33 = vmul.f32 %v3798_v27, %v3710_v37  ;;  %v634_v37 = vld [vmem:[%s4828_s3] sm:$0xf] }
  0x9d   : > { %552 = vrot.lane.b32.xlu1 %v549_v60, %s3594_s15  ;;  %v469_v3 = vmul.f32 %v3766_v0, %v3717_v40  ;;  %v3326_v29 = vpack.i.bf16 %v600_v26, %v599_v25 }
  0x9e   : > { %584 = vrot.lane.b32.xlu0 %v468_v61, %s3595_s17 }
  0x9f   : > { %v3306_v12 = vpack.i.bf16 %v470_v1, %v469_v3  ;;  %v3800_v28 = vpop.permute.xlu0 %503 }
  0xa0   : > { %v3808_v39 = vsel %vm507_vm7, %v3800_v28, %v3798_v27  ;;  %v512_v47 = vmul.f32 %v3800_v28, %v3705_v35  ;;  %vm1094_vm7 = vcmask 1041408  }
  0xa1   : > { %3307 = vrot.lane.b32.xlu1 %v3306_v12, %s3595_s17  ;;  %v513_v45 = vmul.f32 %v3808_v39, %v3717_v40  ;;  %v359_v12 = vmul.f32 %v3678_v9, %v3705_v35 }
  0xa2   : > { %3312 = vrot.lane.b32.xlu0 %v3311_v11, %s3593_s14  ;;  %v360_v11 = vmul.f32 %v3680_v10, %v3717_v40 }
  0xa5   : > { %570 = vrot.lane.b32.xlu1 %v567_v17, %s3596_s18 }
  0xa6   : > { %3317 = vrot.lane.b32.xlu0 %v3316_v16, %s3594_s15 }
  0xa9   : > { %601 = vrot.lane.b32.xlu1 %v598_v24, %s3597_s20 }
  0xaa   : > { %3322 = vrot.lane.b32.xlu0 %v3321_v23, %s3596_s18 }
  0xad   : > { %619 = vrot.lane.b32.xlu1 %v514_v33, %s3599_s21 }
  0xae   : > { %3327 = vrot.lane.b32.xlu0 %v3326_v29, %s3597_s20 }
  0xb1   : > { %637 = vperm.xlu1 %3331, %v634_v37  }
  0xb2   : > { %617 = vrot.lane.b32.xlu0 %v513_v45, %s3599_s21 }
  0xb6   : > { %615 = vrot.lane.b32.xlu0 %v512_v47, %s3599_s21 }
 0x104   : > { %v536_v52 = vpop.permute.xlu0 %535 }
 0x107   : > { %v3303_v50 = vpop.permute.xlu1 %3302 }
 0x108   : > { %v3305_v63 = vunpack.i.h.bf16 %v3303_v50  ;;  %v3304_v1 = vunpack.i.l.bf16 %v3303_v50 }
 0x10a   : > { %v543_v16 = vsel %vm541_vm9, %v3304_v1, %v3305_v63  ;;  %v542_v18 = vsel %vm541_vm9, %v536_v52, %v3304_v1 }
 0x10b   : > { %v522_v53 = vpop.permute.xlu1 %521 }
 0x10f   : > { %v553_v54 = vpop.permute.xlu1 %552 }
 0x110   : > { %v585_v57 = vpop.permute.xlu0 %584 }
 0x113   : > { %v3308_v60 = vpop.permute.xlu1 %3307 }
 0x114   : > { %v3313_v58 = vpop.permute.xlu0 %3312  ;;  %v3310_v29 = vunpack.i.h.bf16 %v3308_v60  ;;  %v3309_v33 = vunpack.i.l.bf16 %v3308_v60 }
 0x115   : > { %v3315_v61 = vunpack.i.h.bf16 %v3313_v58  ;;  %v3314_v62 = vunpack.i.l.bf16 %v3313_v58 }
 0x116   : > { %v591_v58 = vsel %vm590_vm13, %v585_v57, %v3309_v33 }
 0x117   : > { %v529_v6 = vsel %vm527_vm8, %v3314_v62, %v3315_v61  ;;  %v528_v8 = vsel %vm527_vm8, %v522_v53, %v3314_v62  ;;  %v571_v14 = vpop.permute.xlu1 %570  ;;  %v592_v53 = vsel %vm590_vm13, %v3309_v33, %v3310_v29 }
 0x118   : > { %v3318_v3 = vpop.permute.xlu0 %3317  ;;  %v626_v21 = vsel %vm624_vm11, %v360_v11, %v529_v6  ;;  %v625_v23 = vsel %vm624_vm11, %v359_v12, %v528_v8  ;;  %v633_v11 = vld [vmem:[%s4827_s2] sm:$0xf] }
 0x119   : > { %v3320_v4 = vunpack.i.h.bf16 %v3318_v3  ;;  %v3319_v5 = vunpack.i.l.bf16 %v3318_v3 }
 0x11b   : > { %v560_v17 = vsel %vm558_vm10, %v3319_v5, %v3320_v4  ;;  %v559_v19 = vsel %vm558_vm10, %v553_v54, %v3319_v5  ;;  %v602_v37 = vpop.permute.xlu1 %601 }
 0x11c   : > { %v3323_v20 = vpop.permute.xlu0 %3322  ;;  %v628_v22 = vsel %vm624_vm11, %v543_v16, %v560_v17  ;;  %v627_v40 = vsel %vm624_vm11, %v542_v18, %v559_v19 }
 0x11d   : > { %v3325_v24 = vunpack.i.h.bf16 %v3323_v20  ;;  %v3324_v35 = vunpack.i.l.bf16 %v3323_v20  ;;  %v3837_v25 = vpack.c.bf16 %v628_v22, %v626_v21  ;;  %v3839_v26 = vpack.c.bf16 %v627_v40, %v625_v23 }
 0x11f   : > { %3175 = vmatprep.subr.bf16.mxu0 %v3837_v25  ;;  %v578_v50 = vsel %vm576_vm12, %v3324_v35, %v3325_v24  ;;  %v577_v52 = vsel %vm576_vm12, %v571_v14, %v3324_v35  ;;  %v620_v6 = vpop.permute.xlu1 %619 }
 0x120   : > { %v3328_v43 = vpop.permute.xlu0 %3327  ;;  %3177 = vmatpush1.bf16.msra.mxu0 %v3839_v26  ;;  %v630_v62 = vsel %vm624_vm11, %v3686_v13, %v578_v50  ;;  %v629_v1 = vsel %vm624_vm11, %v3676_v7, %v577_v52 }
 0x121   : > { %v3330_v45 = vunpack.i.h.bf16 %v3328_v43  ;;  %v3329_v47 = vunpack.i.l.bf16 %v3328_v43 }
 0x123   : > { %v609_v54 = vsel %vm607_vm14, %v3329_v47, %v3330_v45  ;;  %v608_v60 = vsel %vm607_vm14, %v602_v37, %v3329_v47 }
 0x124   : > { %v618_v61 = vpop.permute.xlu0 %617  ;;  %v632_v63 = vsel %vm624_vm11, %v592_v53, %v609_v54  ;;  %v631_v3 = vsel %vm624_vm11, %v591_v58, %v608_v60 }
 0x125   : > { %v3855_v4 = vpack.c.bf16 %v632_v63, %v630_v62  ;;  %v3857_v5 = vpack.c.bf16 %v631_v3, %v629_v1  ;;  %v3862_v8 = vsel %vm621_vm15, %v618_v61, %v620_v6 }
 0x127   : > { %3179 = vmatprep.subr.bf16.mxu0 %v3855_v4 }
 0x128   : > { %v616_v57 = vpop.permute.xlu0 %615  ;;  %3181 = vmatpush1.bf16.msra.mxu0 %v3857_v5 }
 0x129   : > { %3120 = vmatprep.subr.msk.mxu0 %vm624_vm11, %v3862_v8  ;;  %v3870_v12 = vsel %vm621_vm15, %v616_v57, %v618_v61 }
 0x12c   : > { %3121 = vmatpush1.msk.msra.mxu0 %vm624_vm11, %v3870_v12 }
 0x12d   : > { %3122 = vmatmul.mubr.msk.f32.vlgmr.msra.gmra.mrb[0].mxu0 %vm640_vm1, %v633_v11 }
 0x12e   : > { %1322 = vmatprep.mubr.f32.mxu0 %v3598_v42 }
 0x130   : > { %v638_v14 = vpop.permute.xlu1 %637 }
 0x200   : > { %v714_v16 = vpop.f32.mrb[0].mxu0 }
 0x201   : > { %v715_v17 = vadd.f32 %v714_v16, %v638_v14  ;;  %v716_v18 = vpop.f32.mrb[1].mxu0 }
 0x202   : > { %v717_v19 = vadd.f32 %v716_v18, %v638_v14 }
 0x203   : > { %v721_v20 = vmul.f32 0.25, %v715_v17  ;;  %vm719_vm2 = vcmp.ge.f32.partialorder %v715_v17, 0.0 }
 0x204   : > { %v722_v21 = vmul.f32 0.25, %v717_v19  ;;  %vm720_vm3 = vcmp.ge.f32.partialorder %v717_v19, 0.0 }
 0x205   : > { %v3876_v22 = vsel %vm719_vm2, %v715_v17, %v721_v20  ;;  %vm1097_vm2 = vcmask 1042432  }
 0x206   : > { %727 = vrot.lane.b32.xlu0 %v3876_v22, %s3584_s19  ;;  %v3880_v23 = vsel %vm720_vm3, %v717_v19, %v722_v21 }
 0x207   : > { %729 = vrot.lane.b32.xlu1 %v3880_v23, %s3584_s19 }
 0x278   : > { %v728_v40 = vpop.permute.xlu0 %727 }
 0x279   : > { %v3885_v24 = vsel %vm344_vm0, 0.0, %v728_v40  ;;  %v730_v35 = vpop.permute.xlu1 %729 }
 0x27a   : > { %v3888_v29 = vsel %vm344_vm0, %v728_v40, %v730_v35  ;;  %v736_v33 = vsel %vm344_vm0, %v730_v35, 0.0  ;;  %v742_v43 = vmul.f32 %v3885_v24, %v3707_v36  ;;  %v751_v60 = vmul.f32 %v3885_v24, %v3754_v56 }
 0x27b   : > { %v743_v37 = vmul.f32 %v3888_v29, %v3721_v41  ;;  %v744_v45 = vmul.f32 %v736_v33, %v3712_v38  ;;  %v740_v47 = vmul.f32 %v3888_v29, %v3736_v48  ;;  %v741_v50 = vmul.f32 %v736_v33, %v3700_v32 }
 0x27c   : > { %779 = vrot.lane.b32.xlu0 %v742_v43, %s3592_s12  ;;  %v752_v53 = vmul.f32 %v3888_v29, %v3766_v0  ;;  %v753_v54 = vmul.f32 %v736_v33, %v3760_v59  ;;  %v746_v58 = vmul.f32 %v3888_v29, %v3751_v55  ;;  %v747_v63 = vmul.f32 %v736_v33, %v3702_v34 }
 0x27d   : > { %v3332_v52 = vpack.i.bf16 %v744_v45, %v743_v37  ;;  %v764_v61 = vrot.slane %v740_v47, 4  ;;  %v765_v62 = vrot.slane %v741_v50, 4  ;;  %v739_v3 = vmul.f32 %v3885_v24, %v3696_v30 }
 0x27e   : > { %v3337_v1 = vpack.i.bf16 %v753_v54, %v752_v53  ;;  %v793_v6 = vrot.slane %v746_v58, 4  ;;  %v794_v11 = vrot.slane %v747_v63, 4  ;;  %v749_v14 = vmul.f32 %v3888_v29, %v3772_v2  ;;  %v1023_v63 = vld [vmem:[%s4831_s6] sm:$0xff] }
 0x27f   : > { %3333 = vrot.lane.b32.xlu1 %v3332_v52, %s3592_s12  ;;  %v3342_v57 = vpack.i.bf16 %v765_v62, %v764_v61  ;;  %v750_v16 = vmul.f32 %v736_v33, %v3732_v46  ;;  %v763_v17 = vrot.slane %v739_v3, 4  ;;  %v745_v18 = vmul.f32 %v3885_v24, %v3698_v31 }
 0x280   : > { %824 = vrot.lane.b32.xlu0 %v751_v60, %s3595_s17  ;;  %v755_v19 = vmul.f32 %v3888_v29, %v3786_v15  ;;  %v3347_v20 = vpack.i.bf16 %v794_v11, %v793_v6  ;;  %v809_v21 = vrot.slane %v749_v14, 4  ;;  %v756_v35 = vmul.f32 %v736_v33, %v3741_v51 }
 0x281   : > { %v810_v40 = vrot.slane %v750_v16, 4  ;;  %v792_v43 = vrot.slane %v745_v18, 4  ;;  %v748_v37 = vmul.f32 %v3885_v24, %v3728_v44  ;;  %v754_v53 = vmul.f32 %v3885_v24, %v3739_v49 }
 0x282   : > { %v838_v47 = vrot.slane %v755_v19, 4  ;;  %v839_v50 = vrot.slane %v756_v35, 4  ;;  %v758_v60 = vmul.f32 %v3888_v29, %v3808_v39  ;;  %v759_v61 = vmul.f32 %v736_v33, %v3798_v27 }
 0x283   : > { %3338 = vrot.lane.b32.xlu1 %v3337_v1, %s3595_s17  ;;  %v3352_v45 = vpack.i.bf16 %v810_v40, %v809_v21  ;;  %v808_v52 = vrot.slane %v748_v37, 4  ;;  %v837_v58 = vrot.slane %v754_v53, 4  ;;  %v757_v62 = vmul.f32 %v3885_v24, %v3800_v28 }
 0x284   : > { %3343 = vrot.lane.b32.xlu0 %v3342_v57, %s3593_s14  ;;  %v3357_v54 = vpack.i.bf16 %v839_v50, %v838_v47  ;;  %v737_v37 = vmul.f32 %v3885_v24, %v3678_v9 }
 0x287   : > { %766 = vrot.lane.b32.xlu1 %v763_v17, %s3593_s14 }
 0x288   : > { %3348 = vrot.lane.b32.xlu0 %v3347_v20, %s3594_s15 }
 0x28b   : > { %795 = vrot.lane.b32.xlu1 %v792_v43, %s3594_s15  ;;  %v738_v43 = vmul.f32 %v3888_v29, %v3680_v10 }
 0x28c   : > { %3353 = vrot.lane.b32.xlu0 %v3352_v45, %s3596_s18 }
 0x28f   : > { %811 = vrot.lane.b32.xlu1 %v808_v52, %s3596_s18 }
 0x290   : > { %3358 = vrot.lane.b32.xlu0 %v3357_v54, %s3597_s20 }
 0x293   : > { %840 = vrot.lane.b32.xlu1 %v837_v58, %s3597_s20 }
 0x294   : > { %855 = vrot.lane.b32.xlu0 %v758_v60, %s3599_s21 }
 0x297   : > { %857 = vrot.lane.b32.xlu1 %v759_v61, %s3599_s21 }
 0x298   : > { %853 = vrot.lane.b32.xlu0 %v757_v62, %s3599_s21 }
 0x29b   : > { %1026 = vperm.xlu1 %3331, %v1023_v63  }
 0x2ee   : > { %v780_v1 = vpop.permute.xlu0 %779 }
 0x2f1   : > { %v3334_v3 = vpop.permute.xlu1 %3333 }
 0x2f2   : > { %v825_v6 = vpop.permute.xlu0 %824  ;;  %v3336_v33 = vunpack.i.h.bf16 %v3334_v3  ;;  %v3335_v17 = vunpack.i.l.bf16 %v3334_v3 }
 0x2f4   : > { %v786_v47 = vsel %vm541_vm9, %v3335_v17, %v3336_v33  ;;  %v785_v52 = vsel %vm541_vm9, %v780_v1, %v3335_v17 }
 0x2f5   : > { %v3339_v57 = vpop.permute.xlu1 %3338 }
 0x2f6   : > { %v3344_v11 = vpop.permute.xlu0 %3343 }
 0x2f7   : > { %v3346_v14 = vunpack.i.h.bf16 %v3344_v11  ;;  %v3345_v16 = vunpack.i.l.bf16 %v3344_v11  ;;  %v3341_v11 = vunpack.i.h.bf16 %v3339_v57 }
 0x2f9   : > { %v767_v18 = vpop.permute.xlu1 %766  ;;  %v773_v35 = vsel %vm527_vm8, %v3345_v16, %v3346_v14  ;;  %v3340_v14 = vunpack.i.l.bf16 %v3339_v57 }
 0x2fa   : > { %v3349_v19 = vpop.permute.xlu0 %3348  ;;  %v772_v20 = vsel %vm527_vm8, %v767_v18, %v3345_v16  ;;  %v862_v58 = vsel %vm624_vm11, %v738_v43, %v773_v35 }
 0x2fb   : > { %v3351_v21 = vunpack.i.h.bf16 %v3349_v19  ;;  %v3350_v40 = vunpack.i.l.bf16 %v3349_v19  ;;  %v861_v61 = vsel %vm624_vm11, %v737_v37, %v772_v20  ;;  %v831_v20 = vsel %vm590_vm13, %v3340_v14, %v3341_v11 }
 0x2fc   : > { %v830_v35 = vsel %vm590_vm13, %v825_v6, %v3340_v14 }
 0x2fd   : > { %v796_v45 = vpop.permute.xlu1 %795  ;;  %v802_v50 = vsel %vm558_vm10, %v3350_v40, %v3351_v21 }
 0x2fe   : > { %v801_v53 = vsel %vm558_vm10, %v796_v45, %v3350_v40  ;;  %v3354_v54 = vpop.permute.xlu0 %3353  ;;  %v864_v60 = vsel %vm624_vm11, %v786_v47, %v802_v50 }
 0x2ff   : > { %v3356_v29 = vunpack.i.h.bf16 %v3354_v54  ;;  %v3355_v62 = vunpack.i.l.bf16 %v3354_v54  ;;  %v3182_v63 = vpack.c.bf16 %v864_v60, %v862_v58  ;;  %v863_v24 = vsel %vm624_vm11, %v785_v52, %v801_v53  ;;  %v870_v60 = vld [vmem:[%s4830_s5] sm:$0xff] }
 0x300   : > { %v3184_v3 = vpack.c.bf16 %v863_v24, %v861_v61 }
 0x301   : > { %v812_v16 = vpop.permute.xlu1 %811  ;;  %3183 = vmatprep.subr.bf16.mxu1 %v3182_v63  ;;  %v818_v18 = vsel %vm576_vm12, %v3355_v62, %v3356_v29  ;;  %v869_v29 = vld [vmem:[%s4829_s4] sm:$0xff] }
 0x302   : > { %v3359_v1 = vpop.permute.xlu0 %3358  ;;  %3185 = vmatpush1.bf16.msra.mxu1 %v3184_v3  ;;  %v817_v19 = vsel %vm576_vm12, %v812_v16, %v3355_v62  ;;  %v866_v37 = vsel %vm624_vm11, %v3880_v23, %v818_v18 }
 0x303   : > { %v3361_v33 = vunpack.i.h.bf16 %v3359_v1  ;;  %v3360_v17 = vunpack.i.l.bf16 %v3359_v1  ;;  %v865_v47 = vsel %vm624_vm11, %v3876_v22, %v817_v19 }
 0x305   : > { %v841_v21 = vpop.permute.xlu1 %840  ;;  %v847_v40 = vsel %vm607_vm14, %v3360_v17, %v3361_v33 }
 0x306   : > { %v846_v43 = vsel %vm607_vm14, %v841_v21, %v3360_v17  ;;  %v856_v57 = vpop.permute.xlu0 %855  ;;  %v868_v45 = vsel %vm624_vm11, %v831_v20, %v847_v40 }
 0x307   : > { %v867_v50 = vsel %vm624_vm11, %v830_v35, %v846_v43  ;;  %v3186_v52 = vpack.c.bf16 %v868_v45, %v866_v37 }
 0x308   : > { %v3188_v53 = vpack.c.bf16 %v867_v50, %v865_v47 }
 0x309   : > { %v858_v54 = vpop.permute.xlu1 %857  ;;  %3187 = vmatprep.subr.bf16.mxu1 %v3186_v52 }
 0x30a   : > { %v860_v58 = vsel %vm621_vm15, %v856_v57, %v858_v54  ;;  %v854_v6 = vpop.permute.xlu0 %853  ;;  %3189 = vmatpush1.bf16.msra.mxu1 %v3188_v53 }
 0x30b   : > { %3123 = vmatprep.subr.msk.mxu1 %vm624_vm11, %v860_v58  ;;  %v859_v61 = vsel %vm621_vm15, %v854_v6, %v856_v57 }
 0x30e   : > { %3124 = vmatpush1.msk.msra.mxu1 %vm624_vm11, %v859_v61 }
 0x30f   : > { %3191 = vmatprep.subr.bf16.mxu1 %v3837_v25  ;;  %3125 = vmatmul.mubr.msk.f32.vlgmr.msra.gmra.mrb[0].mxu1 %vm640_vm1, %v870_v60  ;;  %v1037_v25 = vrot.slane %v3876_v22, 4 }
 0x310   : > { %3193 = vmatpush1.bf16.msra.mxu1 %v3839_v26  ;;  %1016 = vmatprep.mubr.f32.mxu1 %v3598_v42  ;;  %v1038_v26 = vrot.slane %v3880_v23, 4 }
 0x311   : > { %3195 = vmatprep.subr.bf16.mxu1 %v3855_v4  ;;  %v1041_v4 = vsel %vm624_vm11, %v3676_v7, %v1037_v25 }
 0x314   : > { %3197 = vmatpush1.bf16.msra.mxu1 %v3857_v5  ;;  %v1042_v5 = vsel %vm624_vm11, %v3686_v13, %v1038_v26 }
 0x315   : > { %3126 = vmatprep.subr.msk.mxu1 %vm624_vm11, %v3862_v8  ;;  %v1045_v8 = vrot.slane %v1041_v4, 1  ;;  %v1046_v62 = vrot.slane %v1042_v5, 1 }
 0x317   : > { %v1049_v63 = vmax.f32 %v1041_v4, %v1045_v8  ;;  %v1050_v24 = vmax.f32 %v1042_v5, %v1046_v62 }
 0x318   : > { %3127 = vmatpush1.msk.msra.mxu1 %vm624_vm11, %v3870_v12 }
 0x319   : > { %3128 = vmatmul.mubr.msk.f32.vlgmr.msra.gmra.mrb[0].mxu1 %vm640_vm1, %v869_v29  ;;  %v1053_v1 = vrot.slane %v1049_v63, 2  ;;  %v1054_v33 = vrot.slane %v1050_v24, 2 }
 0x31a   : > { %1795 = vmatprep.mubr.f32.mxu1 %v3598_v42  ;;  %v1027_v3 = vpop.permute.xlu1 %1026 }
 0x31b   : > { %v1057_v21 = vmax.f32 %v1049_v63, %v1053_v1  ;;  %v1058_v40 = vmax.f32 %v1050_v24, %v1054_v33 }
 0x31d   : > { %v1077_v37 = vrot.slane %v1057_v21, 3  ;;  %v1078_v47 = vrot.slane %v1058_v40, 3 }
 0x31f   : > { %v1092_v54 = vsel %vm1091_vm6, %v1057_v21, %v1077_v37  ;;  %v1093_v61 = vsel %vm1091_vm6, %v1058_v40, %v1078_v47 }
 0x3ec   : > { %v1018_v12 = vpop.f32.mrb[0].mxu1 }
 0x3ed   : > { %v1029_v11 = vadd.f32 %v1027_v3, %v1018_v12  ;;  %v1020_v14 = vpop.f32.mrb[1].mxu1 }
 0x3ee   : > { %v1030_v16 = vadd.f32 %v1027_v3, %v1020_v14 }
 0x3ef   : > { %vm1031_vm4 = vcmp.ge.f32.partialorder %v1029_v11, 0.0  ;;  %v1033_v22 = vmul.f32 0.25, %v1029_v11 }
 0x3f0   : > { %vm1032_vm5 = vcmp.ge.f32.partialorder %v1030_v16, 0.0  ;;  %v1034_v23 = vmul.f32 0.25, %v1030_v16 }
 0x3f1   : > { %v1035_v17 = vsel %vm1031_vm4, %v1029_v11, %v1033_v22 }
 0x3f2   : > { %v1061_v7 = vrot.slane %v1035_v17, 1  ;;  %v1036_v18 = vsel %vm1032_vm5, %v1030_v16, %v1034_v23 }
 0x3f3   : > { %v1062_v19 = vrot.slane %v1036_v18, 1 }
 0x3f4   : > { %v1065_v20 = vmax.f32 %v1035_v17, %v1061_v7 }
 0x3f5   : > { %v1066_v35 = vmax.f32 %v1036_v18, %v1062_v19 }
 0x3f6   : > { %v1069_v43 = vrot.slane %v1065_v20, 2 }
 0x3f7   : > { %v1070_v57 = vrot.slane %v1066_v35, 2 }
 0x3f8   : > { %v1073_v45 = vmax.f32 %v1065_v20, %v1069_v43 }
 0x3f9   : > { %v1074_v50 = vmax.f32 %v1066_v35, %v1070_v57 }
 0x3fa   : > { %v1083_v52 = vrot.slane %v1073_v45, 6  ;;  %v1087_v53 = vrot.slane %v1073_v45, 1 }
 0x3fb   : > { %v1084_v58 = vrot.slane %v1074_v50, 6  ;;  %v1088_v6 = vrot.slane %v1074_v50, 1 }
 0x3fc   : > { %v1095_v60 = vsel %vm1094_vm7, %v1092_v54, %v1083_v52 }
 0x3fd   : > { %v4002_v29 = vsel %vm1097_vm2, %v1095_v60, %v1087_v53  ;;  %v1096_v25 = vsel %vm1094_vm7, %v1093_v61, %v1084_v58 }
 0x3fe   : > { %1103 = vrot.lane.b32.xlu0 %v4002_v29, %s3584_s19  ;;  %v4008_v26 = vsel %vm1097_vm2, %v1096_v25, %v1088_v6 }
 0x3ff   : > { %1105 = vrot.lane.b32.xlu1 %v4008_v26, %s3584_s19 }
 0x470   : > { %v1104_v4 = vpop.permute.xlu0 %1103 }
 0x471   : > { %v4013_v5 = vsel %vm344_vm0, 0.0, %v1104_v4  ;;  %v1106_v8 = vpop.permute.xlu1 %1105 }
 0x472   : > { %v4016_v62 = vsel %vm344_vm0, %v1104_v4, %v1106_v8  ;;  %v1112_v63 = vsel %vm344_vm0, %v1106_v8, 0.0  ;;  %v1118_v24 = vmul.f32 %v4013_v5, %v3707_v36  ;;  %v1127_v23 = vmul.f32 %v4013_v5, %v3754_v56 }
 0x473   : > { %v1119_v3 = vmul.f32 %v4016_v62, %v3721_v41  ;;  %v1120_v12 = vmul.f32 %v1112_v63, %v3712_v38  ;;  %v1116_v11 = vmul.f32 %v4016_v62, %v3736_v48  ;;  %v1117_v14 = vmul.f32 %v1112_v63, %v3700_v32 }
 0x474   : > { %1155 = vrot.lane.b32.xlu0 %v1118_v24, %s3592_s12  ;;  %v1128_v1 = vmul.f32 %v4016_v62, %v3766_v0  ;;  %v1129_v22 = vmul.f32 %v1112_v63, %v3760_v59  ;;  %v1122_v33 = vmul.f32 %v4016_v62, %v3751_v55  ;;  %v1123_v18 = vmul.f32 %v1112_v63, %v3702_v34 }
 0x475   : > { %v3362_v16 = vpack.i.bf16 %v1120_v12, %v1119_v3  ;;  %v1140_v17 = vrot.slane %v1116_v11, 4  ;;  %v1141_v7 = vrot.slane %v1117_v14, 4  ;;  %v1115_v21 = vmul.f32 %v4013_v5, %v3696_v30 }
 0x476   : > { %v3367_v19 = vpack.i.bf16 %v1129_v22, %v1128_v1  ;;  %v1169_v20 = vrot.slane %v1122_v33, 4  ;;  %v1170_v35 = vrot.slane %v1123_v18, 4  ;;  %v1125_v43 = vmul.f32 %v4016_v62, %v3772_v2 }
 0x477   : > { %3363 = vrot.lane.b32.xlu1 %v3362_v16, %s3592_s12  ;;  %v3372_v40 = vpack.i.bf16 %v1141_v7, %v1140_v17  ;;  %v1126_v57 = vmul.f32 %v1112_v63, %v3732_v46  ;;  %v1139_v37 = vrot.slane %v1115_v21, 4  ;;  %v1121_v45 = vmul.f32 %v4013_v5, %v3698_v31  ;;  %v1245_v16 = vld [vmem:[%s4833_s8] sm:$0xf] }
 0x478   : > { %1200 = vrot.lane.b32.xlu0 %v1127_v23, %s3595_s17  ;;  %v1131_v47 = vmul.f32 %v4016_v62, %v3786_v15  ;;  %v3377_v50 = vpack.i.bf16 %v1170_v35, %v1169_v20  ;;  %v1185_v52 = vrot.slane %v1125_v43, 4  ;;  %v1132_v54 = vmul.f32 %v1112_v63, %v3741_v51 }
 0x479   : > { %v1186_v53 = vrot.slane %v1126_v57, 4  ;;  %v1168_v58 = vrot.slane %v1121_v45, 4  ;;  %v1124_v6 = vmul.f32 %v4013_v5, %v3728_v44  ;;  %v1130_v8 = vmul.f32 %v4013_v5, %v3739_v49 }
 0x47a   : > { %v1214_v61 = vrot.slane %v1131_v47, 4  ;;  %v1215_v25 = vrot.slane %v1132_v54, 4  ;;  %v1134_v12 = vmul.f32 %v4016_v62, %v3808_v39  ;;  %v1135_v11 = vmul.f32 %v1112_v63, %v3798_v27 }
 0x47b   : > { %3368 = vrot.lane.b32.xlu1 %v3367_v19, %s3595_s17  ;;  %v3382_v60 = vpack.i.bf16 %v1186_v53, %v1185_v52  ;;  %v1184_v4 = vrot.slane %v1124_v6, 4  ;;  %v1213_v3 = vrot.slane %v1130_v8, 4  ;;  %v1133_v14 = vmul.f32 %v4013_v5, %v3800_v28 }
 0x47c   : > { %3373 = vrot.lane.b32.xlu0 %v3372_v40, %s3593_s14  ;;  %v3387_v24 = vpack.i.bf16 %v1215_v25, %v1214_v61  ;;  %v1114_v45 = vmul.f32 %v4016_v62, %v3680_v10 }
 0x47f   : > { %1142 = vrot.lane.b32.xlu1 %v1139_v37, %s3593_s14  ;;  %v1113_v37 = vmul.f32 %v4013_v5, %v3678_v9 }
 0x480   : > { %3378 = vrot.lane.b32.xlu0 %v3377_v50, %s3594_s15 }
 0x483   : > { %1171 = vrot.lane.b32.xlu1 %v1168_v58, %s3594_s15 }
 0x484   : > { %3383 = vrot.lane.b32.xlu0 %v3382_v60, %s3596_s18 }
 0x487   : > { %1187 = vrot.lane.b32.xlu1 %v1184_v4, %s3596_s18 }
 0x488   : > { %3388 = vrot.lane.b32.xlu0 %v3387_v24, %s3597_s20 }
 0x48b   : > { %1216 = vrot.lane.b32.xlu1 %v1213_v3, %s3597_s20 }
 0x48c   : > { %1231 = vrot.lane.b32.xlu0 %v1134_v12, %s3599_s21 }
 0x48f   : > { %1233 = vrot.lane.b32.xlu1 %v1135_v11, %s3599_s21 }
 0x490   : > { %1229 = vrot.lane.b32.xlu0 %v1133_v14, %s3599_s21 }
 0x493   : > { %1248 = vperm.xlu1 %3331, %v1245_v16  }
 0x4e6   : > { %v1156_v1 = vpop.permute.xlu0 %1155 }
 0x4e9   : > { %v3364_v22 = vpop.permute.xlu1 %3363 }
 0x4ea   : > { %v1201_v33 = vpop.permute.xlu0 %1200  ;;  %v3366_v63 = vunpack.i.h.bf16 %v3364_v22  ;;  %v3365_v19 = vunpack.i.l.bf16 %v3364_v22 }
 0x4ec   : > { %v1161_v50 = vsel %vm541_vm9, %v1156_v1, %v3365_v19  ;;  %v1162_v52 = vsel %vm541_vm9, %v3365_v19, %v3366_v63 }
 0x4ed   : > { %v3369_v23 = vpop.permute.xlu1 %3368 }
 0x4ee   : > { %v3374_v17 = vpop.permute.xlu0 %3373  ;;  %v3371_v24 = vunpack.i.h.bf16 %v3369_v23  ;;  %v3370_v3 = vunpack.i.l.bf16 %v3369_v23 }
 0x4ef   : > { %v3376_v7 = vunpack.i.h.bf16 %v3374_v17  ;;  %v3375_v18 = vunpack.i.l.bf16 %v3374_v17 }
 0x4f0   : > { %v1206_v63 = vsel %vm590_vm13, %v1201_v33, %v3370_v3 }
 0x4f1   : > { %v1143_v21 = vpop.permute.xlu1 %1142  ;;  %v1149_v57 = vsel %vm527_vm8, %v3375_v18, %v3376_v7  ;;  %v1207_v7 = vsel %vm590_vm13, %v3370_v3, %v3371_v24 }
 0x4f2   : > { %v3379_v20 = vpop.permute.xlu0 %3378  ;;  %v1148_v40 = vsel %vm527_vm8, %v1143_v21, %v3375_v18  ;;  %v1238_v60 = vsel %vm624_vm11, %v1114_v45, %v1149_v57 }
 0x4f3   : > { %v3381_v35 = vunpack.i.h.bf16 %v3379_v20  ;;  %v3380_v43 = vunpack.i.l.bf16 %v3379_v20  ;;  %v1237_v54 = vsel %vm624_vm11, %v1113_v37, %v1148_v40 }
 0x4f5   : > { %v1172_v47 = vpop.permute.xlu1 %1171  ;;  %v1178_v53 = vsel %vm558_vm10, %v3380_v43, %v3381_v35 }
 0x4f6   : > { %v1177_v58 = vsel %vm558_vm10, %v1172_v47, %v3380_v43  ;;  %v3384_v6 = vpop.permute.xlu0 %3383  ;;  %v1240_v61 = vsel %vm624_vm11, %v1162_v52, %v1178_v53 }
 0x4f7   : > { %v1239_v5 = vsel %vm624_vm11, %v1161_v50, %v1177_v58  ;;  %v3386_v25 = vunpack.i.h.bf16 %v3384_v6  ;;  %v3385_v62 = vunpack.i.l.bf16 %v3384_v6  ;;  %v3198_v4 = vpack.c.bf16 %v1240_v61, %v1238_v60 }
 0x4f8   : > { %v3200_v8 = vpack.c.bf16 %v1239_v5, %v1237_v54 }
 0x4f9   : > { %v1188_v12 = vpop.permute.xlu1 %1187  ;;  %3199 = vmatprep.subr.bf16.mxu0 %v3198_v4  ;;  %v1194_v1 = vsel %vm576_vm12, %v3385_v62, %v3386_v25 }
 0x4fa   : > { %v3389_v11 = vpop.permute.xlu0 %3388  ;;  %3201 = vmatpush1.bf16.msra.mxu0 %v3200_v8  ;;  %v1193_v22 = vsel %vm576_vm12, %v1188_v12, %v3385_v62  ;;  %v1242_v21 = vsel %vm624_vm11, %v4008_v26, %v1194_v1  ;;  %v1100_v26 = vld [vmem:[%s4832_s7] sm:$0xf] }
 0x4fb   : > { %v3391_v14 = vunpack.i.h.bf16 %v3389_v11  ;;  %v3390_v16 = vunpack.i.l.bf16 %v3389_v11  ;;  %v1241_v40 = vsel %vm624_vm11, %v4002_v29, %v1193_v22  ;;  %v3574_v62 = vld [vmem:[%s3670_s16] sm:$0xff] }
 0x4fd   : > { %v1217_v17 = vpop.permute.xlu1 %1216  ;;  %v1223_v18 = vsel %vm607_vm14, %v3390_v16, %v3391_v14 }
 0x4fe   : > { %v1222_v19 = vsel %vm607_vm14, %v1217_v17, %v3390_v16  ;;  %v1232_v23 = vpop.permute.xlu0 %1231  ;;  %v1244_v20 = vsel %vm624_vm11, %v1207_v7, %v1223_v18 }
 0x4ff   : > { %v1243_v35 = vsel %vm624_vm11, %v1206_v63, %v1222_v19  ;;  %v3202_v43 = vpack.c.bf16 %v1244_v20, %v1242_v21 }
 0x500   : > { %v3204_v57 = vpack.c.bf16 %v1243_v35, %v1241_v40 }
 0x501   : > { %v1234_v37 = vpop.permute.xlu1 %1233  ;;  %3203 = vmatprep.subr.bf16.mxu0 %v3202_v43 }
 0x502   : > { %v1236_v45 = vsel %vm621_vm15, %v1232_v23, %v1234_v37  ;;  %v1230_v33 = vpop.permute.xlu0 %1229  ;;  %3205 = vmatpush1.bf16.msra.mxu0 %v3204_v57 }
 0x503   : > { %3129 = vmatprep.subr.msk.mxu0 %vm624_vm11, %v1236_v45  ;;  %v1235_v47 = vsel %vm621_vm15, %v1230_v33, %v1232_v23 }
 0x506   : > { %3130 = vmatpush1.msk.msra.mxu0 %vm624_vm11, %v1235_v47 }
 0x507   : > { %3131 = vmatmul.mubr.msk.f32.vlgmr.msra.gmra.mrb[2].mxu0 %vm640_vm1, %v1100_v26 }
 0x508   : > { %1563 = vmatprep.mubr.f32.mxu0 %v3598_v42 }
 0x512   : > { %v1249_v29 = vpop.permute.xlu1 %1248 }
 0x5da   : > { %v1324_v50 = vpop.f32.mrb[2].mxu0 }
 0x5db   : > { %v1325_v52 = vadd.f32 %v1324_v50, %v1249_v29  ;;  %v1326_v53 = vpop.f32.mrb[3].mxu0 }
 0x5dc   : > { %v1327_v54 = vadd.f32 %v1326_v53, %v1249_v29 }
 0x5dd   : > { %vm1329_vm3 = vcmp.ge.f32.partialorder %v1325_v52, 0.0  ;;  %v1331_v58 = vmul.f32 0.25, %v1325_v52 }
 0x5de   : > { %vm1330_vm4 = vcmp.ge.f32.partialorder %v1327_v54, 0.0  ;;  %v1332_v6 = vmul.f32 0.25, %v1327_v54 }
 0x5df   : > { %v1333_v60 = vsel %vm1329_vm3, %v1325_v52, %v1331_v58 }
 0x5e0   : > { %v1335_v61 = vmul.f32 0.2, %v1333_v60  ;;  %v1334_v5 = vsel %vm1330_vm4, %v1327_v54, %v1332_v6 }
 0x5e1   : > { %v1336_v25 = vmul.f32 0.2, %v1334_v5 }
 0x5e2   : > { %v4108_v4 = vadd.f32 %v3574_v62, %v1335_v61 }
 0x5e3   : > { %v4111_v8 = vadd.f32 %v1336_v25, %v3686_v13 }
 0x5e4   : > { %1341 = vrot.lane.b32.xlu0 %v4108_v4, %s3584_s19 }
 0x5e5   : > { %1343 = vrot.lane.b32.xlu1 %v4111_v8, %s3584_s19 }
 0x656   : > { %v1342_v24 = vpop.permute.xlu0 %1341 }
 0x657   : > { %v4118_v3 = vsel %vm344_vm0, 0.0, %v1342_v24  ;;  %v1344_v12 = vpop.permute.xlu1 %1343 }
 0x658   : > { %v4121_v11 = vsel %vm344_vm0, %v1342_v24, %v1344_v12  ;;  %v1350_v14 = vsel %vm344_vm0, %v1344_v12, 0.0  ;;  %v1356_v16 = vmul.f32 %v4118_v3, %v3707_v36  ;;  %v1365_v21 = vmul.f32 %v4118_v3, %v3754_v56 }
 0x659   : > { %v1357_v1 = vmul.f32 %v4121_v11, %v3721_v41  ;;  %v1358_v22 = vmul.f32 %v1350_v14, %v3712_v38  ;;  %v1354_v17 = vmul.f32 %v4121_v11, %v3736_v48  ;;  %v1355_v7 = vmul.f32 %v1350_v14, %v3700_v32 }
 0x65a   : > { %1393 = vrot.lane.b32.xlu0 %v1356_v16, %s3592_s12  ;;  %v1366_v63 = vmul.f32 %v4121_v11, %v3766_v0  ;;  %v1367_v19 = vmul.f32 %v1350_v14, %v3760_v59  ;;  %v1360_v23 = vmul.f32 %v4121_v11, %v3751_v55  ;;  %v1361_v35 = vmul.f32 %v1350_v14, %v3702_v34 }
 0x65b   : > { %v3392_v18 = vpack.i.bf16 %v1358_v22, %v1357_v1  ;;  %v1378_v20 = vrot.slane %v1354_v17, 4  ;;  %v1379_v40 = vrot.slane %v1355_v7, 4  ;;  %v1353_v57 = vmul.f32 %v4118_v3, %v3696_v30 }
 0x65c   : > { %v3397_v43 = vpack.i.bf16 %v1367_v19, %v1366_v63  ;;  %v1407_v37 = vrot.slane %v1360_v23, 4  ;;  %v1408_v33 = vrot.slane %v1361_v35, 4  ;;  %v1363_v26 = vmul.f32 %v4121_v11, %v3772_v2 }
 0x65d   : > { %3393 = vrot.lane.b32.xlu1 %v3392_v18, %s3592_s12  ;;  %v3402_v45 = vpack.i.bf16 %v1379_v40, %v1378_v20  ;;  %v1364_v47 = vmul.f32 %v1350_v14, %v3732_v46  ;;  %v1377_v29 = vrot.slane %v1353_v57, 4  ;;  %v1359_v50 = vmul.f32 %v4118_v3, %v3698_v31  ;;  %v3133_v18 = vld [vmem:[%s4828_s3 + $0x4] sm:$0xf] }
 0x65e   : > { %1438 = vrot.lane.b32.xlu0 %v1365_v21, %s3595_s17  ;;  %v1369_v52 = vmul.f32 %v4121_v11, %v3786_v15  ;;  %v3407_v53 = vpack.i.bf16 %v1408_v33, %v1407_v37  ;;  %v1423_v54 = vrot.slane %v1363_v26, 4  ;;  %v1370_v6 = vmul.f32 %v1350_v14, %v3741_v51 }
 0x65f   : > { %v1424_v58 = vrot.slane %v1364_v47, 4  ;;  %v1406_v60 = vrot.slane %v1359_v50, 4  ;;  %v1362_v61 = vmul.f32 %v4118_v3, %v3728_v44  ;;  %v1368_v12 = vmul.f32 %v4118_v3, %v3739_v49 }
 0x660   : > { %v1452_v25 = vrot.slane %v1369_v52, 4  ;;  %v1453_v62 = vrot.slane %v1370_v6, 4  ;;  %v1372_v22 = vmul.f32 %v4121_v11, %v3808_v39  ;;  %v1373_v17 = vmul.f32 %v1350_v14, %v3798_v27 }
 0x661   : > { %3398 = vrot.lane.b32.xlu1 %v3397_v43, %s3595_s17  ;;  %v3412_v5 = vpack.i.bf16 %v1424_v58, %v1423_v54  ;;  %v1422_v24 = vrot.slane %v1362_v61, 4  ;;  %v1451_v1 = vrot.slane %v1368_v12, 4  ;;  %v1371_v7 = vmul.f32 %v4118_v3, %v3800_v28 }
 0x662   : > { %3403 = vrot.lane.b32.xlu0 %v3402_v45, %s3593_s14  ;;  %v3417_v16 = vpack.i.bf16 %v1453_v62, %v1452_v25  ;;  %v1352_v50 = vmul.f32 %v4121_v11, %v3680_v10 }
 0x665   : > { %1380 = vrot.lane.b32.xlu1 %v1377_v29, %s3593_s14  ;;  %v1351_v29 = vmul.f32 %v4118_v3, %v3678_v9 }
 0x666   : > { %3408 = vrot.lane.b32.xlu0 %v3407_v53, %s3594_s15 }
 0x669   : > { %1409 = vrot.lane.b32.xlu1 %v1406_v60, %s3594_s15 }
 0x66a   : > { %3413 = vrot.lane.b32.xlu0 %v3412_v5, %s3596_s18 }
 0x66d   : > { %1425 = vrot.lane.b32.xlu1 %v1422_v24, %s3596_s18 }
 0x66e   : > { %3418 = vrot.lane.b32.xlu0 %v3417_v16, %s3597_s20 }
 0x671   : > { %1454 = vrot.lane.b32.xlu1 %v1451_v1, %s3597_s20 }
 0x672   : > { %1469 = vrot.lane.b32.xlu0 %v1372_v22, %s3599_s21 }
 0x675   : > { %1471 = vrot.lane.b32.xlu1 %v1373_v17, %s3599_s21 }
 0x676   : > { %1467 = vrot.lane.b32.xlu0 %v1371_v7, %s3599_s21 }
 0x679   : > { %1489 = vperm.xlu1 %3331, %v3133_v18  }
 0x6cc   : > { %v1394_v63 = vpop.permute.xlu0 %1393 }
 0x6cf   : > { %v3394_v19 = vpop.permute.xlu1 %3393 }
 0x6d0   : > { %v1439_v23 = vpop.permute.xlu0 %1438  ;;  %v3396_v14 = vunpack.i.h.bf16 %v3394_v19  ;;  %v3395_v43 = vunpack.i.l.bf16 %v3394_v19 }
 0x6d2   : > { %v1399_v53 = vsel %vm541_vm9, %v1394_v63, %v3395_v43  ;;  %v1400_v54 = vsel %vm541_vm9, %v3395_v43, %v3396_v14 }
 0x6d3   : > { %v3399_v21 = vpop.permute.xlu1 %3398 }
 0x6d4   : > { %v3404_v20 = vpop.permute.xlu0 %3403  ;;  %v3401_v16 = vunpack.i.h.bf16 %v3399_v21  ;;  %v3400_v1 = vunpack.i.l.bf16 %v3399_v21 }
 0x6d5   : > { %v3406_v40 = vunpack.i.h.bf16 %v3404_v20  ;;  %v3405_v35 = vunpack.i.l.bf16 %v3404_v20 }
 0x6d6   : > { %v1444_v14 = vsel %vm590_vm13, %v1439_v23, %v3400_v1 }
 0x6d7   : > { %v1381_v57 = vpop.permute.xlu1 %1380  ;;  %v1387_v47 = vsel %vm527_vm8, %v3405_v35, %v3406_v40 }
 0x6d8   : > { %v3409_v37 = vpop.permute.xlu0 %3408  ;;  %v1386_v45 = vsel %vm527_vm8, %v1381_v57, %v3405_v35  ;;  %v1476_v5 = vsel %vm624_vm11, %v1352_v50, %v1387_v47  ;;  %v1445_v35 = vsel %vm590_vm13, %v3400_v1, %v3401_v16 }
 0x6d9   : > { %v3411_v33 = vunpack.i.h.bf16 %v3409_v37  ;;  %v3410_v26 = vunpack.i.l.bf16 %v3409_v37  ;;  %v1475_v6 = vsel %vm624_vm11, %v1351_v29, %v1386_v45 }
 0x6db   : > { %v1410_v52 = vpop.permute.xlu1 %1409  ;;  %v1416_v58 = vsel %vm558_vm10, %v3410_v26, %v3411_v33 }
 0x6dc   : > { %v1415_v60 = vsel %vm558_vm10, %v1410_v52, %v3410_v26  ;;  %v3414_v61 = vpop.permute.xlu0 %3413  ;;  %v1478_v25 = vsel %vm624_vm11, %v1400_v54, %v1416_v58  ;;  %v3132_v52 = vld [vmem:[%s4827_s2 + $0x4] sm:$0xf] }
 0x6dd   : > { %v1477_v3 = vsel %vm624_vm11, %v1399_v53, %v1415_v60  ;;  %v3416_v62 = vunpack.i.h.bf16 %v3414_v61  ;;  %v3415_v11 = vunpack.i.l.bf16 %v3414_v61  ;;  %v4191_v24 = vpack.c.bf16 %v1478_v25, %v1476_v5 }
 0x6de   : > { %v4193_v12 = vpack.c.bf16 %v1477_v3, %v1475_v6 }
 0x6df   : > { %v1426_v22 = vpop.permute.xlu1 %1425  ;;  %3207 = vmatprep.subr.bf16.mxu0 %v4191_v24  ;;  %v1432_v7 = vsel %vm576_vm12, %v3415_v11, %v3416_v62 }
 0x6e0   : > { %v3419_v17 = vpop.permute.xlu0 %3418  ;;  %3209 = vmatpush1.bf16.msra.mxu0 %v4193_v12  ;;  %v1431_v19 = vsel %vm576_vm12, %v1426_v22, %v3415_v11  ;;  %v1480_v57 = vsel %vm624_vm11, %v4111_v8, %v1432_v7 }
 0x6e1   : > { %v3421_v18 = vunpack.i.h.bf16 %v3419_v17  ;;  %v3420_v63 = vunpack.i.l.bf16 %v3419_v17  ;;  %v1479_v45 = vsel %vm624_vm11, %v4108_v4, %v1431_v19 }
 0x6e3   : > { %v1461_v20 = vsel %vm607_vm14, %v3420_v63, %v3421_v18  ;;  %v1455_v40 = vpop.permute.xlu1 %1454 }
 0x6e4   : > { %v1460_v21 = vsel %vm607_vm14, %v1455_v40, %v3420_v63  ;;  %v1470_v43 = vpop.permute.xlu0 %1469  ;;  %v1482_v37 = vsel %vm624_vm11, %v1445_v35, %v1461_v20 }
 0x6e5   : > { %v1481_v33 = vsel %vm624_vm11, %v1444_v14, %v1460_v21  ;;  %v4209_v26 = vpack.c.bf16 %v1482_v37, %v1480_v57 }
 0x6e6   : > { %v4211_v47 = vpack.c.bf16 %v1481_v33, %v1479_v45 }
 0x6e7   : > { %v1472_v29 = vpop.permute.xlu1 %1471  ;;  %3211 = vmatprep.subr.bf16.mxu0 %v4209_v26 }
 0x6e8   : > { %v4215_v23 = vsel %vm621_vm15, %v1470_v43, %v1472_v29  ;;  %v1468_v50 = vpop.permute.xlu0 %1467  ;;  %3213 = vmatpush1.bf16.msra.mxu0 %v4211_v47 }
 0x6e9   : > { %3134 = vmatprep.subr.msk.mxu0 %vm624_vm11, %v4215_v23  ;;  %v4224_v53 = vsel %vm621_vm15, %v1468_v50, %v1470_v43 }
 0x6ec   : > { %3135 = vmatpush1.msk.msra.mxu0 %vm624_vm11, %v4224_v53 }
 0x6ed   : > { %3136 = vmatmul.mubr.msk.f32.vlgmr.msra.gmra.mrb[4].mxu0 %vm640_vm1, %v3132_v52 }
 0x6ee   : > { %2175 = vmatprep.mubr.f32.mxu0 %v3598_v42 }
 0x6f8   : > { %v1490_v54 = vpop.permute.xlu1 %1489 }
 0x7c0   : > { %v1565_v58 = vpop.f32.mrb[4].mxu0 }
 0x7c1   : > { %v1566_v6 = vadd.f32 %v1565_v58, %v1490_v54  ;;  %v1567_v60 = vpop.f32.mrb[5].mxu0 }
 0x7c2   : > { %v1568_v61 = vadd.f32 %v1567_v60, %v1490_v54 }
 0x7c3   : > { %v1572_v5 = vmul.f32 0.25, %v1566_v6  ;;  %vm1570_vm5 = vcmp.ge.f32.partialorder %v1566_v6, 0.0 }
 0x7c4   : > { %v1573_v25 = vmul.f32 0.25, %v1568_v61  ;;  %vm1571_vm3 = vcmp.ge.f32.partialorder %v1568_v61, 0.0 }
 0x7c5   : > { %v4230_v3 = vsel %vm1570_vm5, %v1566_v6, %v1572_v5 }
 0x7c6   : > { %1578 = vrot.lane.b32.xlu0 %v4230_v3, %s3584_s19  ;;  %v4234_v62 = vsel %vm1571_vm3, %v1568_v61, %v1573_v25 }
 0x7c7   : > { %1580 = vrot.lane.b32.xlu1 %v4234_v62, %s3584_s19 }
 0x838   : > { %v1579_v11 = vpop.permute.xlu0 %1578 }
 0x839   : > { %v4239_v16 = vsel %vm344_vm0, 0.0, %v1579_v11  ;;  %v1581_v1 = vpop.permute.xlu1 %1580 }
 0x83a   : > { %v4242_v22 = vsel %vm344_vm0, %v1579_v11, %v1581_v1  ;;  %v1587_v17 = vsel %vm344_vm0, %v1581_v1, 0.0  ;;  %v1593_v7 = vmul.f32 %v4239_v16, %v3707_v36  ;;  %v1602_v43 = vmul.f32 %v4239_v16, %v3754_v56 }
 0x83b   : > { %v1594_v18 = vmul.f32 %v4242_v22, %v3721_v41  ;;  %v1595_v63 = vmul.f32 %v1587_v17, %v3712_v38  ;;  %v1591_v19 = vmul.f32 %v4242_v22, %v3736_v48  ;;  %v1592_v20 = vmul.f32 %v1587_v17, %v3700_v32 }
 0x83c   : > { %1630 = vrot.lane.b32.xlu0 %v1593_v7, %s3592_s12  ;;  %v1603_v35 = vmul.f32 %v4242_v22, %v3766_v0  ;;  %v1604_v14 = vmul.f32 %v1587_v17, %v3760_v59  ;;  %v1597_v21 = vmul.f32 %v4242_v22, %v3751_v55  ;;  %v1598_v45 = vmul.f32 %v1587_v17, %v3702_v34 }
 0x83d   : > { %v3422_v40 = vpack.i.bf16 %v1595_v63, %v1594_v18  ;;  %v1615_v57 = vrot.slane %v1591_v19, 4  ;;  %v1616_v37 = vrot.slane %v1592_v20, 4  ;;  %v1590_v29 = vmul.f32 %v4239_v16, %v3696_v30 }
 0x83e   : > { %v3427_v33 = vpack.i.bf16 %v1604_v14, %v1603_v35  ;;  %v1644_v50 = vrot.slane %v1597_v21, 4  ;;  %v1645_v54 = vrot.slane %v1598_v45, 4  ;;  %v1600_v58 = vmul.f32 %v4242_v22, %v3772_v2 }
 0x83f   : > { %3423 = vrot.lane.b32.xlu1 %v3422_v40, %s3592_s12  ;;  %v3432_v52 = vpack.i.bf16 %v1616_v37, %v1615_v57  ;;  %v1601_v6 = vmul.f32 %v1587_v17, %v3732_v46  ;;  %v1614_v60 = vrot.slane %v1590_v29, 4  ;;  %v1596_v61 = vmul.f32 %v4239_v16, %v3698_v31 }
 0x840   : > { %1675 = vrot.lane.b32.xlu0 %v1602_v43, %s3595_s17  ;;  %v1606_v5 = vmul.f32 %v4242_v22, %v3786_v15  ;;  %v3437_v25 = vpack.i.bf16 %v1645_v54, %v1644_v50  ;;  %v1660_v11 = vrot.slane %v1600_v58, 4  ;;  %v1607_v7 = vmul.f32 %v1587_v17, %v3741_v51 }
 0x841   : > { %v1661_v1 = vrot.slane %v1601_v6, 4  ;;  %v1643_v18 = vrot.slane %v1596_v61, 4  ;;  %v1599_v63 = vmul.f32 %v4239_v16, %v3728_v44  ;;  %v1605_v14 = vmul.f32 %v4239_v16, %v3739_v49 }
 0x842   : > { %v1689_v20 = vrot.slane %v1606_v5, 4  ;;  %v1690_v40 = vrot.slane %v1607_v7, 4  ;;  %v1609_v57 = vmul.f32 %v4242_v22, %v3808_v39  ;;  %v1610_v37 = vmul.f32 %v1587_v17, %v3798_v27 }
 0x843   : > { %3428 = vrot.lane.b32.xlu1 %v3427_v33, %s3595_s17  ;;  %v3442_v19 = vpack.i.bf16 %v1661_v1, %v1660_v11  ;;  %v1659_v35 = vrot.slane %v1599_v63, 4  ;;  %v1688_v43 = vrot.slane %v1605_v14, 4  ;;  %v1608_v45 = vmul.f32 %v4239_v16, %v3800_v28  ;;  %v3145_v33 = vld [vmem:[%s4831_s6 + $0x8] sm:$0xff] }
 0x844   : > { %3433 = vrot.lane.b32.xlu0 %v3432_v52, %s3593_s14  ;;  %v3447_v21 = vpack.i.bf16 %v1690_v40, %v1689_v20  ;;  %v1588_v63 = vmul.f32 %v4239_v16, %v3678_v9 }
 0x847   : > { %1617 = vrot.lane.b32.xlu1 %v1614_v60, %s3593_s14 }
 0x848   : > { %3438 = vrot.lane.b32.xlu0 %v3437_v25, %s3594_s15 }
 0x84b   : > { %1646 = vrot.lane.b32.xlu1 %v1643_v18, %s3594_s15 }
 0x84c   : > { %3443 = vrot.lane.b32.xlu0 %v3442_v19, %s3596_s18  ;;  %v1589_v19 = vmul.f32 %v4242_v22, %v3680_v10 }
 0x84f   : > { %1662 = vrot.lane.b32.xlu1 %v1659_v35, %s3596_s18 }
 0x850   : > { %3448 = vrot.lane.b32.xlu0 %v3447_v21, %s3597_s20 }
 0x853   : > { %1691 = vrot.lane.b32.xlu1 %v1688_v43, %s3597_s20 }
 0x854   : > { %1706 = vrot.lane.b32.xlu0 %v1609_v57, %s3599_s21 }
 0x857   : > { %1708 = vrot.lane.b32.xlu1 %v1610_v37, %s3599_s21 }
 0x858   : > { %1704 = vrot.lane.b32.xlu0 %v1608_v45, %s3599_s21 }
 0x85b   : > { %1880 = vperm.xlu1 %3331, %v3145_v33  }
 0x8ae   : > { %v1631_v29 = vpop.permute.xlu0 %1630 }
 0x8b1   : > { %v3424_v50 = vpop.permute.xlu1 %3423 }
 0x8b2   : > { %v1676_v52 = vpop.permute.xlu0 %1675  ;;  %v3426_v17 = vunpack.i.h.bf16 %v3424_v50  ;;  %v3425_v61 = vunpack.i.l.bf16 %v3424_v50 }
 0x8b4   : > { %v1637_v20 = vsel %vm541_vm9, %v3425_v61, %v3426_v17  ;;  %v1636_v14 = vsel %vm541_vm9, %v1631_v29, %v3425_v61 }
 0x8b5   : > { %v3429_v54 = vpop.permute.xlu1 %3428 }
 0x8b6   : > { %v3434_v58 = vpop.permute.xlu0 %3433 }
 0x8b7   : > { %v3436_v6 = vunpack.i.h.bf16 %v3434_v58  ;;  %v3435_v60 = vunpack.i.l.bf16 %v3434_v58 }
 0x8b9   : > { %v1618_v5 = vpop.permute.xlu1 %1617  ;;  %v1624_v11 = vsel %vm527_vm8, %v3435_v60, %v3436_v6  ;;  %v3431_v6 = vunpack.i.h.bf16 %v3429_v54 }
 0x8ba   : > { %v3439_v25 = vpop.permute.xlu0 %3438  ;;  %v1623_v1 = vsel %vm527_vm8, %v1618_v5, %v3435_v60  ;;  %v1713_v37 = vsel %vm624_vm11, %v1589_v19, %v1624_v11  ;;  %v3430_v60 = vunpack.i.l.bf16 %v3429_v54 }
 0x8bb   : > { %v3441_v7 = vunpack.i.h.bf16 %v3439_v25  ;;  %v3440_v18 = vunpack.i.l.bf16 %v3439_v25  ;;  %v1712_v21 = vsel %vm624_vm11, %v1588_v63, %v1623_v1 }
 0x8bc   : > { %v1682_v1 = vsel %vm590_vm13, %v3430_v60, %v3431_v6  ;;  %v1681_v63 = vsel %vm590_vm13, %v1676_v52, %v3430_v60 }
 0x8bd   : > { %v1653_v40 = vsel %vm558_vm10, %v3440_v18, %v3441_v7  ;;  %v1647_v35 = vpop.permute.xlu1 %1646 }
 0x8be   : > { %v1652_v43 = vsel %vm558_vm10, %v1647_v35, %v3440_v18  ;;  %v3444_v57 = vpop.permute.xlu0 %3443  ;;  %v1715_v45 = vsel %vm624_vm11, %v1637_v20, %v1653_v40 }
 0x8bf   : > { %v1714_v16 = vsel %vm624_vm11, %v1636_v14, %v1652_v43  ;;  %v3446_v33 = vunpack.i.h.bf16 %v3444_v57  ;;  %v3445_v22 = vunpack.i.l.bf16 %v3444_v57  ;;  %v3214_v50 = vpack.c.bf16 %v1715_v45, %v1713_v37  ;;  %v3138_v45 = vld [vmem:[%s4830_s5 + $0x8] sm:$0xff] }
 0x8c0   : > { %v3216_v58 = vpack.c.bf16 %v1714_v16, %v1712_v21 }
 0x8c1   : > { %v1663_v17 = vpop.permute.xlu1 %1662  ;;  %3215 = vmatprep.subr.bf16.mxu1 %v3214_v50  ;;  %v1669_v61 = vsel %vm576_vm12, %v3445_v22, %v3446_v33  ;;  %v3137_v33 = vld [vmem:[%s4829_s4 + $0x8] sm:$0xff] }
 0x8c2   : > { %v3449_v29 = vpop.permute.xlu0 %3448  ;;  %3217 = vmatpush1.bf16.msra.mxu1 %v3216_v58  ;;  %v1668_v11 = vsel %vm576_vm12, %v1663_v17, %v3445_v22  ;;  %v1717_v20 = vsel %vm624_vm11, %v4234_v62, %v1669_v61 }
 0x8c3   : > { %v3451_v5 = vunpack.i.h.bf16 %v3449_v29  ;;  %v3450_v25 = vunpack.i.l.bf16 %v3449_v29  ;;  %v1716_v35 = vsel %vm624_vm11, %v4230_v3, %v1668_v11 }
 0x8c5   : > { %v1698_v7 = vsel %vm607_vm14, %v3450_v25, %v3451_v5  ;;  %v1692_v18 = vpop.permute.xlu1 %1691 }
 0x8c6   : > { %v1697_v19 = vsel %vm607_vm14, %v1692_v18, %v3450_v25  ;;  %v1707_v54 = vpop.permute.xlu0 %1706  ;;  %v1719_v40 = vsel %vm624_vm11, %v1682_v1, %v1698_v7 }
 0x8c7   : > { %v1718_v14 = vsel %vm624_vm11, %v1681_v63, %v1697_v19  ;;  %v3218_v21 = vpack.c.bf16 %v1719_v40, %v1717_v20 }
 0x8c8   : > { %v3220_v43 = vpack.c.bf16 %v1718_v14, %v1716_v35 }
 0x8c9   : > { %v1709_v57 = vpop.permute.xlu1 %1708  ;;  %3219 = vmatprep.subr.bf16.mxu1 %v3218_v21 }
 0x8ca   : > { %v1711_v37 = vsel %vm621_vm15, %v1707_v54, %v1709_v57  ;;  %v1705_v52 = vpop.permute.xlu0 %1704  ;;  %3221 = vmatpush1.bf16.msra.mxu1 %v3220_v43 }
 0x8cb   : > { %3139 = vmatprep.subr.msk.mxu1 %vm624_vm11, %v1711_v37  ;;  %v1710_v16 = vsel %vm621_vm15, %v1705_v52, %v1707_v54 }
 0x8ce   : > { %3140 = vmatpush1.msk.msra.mxu1 %vm624_vm11, %v1710_v16 }
 0x8cf   : > { %3223 = vmatprep.subr.bf16.mxu1 %v4191_v24  ;;  %3141 = vmatmul.mubr.msk.f32.vlgmr.msra.gmra.mrb[2].mxu1 %vm640_vm1, %v3138_v45  ;;  %v1891_v24 = vrot.slane %v4230_v3, 4 }
 0x8d0   : > { %3225 = vmatpush1.bf16.msra.mxu1 %v4193_v12  ;;  %1869 = vmatprep.mubr.f32.mxu1 %v3598_v42  ;;  %v1892_v12 = vrot.slane %v4234_v62, 4 }
 0x8d1   : > { %3227 = vmatprep.subr.bf16.mxu1 %v4209_v26  ;;  %v1895_v26 = vsel %vm624_vm11, %v4108_v4, %v1891_v24 }
 0x8d4   : > { %3229 = vmatpush1.bf16.msra.mxu1 %v4211_v47  ;;  %v1896_v47 = vsel %vm624_vm11, %v4111_v8, %v1892_v12 }
 0x8d5   : > { %3142 = vmatprep.subr.msk.mxu1 %vm624_vm11, %v4215_v23  ;;  %v1899_v23 = vrot.slane %v1895_v26, 1  ;;  %v1900_v22 = vrot.slane %v1896_v47, 1 }
 0x8d7   : > { %v1903_v50 = vmax.f32 %v1895_v26, %v1899_v23  ;;  %v1904_v58 = vmax.f32 %v1896_v47, %v1900_v22 }
 0x8d8   : > { %3143 = vmatpush1.msk.msra.mxu1 %vm624_vm11, %v4224_v53 }
 0x8d9   : > { %3144 = vmatmul.mubr.msk.f32.vlgmr.msra.gmra.mrb[2].mxu1 %vm640_vm1, %v3137_v33  ;;  %v1907_v61 = vrot.slane %v1903_v50, 2  ;;  %v1908_v5 = vrot.slane %v1904_v58, 2 }
 0x8da   : > { %2648 = vmatprep.mubr.f32.mxu1 %v3598_v42  ;;  %v1881_v6 = vpop.permute.xlu1 %1880 }
 0x8db   : > { %v1911_v7 = vmax.f32 %v1903_v50, %v1907_v61  ;;  %v1912_v63 = vmax.f32 %v1904_v58, %v1908_v5 }
 0x8dd   : > { %v1931_v35 = vrot.slane %v1911_v7, 3  ;;  %v1932_v21 = vrot.slane %v1912_v63, 3 }
 0x8df   : > { %v1945_v45 = vsel %vm1091_vm6, %v1911_v7, %v1931_v35  ;;  %v1946_v24 = vsel %vm1091_vm6, %v1912_v63, %v1932_v21 }
 0x9ac   : > { %v1871_v53 = vpop.f32.mrb[2].mxu1 }
 0x9ad   : > { %v1883_v60 = vadd.f32 %v1881_v6, %v1871_v53  ;;  %v1873_v17 = vpop.f32.mrb[3].mxu1 }
 0x9ae   : > { %v1884_v29 = vadd.f32 %v1881_v6, %v1873_v17 }
 0x9af   : > { %vm1885_vm4 = vcmp.ge.f32.partialorder %v1883_v60, 0.0  ;;  %v1887_v3 = vmul.f32 0.25, %v1883_v60 }
 0x9b0   : > { %vm1886_vm5 = vcmp.ge.f32.partialorder %v1884_v29, 0.0  ;;  %v1888_v62 = vmul.f32 0.25, %v1884_v29 }
 0x9b1   : > { %v1889_v25 = vsel %vm1885_vm4, %v1883_v60, %v1887_v3 }
 0x9b2   : > { %v1915_v11 = vrot.slane %v1889_v25, 1  ;;  %v1890_v1 = vsel %vm1886_vm5, %v1884_v29, %v1888_v62 }
 0x9b3   : > { %v1916_v18 = vrot.slane %v1890_v1, 1 }
 0x9b4   : > { %v1919_v19 = vmax.f32 %v1889_v25, %v1915_v11 }
 0x9b5   : > { %v1920_v54 = vmax.f32 %v1890_v1, %v1916_v18 }
 0x9b6   : > { %v1923_v20 = vrot.slane %v1919_v19, 2 }
 0x9b7   : > { %v1924_v40 = vrot.slane %v1920_v54, 2 }
 0x9b8   : > { %v1927_v14 = vmax.f32 %v1919_v19, %v1923_v20 }
 0x9b9   : > { %v1928_v43 = vmax.f32 %v1920_v54, %v1924_v40 }
 0x9ba   : > { %v1937_v57 = vrot.slane %v1927_v14, 6  ;;  %v1941_v37 = vrot.slane %v1927_v14, 1 }
 0x9bb   : > { %v1938_v52 = vrot.slane %v1928_v43, 6  ;;  %v1942_v16 = vrot.slane %v1928_v43, 1 }
 0x9bc   : > { %v1947_v33 = vsel %vm1094_vm7, %v1945_v45, %v1937_v57 }
 0x9bd   : > { %v4356_v12 = vsel %vm1097_vm2, %v1947_v33, %v1941_v37  ;;  %v1948_v26 = vsel %vm1094_vm7, %v1946_v24, %v1938_v52 }
 0x9be   : > { %1955 = vrot.lane.b32.xlu0 %v4356_v12, %s3584_s19  ;;  %v4362_v47 = vsel %vm1097_vm2, %v1948_v26, %v1942_v16 }
 0x9bf   : > { %1957 = vrot.lane.b32.xlu1 %v4362_v47, %s3584_s19 }
 0xa30   : > { %v1956_v23 = vpop.permute.xlu0 %1955 }
 0xa31   : > { %v4367_v22 = vsel %vm344_vm0, 0.0, %v1956_v23  ;;  %v1958_v50 = vpop.permute.xlu1 %1957 }
 0xa32   : > { %v4370_v58 = vsel %vm344_vm0, %v1956_v23, %v1958_v50  ;;  %v1964_v6 = vsel %vm344_vm0, %v1958_v50, 0.0  ;;  %v1970_v53 = vmul.f32 %v4367_v22, %v3707_v36  ;;  %v1979_v11 = vmul.f32 %v4367_v22, %v3754_v56 }
 0xa33   : > { %v1971_v60 = vmul.f32 %v4370_v58, %v3721_v41  ;;  %v1972_v17 = vmul.f32 %v1964_v6, %v3712_v38  ;;  %v1968_v29 = vmul.f32 %v4370_v58, %v3736_v48  ;;  %v1969_v61 = vmul.f32 %v1964_v6, %v3700_v32 }
 0xa34   : > { %2007 = vrot.lane.b32.xlu0 %v1970_v53, %s3592_s12  ;;  %v1980_v5 = vmul.f32 %v4370_v58, %v3766_v0  ;;  %v1981_v62 = vmul.f32 %v1964_v6, %v3760_v59  ;;  %v1974_v25 = vmul.f32 %v4370_v58, %v3751_v55  ;;  %v1975_v18 = vmul.f32 %v1964_v6, %v3702_v34 }
 0xa35   : > { %v3452_v3 = vpack.i.bf16 %v1972_v17, %v1971_v60  ;;  %v1992_v1 = vrot.slane %v1968_v29, 4  ;;  %v1993_v7 = vrot.slane %v1969_v61, 4  ;;  %v1967_v19 = vmul.f32 %v4367_v22, %v3696_v30 }
 0xa36   : > { %v3457_v63 = vpack.i.bf16 %v1981_v62, %v1980_v5  ;;  %v2021_v54 = vrot.slane %v1974_v25, 4  ;;  %v2022_v40 = vrot.slane %v1975_v18, 4  ;;  %v1977_v35 = vmul.f32 %v4370_v58, %v3772_v2  ;;  %v3147_v62 = vld [vmem:[%s4833_s8 + $0x4] sm:$0xf] }
 0xa37   : > { %3453 = vrot.lane.b32.xlu1 %v3452_v3, %s3592_s12  ;;  %v3462_v20 = vpack.i.bf16 %v1993_v7, %v1992_v1  ;;  %v1978_v14 = vmul.f32 %v1964_v6, %v3732_v46  ;;  %v1991_v21 = vrot.slane %v1967_v19, 4  ;;  %v1973_v43 = vmul.f32 %v4367_v22, %v3698_v31 }
 0xa38   : > { %2052 = vrot.lane.b32.xlu0 %v1979_v11, %s3595_s17  ;;  %v1983_v57 = vmul.f32 %v4370_v58, %v3786_v15  ;;  %v3467_v37 = vpack.i.bf16 %v2022_v40, %v2021_v54  ;;  %v2037_v52 = vrot.slane %v1977_v35, 4  ;;  %v1984_v16 = vmul.f32 %v1964_v6, %v3741_v51 }
 0xa39   : > { %v2038_v45 = vrot.slane %v1978_v14, 4  ;;  %v2020_v33 = vrot.slane %v1973_v43, 4  ;;  %v1976_v24 = vmul.f32 %v4367_v22, %v3728_v44  ;;  %v1982_v60 = vmul.f32 %v4367_v22, %v3739_v49 }
 0xa3a   : > { %v2066_v23 = vrot.slane %v1983_v57, 4  ;;  %v2067_v50 = vrot.slane %v1984_v16, 4  ;;  %v1986_v61 = vmul.f32 %v4370_v58, %v3808_v39  ;;  %v1987_v3 = vmul.f32 %v1964_v6, %v3798_v27 }
 0xa3b   : > { %3458 = vrot.lane.b32.xlu1 %v3457_v63, %s3595_s17  ;;  %v3472_v26 = vpack.i.bf16 %v2038_v45, %v2037_v52  ;;  %v2036_v53 = vrot.slane %v1976_v24, 4  ;;  %v2065_v29 = vrot.slane %v1982_v60, 4  ;;  %v1985_v5 = vmul.f32 %v4367_v22, %v3800_v28 }
 0xa3c   : > { %3463 = vrot.lane.b32.xlu0 %v3462_v20, %s3593_s14  ;;  %v3477_v17 = vpack.i.bf16 %v2067_v50, %v2066_v23  ;;  %v1965_v57 = vmul.f32 %v4367_v22, %v3678_v9 }
 0xa3f   : > { %1994 = vrot.lane.b32.xlu1 %v1991_v21, %s3593_s14 }
 0xa40   : > { %3468 = vrot.lane.b32.xlu0 %v3467_v37, %s3594_s15  ;;  %v1966_v37 = vmul.f32 %v4370_v58, %v3680_v10 }
 0xa43   : > { %2023 = vrot.lane.b32.xlu1 %v2020_v33, %s3594_s15 }
 0xa44   : > { %3473 = vrot.lane.b32.xlu0 %v3472_v26, %s3596_s18 }
 0xa47   : > { %2039 = vrot.lane.b32.xlu1 %v2036_v53, %s3596_s18 }
 0xa48   : > { %3478 = vrot.lane.b32.xlu0 %v3477_v17, %s3597_s20 }
 0xa4b   : > { %2068 = vrot.lane.b32.xlu1 %v2065_v29, %s3597_s20 }
 0xa4c   : > { %2083 = vrot.lane.b32.xlu0 %v1986_v61, %s3599_s21 }
 0xa4f   : > { %2085 = vrot.lane.b32.xlu1 %v1987_v3, %s3599_s21 }
 0xa50   : > { %2081 = vrot.lane.b32.xlu0 %v1985_v5, %s3599_s21 }
 0xa53   : > { %2101 = vperm.xlu1 %3331, %v3147_v62  }
 0xaa6   : > { %v2008_v25 = vpop.permute.xlu0 %2007 }
 0xaa9   : > { %v3454_v11 = vpop.permute.xlu1 %3453 }
 0xaaa   : > { %v2053_v1 = vpop.permute.xlu0 %2052  ;;  %v3456_v6 = vunpack.i.h.bf16 %v3454_v11  ;;  %v3455_v54 = vunpack.i.l.bf16 %v3454_v11 }
 0xaac   : > { %v2014_v52 = vsel %vm541_vm9, %v3455_v54, %v3456_v6  ;;  %v2013_v33 = vsel %vm541_vm9, %v2008_v25, %v3455_v54 }
 0xaad   : > { %v3459_v7 = vpop.permute.xlu1 %3458 }
 0xaae   : > { %v3464_v18 = vpop.permute.xlu0 %3463  ;;  %v3461_v61 = vunpack.i.h.bf16 %v3459_v7  ;;  %v3460_v3 = vunpack.i.l.bf16 %v3459_v7 }
 0xaaf   : > { %v3466_v63 = vunpack.i.h.bf16 %v3464_v18  ;;  %v3465_v19 = vunpack.i.l.bf16 %v3464_v18 }
 0xab1   : > { %v1995_v20 = vpop.permute.xlu1 %1994  ;;  %v2001_v35 = vsel %vm527_vm8, %v3465_v19, %v3466_v63 }
 0xab2   : > { %v3469_v40 = vpop.permute.xlu0 %3468  ;;  %v2000_v14 = vsel %vm527_vm8, %v1995_v20, %v3465_v19  ;;  %v2090_v50 = vsel %vm624_vm11, %v1966_v37, %v2001_v35  ;;  %v2059_v19 = vsel %vm590_vm13, %v3460_v3, %v3461_v61  ;;  %v2058_v20 = vsel %vm590_vm13, %v2053_v1, %v3460_v3 }
 0xab3   : > { %v3471_v21 = vunpack.i.h.bf16 %v3469_v40  ;;  %v3470_v43 = vunpack.i.l.bf16 %v3469_v40  ;;  %v2089_v24 = vsel %vm624_vm11, %v1965_v57, %v2000_v14 }
 0xab5   : > { %v2030_v45 = vsel %vm558_vm10, %v3470_v43, %v3471_v21  ;;  %v2024_v16 = vpop.permute.xlu1 %2023 }
 0xab6   : > { %v2029_v26 = vsel %vm558_vm10, %v2024_v16, %v3470_v43  ;;  %v3474_v23 = vpop.permute.xlu0 %3473  ;;  %v2092_v53 = vsel %vm624_vm11, %v2014_v52, %v2030_v45 }
 0xab7   : > { %v2091_v22 = vsel %vm624_vm11, %v2013_v33, %v2029_v26  ;;  %v3476_v60 = vunpack.i.h.bf16 %v3474_v23  ;;  %v3475_v58 = vunpack.i.l.bf16 %v3474_v23  ;;  %v3230_v17 = vpack.c.bf16 %v2092_v53, %v2090_v50 }
 0xab8   : > { %v3232_v29 = vpack.c.bf16 %v2091_v22, %v2089_v24 }
 0xab9   : > { %v2040_v5 = vpop.permute.xlu1 %2039  ;;  %3231 = vmatprep.subr.bf16.mxu0 %v3230_v17  ;;  %v2046_v25 = vsel %vm576_vm12, %v3475_v58, %v3476_v60 }
 0xaba   : > { %v3479_v62 = vpop.permute.xlu0 %3478  ;;  %3233 = vmatpush1.bf16.msra.mxu0 %v3232_v29  ;;  %v2045_v63 = vsel %vm576_vm12, %v2040_v5, %v3475_v58  ;;  %v2094_v35 = vsel %vm624_vm11, %v4362_v47, %v2046_v25  ;;  %v3146_v47 = vld [vmem:[%s4832_s7 + $0x4] sm:$0xf] }
 0xabb   : > { %v3481_v11 = vunpack.i.h.bf16 %v3479_v62  ;;  %v3480_v18 = vunpack.i.l.bf16 %v3479_v62  ;;  %v2093_v21 = vsel %vm624_vm11, %v4356_v12, %v2045_v63 }
 0xabd   : > { %v2075_v6 = vsel %vm607_vm14, %v3480_v18, %v3481_v11  ;;  %v2069_v54 = vpop.permute.xlu1 %2068 }
 0xabe   : > { %v2074_v40 = vsel %vm607_vm14, %v2069_v54, %v3480_v18  ;;  %v2084_v7 = vpop.permute.xlu0 %2083  ;;  %v2096_v14 = vsel %vm624_vm11, %v2059_v19, %v2075_v6 }
 0xabf   : > { %v2095_v43 = vsel %vm624_vm11, %v2058_v20, %v2074_v40  ;;  %v3234_v57 = vpack.c.bf16 %v2096_v14, %v2094_v35 }
 0xac0   : > { %v3236_v37 = vpack.c.bf16 %v2095_v43, %v2093_v21 }
 0xac1   : > { %v2086_v52 = vpop.permute.xlu1 %2085  ;;  %3235 = vmatprep.subr.bf16.mxu0 %v3234_v57 }
 0xac2   : > { %v2088_v45 = vsel %vm621_vm15, %v2084_v7, %v2086_v52  ;;  %v2082_v1 = vpop.permute.xlu0 %2081  ;;  %3237 = vmatpush1.bf16.msra.mxu0 %v3236_v37 }
 0xac3   : > { %3148 = vmatprep.subr.msk.mxu0 %vm624_vm11, %v2088_v45  ;;  %v2087_v16 = vsel %vm621_vm15, %v2082_v1, %v2084_v7 }
 0xac6   : > { %3149 = vmatpush1.msk.msra.mxu0 %vm624_vm11, %v2087_v16 }
 0xac7   : > { %3150 = vmatmul.mubr.msk.f32.vlgmr.msra.gmra.mrb[6].mxu0 %vm640_vm1, %v3146_v47 }
 0xac8   : > { %2416 = vmatprep.mubr.f32.mxu0 %v3598_v42 }
 0xad2   : > { %v2102_v12 = vpop.permute.xlu1 %2101 }
 0xb9a   : > { %v2177_v33 = vpop.f32.mrb[6].mxu0 }
 0xb9b   : > { %v2178_v24 = vadd.f32 %v2177_v33, %v2102_v12  ;;  %v2179_v26 = vpop.f32.mrb[7].mxu0 }
 0xb9c   : > { %v2180_v23 = vadd.f32 %v2179_v26, %v2102_v12 }
 0xb9d   : > { %vm2182_vm3 = vcmp.ge.f32.partialorder %v2178_v24, 0.0  ;;  %v2184_v50 = vmul.f32 0.25, %v2178_v24 }
 0xb9e   : > { %vm2183_vm4 = vcmp.ge.f32.partialorder %v2180_v23, 0.0  ;;  %v2185_v53 = vmul.f32 0.25, %v2180_v23 }
 0xb9f   : > { %v2186_v22 = vsel %vm2182_vm3, %v2178_v24, %v2184_v50 }
 0xba0   : > { %v2188_v60 = vmul.f32 0.2, %v2186_v22  ;;  %v2187_v58 = vsel %vm2183_vm4, %v2180_v23, %v2185_v53 }
 0xba1   : > { %v2189_v17 = vmul.f32 0.2, %v2187_v58 }
 0xba2   : > { %v4462_v29 = vadd.f32 %v2188_v60, %v4108_v4 }
 0xba3   : > { %v4465_v61 = vadd.f32 %v2189_v17, %v4111_v8 }
 0xba4   : > { %2194 = vrot.lane.b32.xlu0 %v4462_v29, %s3584_s19 }
 0xba5   : > { %2196 = vrot.lane.b32.xlu1 %v4465_v61, %s3584_s19 }
 0xc16   : > { %v2195_v3 = vpop.permute.xlu0 %2194 }
 0xc17   : > { %v4472_v5 = vsel %vm344_vm0, 0.0, %v2195_v3  ;;  %v2197_v62 = vpop.permute.xlu1 %2196 }
 0xc18   : > { %v4475_v25 = vsel %vm344_vm0, %v2195_v3, %v2197_v62  ;;  %v2203_v4 = vsel %vm344_vm0, %v2197_v62, 0.0  ;;  %v2209_v8 = vmul.f32 %v4472_v5, %v3707_v36  ;;  %v2218_v7 = vmul.f32 %v4472_v5, %v3754_v56 }
 0xc19   : > { %v2210_v11 = vmul.f32 %v4475_v25, %v3721_v41  ;;  %v2211_v18 = vmul.f32 %v2203_v4, %v3712_v38  ;;  %v2207_v63 = vmul.f32 %v4475_v25, %v3736_v48  ;;  %v2208_v19 = vmul.f32 %v2203_v4, %v3700_v32 }
 0xc1a   : > { %2246 = vrot.lane.b32.xlu0 %v2209_v8, %s3592_s12  ;;  %v2219_v54 = vmul.f32 %v4475_v25, %v3766_v0  ;;  %v2220_v20 = vmul.f32 %v2203_v4, %v3760_v59  ;;  %v2213_v40 = vmul.f32 %v4475_v25, %v3751_v55  ;;  %v2214_v21 = vmul.f32 %v2203_v4, %v3702_v34 }
 0xc1b   : > { %v3482_v6 = vpack.i.bf16 %v2211_v18, %v2210_v11  ;;  %v2231_v35 = vrot.slane %v2207_v63, 4  ;;  %v2232_v14 = vrot.slane %v2208_v19, 4  ;;  %v2206_v57 = vmul.f32 %v4472_v5, %v3696_v30 }
 0xc1c   : > { %v3487_v43 = vpack.i.bf16 %v2220_v20, %v2219_v54  ;;  %v2260_v37 = vrot.slane %v2213_v40, 4  ;;  %v2261_v45 = vrot.slane %v2214_v21, 4  ;;  %v2216_v1 = vmul.f32 %v4475_v25, %v3772_v2 }
 0xc1d   : > { %3483 = vrot.lane.b32.xlu1 %v3482_v6, %s3592_s12  ;;  %v3492_v52 = vpack.i.bf16 %v2232_v14, %v2231_v35  ;;  %v2217_v47 = vmul.f32 %v2203_v4, %v3732_v46  ;;  %v2230_v16 = vrot.slane %v2206_v57, 4  ;;  %v2212_v12 = vmul.f32 %v4472_v5, %v3698_v31  ;;  %v3152_v6 = vld [vmem:[%s4828_s3 + $0x8] sm:$0xf] }
 0xc1e   : > { %2291 = vrot.lane.b32.xlu0 %v2218_v7, %s3595_s17  ;;  %v2222_v33 = vmul.f32 %v4475_v25, %v3786_v15  ;;  %v3497_v24 = vpack.i.bf16 %v2261_v45, %v2260_v37  ;;  %v2276_v26 = vrot.slane %v2216_v1, 4  ;;  %v2223_v50 = vmul.f32 %v2203_v4, %v3741_v51 }
 0xc1f   : > { %v2277_v23 = vrot.slane %v2217_v47, 4  ;;  %v2259_v53 = vrot.slane %v2212_v12, 4  ;;  %v2215_v22 = vmul.f32 %v4472_v5, %v3728_v44  ;;  %v2221_v62 = vmul.f32 %v4472_v5, %v3739_v49 }
 0xc20   : > { %v2305_v58 = vrot.slane %v2222_v33, 4  ;;  %v2306_v17 = vrot.slane %v2223_v50, 4  ;;  %v2225_v18 = vmul.f32 %v4475_v25, %v3808_v39  ;;  %v2226_v63 = vmul.f32 %v2203_v4, %v3798_v27 }
 0xc21   : > { %3488 = vrot.lane.b32.xlu1 %v3487_v43, %s3595_s17  ;;  %v3502_v60 = vpack.i.bf16 %v2277_v23, %v2276_v26  ;;  %v2275_v3 = vrot.slane %v2215_v22, 4  ;;  %v2304_v11 = vrot.slane %v2221_v62, 4  ;;  %v2224_v19 = vmul.f32 %v4472_v5, %v3800_v28 }
 0xc22   : > { %3493 = vrot.lane.b32.xlu0 %v3492_v52, %s3593_s14  ;;  %v3507_v8 = vpack.i.bf16 %v2306_v17, %v2305_v58  ;;  %v2205_v12 = vmul.f32 %v4475_v25, %v3680_v10 }
 0xc25   : > { %2233 = vrot.lane.b32.xlu1 %v2230_v16, %s3593_s14  ;;  %v2204_v16 = vmul.f32 %v4472_v5, %v3678_v9 }
 0xc26   : > { %3498 = vrot.lane.b32.xlu0 %v3497_v24, %s3594_s15 }
 0xc29   : > { %2262 = vrot.lane.b32.xlu1 %v2259_v53, %s3594_s15 }
 0xc2a   : > { %3503 = vrot.lane.b32.xlu0 %v3502_v60, %s3596_s18 }
 0xc2d   : > { %2278 = vrot.lane.b32.xlu1 %v2275_v3, %s3596_s18 }
 0xc2e   : > { %3508 = vrot.lane.b32.xlu0 %v3507_v8, %s3597_s20 }
 0xc31   : > { %2307 = vrot.lane.b32.xlu1 %v2304_v11, %s3597_s20 }
 0xc32   : > { %2322 = vrot.lane.b32.xlu0 %v2225_v18, %s3599_s21 }
 0xc35   : > { %2324 = vrot.lane.b32.xlu1 %v2226_v63, %s3599_s21 }
 0xc36   : > { %2320 = vrot.lane.b32.xlu0 %v2224_v19, %s3599_s21 }
 0xc39   : > { %2342 = vperm.xlu1 %3331, %v3152_v6  }
 0xc8c   : > { %v2247_v54 = vpop.permute.xlu0 %2246 }
 0xc8f   : > { %v3484_v20 = vpop.permute.xlu1 %3483 }
 0xc90   : > { %v2292_v40 = vpop.permute.xlu0 %2291  ;;  %v3486_v4 = vunpack.i.h.bf16 %v3484_v20  ;;  %v3485_v43 = vunpack.i.l.bf16 %v3484_v20 }
 0xc92   : > { %v2253_v33 = vsel %vm541_vm9, %v3485_v43, %v3486_v4  ;;  %v2252_v23 = vsel %vm541_vm9, %v2247_v54, %v3485_v43 }
 0xc93   : > { %v3489_v7 = vpop.permute.xlu1 %3488 }
 0xc94   : > { %v3494_v35 = vpop.permute.xlu0 %3493  ;;  %v3491_v8 = vunpack.i.h.bf16 %v3489_v7  ;;  %v3490_v11 = vunpack.i.l.bf16 %v3489_v7 }
 0xc95   : > { %v3496_v14 = vunpack.i.h.bf16 %v3494_v35  ;;  %v3495_v21 = vunpack.i.l.bf16 %v3494_v35 }
 0xc96   : > { %v2298_v35 = vsel %vm590_vm13, %v3490_v11, %v3491_v8  ;;  %v2297_v4 = vsel %vm590_vm13, %v2292_v40, %v3490_v11 }
 0xc97   : > { %v2234_v57 = vpop.permute.xlu1 %2233  ;;  %v2240_v52 = vsel %vm527_vm8, %v3495_v21, %v3496_v14 }
 0xc98   : > { %v3499_v37 = vpop.permute.xlu0 %3498  ;;  %v2239_v45 = vsel %vm527_vm8, %v2234_v57, %v3495_v21  ;;  %v2329_v60 = vsel %vm624_vm11, %v2205_v12, %v2240_v52 }
 0xc99   : > { %v3501_v1 = vunpack.i.h.bf16 %v3499_v37  ;;  %v3500_v47 = vunpack.i.l.bf16 %v3499_v37  ;;  %v2328_v50 = vsel %vm624_vm11, %v2204_v16, %v2239_v45 }
 0xc9b   : > { %v2269_v24 = vsel %vm558_vm10, %v3500_v47, %v3501_v1  ;;  %v2263_v26 = vpop.permute.xlu1 %2262 }
 0xc9c   : > { %v2268_v53 = vsel %vm558_vm10, %v2263_v26, %v3500_v47  ;;  %v3504_v22 = vpop.permute.xlu0 %3503  ;;  %v2331_v58 = vsel %vm624_vm11, %v2253_v33, %v2269_v24  ;;  %v3151_v33 = vld [vmem:[%s4827_s2 + $0x8] sm:$0xf] }
 0xc9d   : > { %v2330_v5 = vsel %vm624_vm11, %v2252_v23, %v2268_v53  ;;  %v3506_v17 = vunpack.i.h.bf16 %v3504_v22  ;;  %v3505_v25 = vunpack.i.l.bf16 %v3504_v22  ;;  %v4545_v3 = vpack.c.bf16 %v2331_v58, %v2329_v60 }
 0xc9e   : > { %v4547_v62 = vpack.c.bf16 %v2330_v5, %v2328_v50 }
 0xc9f   : > { %v2279_v18 = vpop.permute.xlu1 %2278  ;;  %3239 = vmatprep.subr.bf16.mxu0 %v4545_v3  ;;  %v2285_v19 = vsel %vm576_vm12, %v3505_v25, %v3506_v17 }
 0xca0   : > { %v3509_v63 = vpop.permute.xlu0 %3508  ;;  %3241 = vmatpush1.bf16.msra.mxu0 %v4547_v62  ;;  %v2284_v20 = vsel %vm576_vm12, %v2279_v18, %v3505_v25  ;;  %v2333_v57 = vsel %vm624_vm11, %v4465_v61, %v2285_v19 }
 0xca1   : > { %v3511_v6 = vunpack.i.h.bf16 %v3509_v63  ;;  %v3510_v54 = vunpack.i.l.bf16 %v3509_v63  ;;  %v2332_v52 = vsel %vm624_vm11, %v4462_v29, %v2284_v20 }
 0xca3   : > { %v2314_v14 = vsel %vm607_vm14, %v3510_v54, %v3511_v6  ;;  %v2308_v21 = vpop.permute.xlu1 %2307 }
 0xca4   : > { %v2313_v7 = vsel %vm607_vm14, %v2308_v21, %v3510_v54  ;;  %v2323_v43 = vpop.permute.xlu0 %2322  ;;  %v2335_v37 = vsel %vm624_vm11, %v2298_v35, %v2314_v14 }
 0xca5   : > { %v2334_v45 = vsel %vm624_vm11, %v2297_v4, %v2313_v7  ;;  %v4563_v1 = vpack.c.bf16 %v2335_v37, %v2333_v57 }
 0xca6   : > { %v4565_v47 = vpack.c.bf16 %v2334_v45, %v2332_v52 }
 0xca7   : > { %v2325_v16 = vpop.permute.xlu1 %2324  ;;  %3243 = vmatprep.subr.bf16.mxu0 %v4563_v1 }
 0xca8   : > { %v4569_v40 = vsel %vm621_vm15, %v2323_v43, %v2325_v16  ;;  %v2321_v12 = vpop.permute.xlu0 %2320  ;;  %3245 = vmatpush1.bf16.msra.mxu0 %v4565_v47 }
 0xca9   : > { %3153 = vmatprep.subr.msk.mxu0 %vm624_vm11, %v4569_v40  ;;  %v4578_v24 = vsel %vm621_vm15, %v2321_v12, %v2323_v43 }
 0xcac   : > { %3154 = vmatpush1.msk.msra.mxu0 %vm624_vm11, %v4578_v24 }
 0xcad   : > { %3155 = vmatmul.mubr.msk.f32.vlgmr.msra.gmra.mrb[8].mxu0 %vm640_vm1, %v3151_v33 }
 0xcae   : > { %3028 = vmatprep.mubr.f32.mxu0 %v3598_v42 }
 0xcb8   : > { %v2343_v26 = vpop.permute.xlu1 %2342 }
 0xd80   : > { %v2418_v23 = vpop.f32.mrb[8].mxu0 }
 0xd81   : > { %v2419_v50 = vadd.f32 %v2418_v23, %v2343_v26  ;;  %v2420_v53 = vpop.f32.mrb[9].mxu0 }
 0xd82   : > { %v2421_v22 = vadd.f32 %v2420_v53, %v2343_v26 }
 0xd83   : > { %vm2423_vm5 = vcmp.ge.f32.partialorder %v2419_v50, 0.0  ;;  %v2425_v60 = vmul.f32 0.25, %v2419_v50 }
 0xd84   : > { %vm2424_vm3 = vcmp.ge.f32.partialorder %v2421_v22, 0.0  ;;  %v2426_v58 = vmul.f32 0.25, %v2421_v22 }
 0xd85   : > { %v4584_v5 = vsel %vm2423_vm5, %v2419_v50, %v2425_v60 }
 0xd86   : > { %2431 = vrot.lane.b32.xlu0 %v4584_v5, %s3584_s19  ;;  %v4588_v17 = vsel %vm2424_vm3, %v2421_v22, %v2426_v58 }
 0xd87   : > { %2433 = vrot.lane.b32.xlu1 %v4588_v17, %s3584_s19 }
 0xdf8   : > { %v2432_v25 = vpop.permute.xlu0 %2431 }
 0xdf9   : > { %v4593_v8 = vsel %vm344_vm0, 0.0, %v2432_v25  ;;  %v2434_v11 = vpop.permute.xlu1 %2433 }
 0xdfa   : > { %v4596_v18 = vsel %vm344_vm0, %v2432_v25, %v2434_v11  ;;  %v2440_v63 = vsel %vm344_vm0, %v2434_v11, 0.0  ;;  %v2446_v19 = vmul.f32 %v4593_v8, %v3707_v36  ;;  %v2455_v43 = vmul.f32 %v4593_v8, %v3754_v56 }
 0xdfb   : > { %v2447_v6 = vmul.f32 %v4596_v18, %v3721_v41  ;;  %v2448_v54 = vmul.f32 %v2440_v63, %v3712_v38  ;;  %v2444_v20 = vmul.f32 %v4596_v18, %v3736_v48  ;;  %v2445_v35 = vmul.f32 %v2440_v63, %v3700_v32 }
 0xdfc   : > { %2483 = vrot.lane.b32.xlu0 %v2446_v19, %s3592_s12  ;;  %v2456_v21 = vmul.f32 %v4596_v18, %v3766_v0  ;;  %v2457_v4 = vmul.f32 %v2440_v63, %v3760_v59  ;;  %v2450_v7 = vmul.f32 %v4596_v18, %v3751_v55  ;;  %v2451_v52 = vmul.f32 %v2440_v63, %v3702_v34 }
 0xdfd   : > { %v3512_v14 = vpack.i.bf16 %v2448_v54, %v2447_v6  ;;  %v2468_v57 = vrot.slane %v2444_v20, 4  ;;  %v2469_v37 = vrot.slane %v2445_v35, 4  ;;  %v2443_v16 = vmul.f32 %v4593_v8, %v3696_v30 }
 0xdfe   : > { %v3517_v45 = vpack.i.bf16 %v2457_v4, %v2456_v21  ;;  %v2497_v12 = vrot.slane %v2450_v7, 4  ;;  %v2498_v26 = vrot.slane %v2451_v52, 4  ;;  %v2453_v23 = vmul.f32 %v4596_v18, %v3772_v2 }
 0xdff   : > { %3513 = vrot.lane.b32.xlu1 %v3512_v14, %s3592_s12  ;;  %v3522_v33 = vpack.i.bf16 %v2469_v37, %v2468_v57  ;;  %v2454_v50 = vmul.f32 %v2440_v63, %v3732_v46  ;;  %v2467_v53 = vrot.slane %v2443_v16, 4  ;;  %v2449_v22 = vmul.f32 %v4593_v8, %v3698_v31 }
 0xe00   : > { %2528 = vrot.lane.b32.xlu0 %v2455_v43, %s3595_s17  ;;  %v2459_v60 = vmul.f32 %v4596_v18, %v3786_v15  ;;  %v3527_v58 = vpack.i.bf16 %v2498_v26, %v2497_v12  ;;  %v2513_v25 = vrot.slane %v2453_v23, 4  ;;  %v2460_v19 = vmul.f32 %v2440_v63, %v3741_v51 }
 0xe01   : > { %v2514_v11 = vrot.slane %v2454_v50, 4  ;;  %v2496_v6 = vrot.slane %v2449_v22, 4  ;;  %v2452_v54 = vmul.f32 %v4593_v8, %v3728_v44  ;;  %v2458_v4 = vmul.f32 %v4593_v8, %v3739_v49 }
 0xe02   : > { %v2542_v35 = vrot.slane %v2459_v60, 4  ;;  %v2543_v14 = vrot.slane %v2460_v19, 4  ;;  %v2462_v57 = vmul.f32 %v4596_v18, %v3808_v39  ;;  %v2463_v37 = vmul.f32 %v2440_v63, %v3798_v27 }
 0xe03   : > { %3518 = vrot.lane.b32.xlu1 %v3517_v45, %s3595_s17  ;;  %v3532_v20 = vpack.i.bf16 %v2514_v11, %v2513_v25  ;;  %v2512_v21 = vrot.slane %v2452_v54, 4  ;;  %v2541_v43 = vrot.slane %v2458_v4, 4  ;;  %v2461_v52 = vmul.f32 %v4593_v8, %v3800_v28  ;;  %v3164_v45 = vld [vmem:[%s4831_s6 + $0x10] sm:$0xff] }
 0xe04   : > { %3523 = vrot.lane.b32.xlu0 %v3522_v33, %s3593_s14  ;;  %v3537_v7 = vpack.i.bf16 %v2543_v14, %v2542_v35  ;;  %v2441_v54 = vmul.f32 %v4593_v8, %v3678_v9 }
 0xe07   : > { %2470 = vrot.lane.b32.xlu1 %v2467_v53, %s3593_s14 }
 0xe08   : > { %3528 = vrot.lane.b32.xlu0 %v3527_v58, %s3594_s15 }
 0xe0b   : > { %2499 = vrot.lane.b32.xlu1 %v2496_v6, %s3594_s15 }
 0xe0c   : > { %3533 = vrot.lane.b32.xlu0 %v3532_v20, %s3596_s18  ;;  %v2442_v20 = vmul.f32 %v4596_v18, %v3680_v10 }
 0xe0f   : > { %2515 = vrot.lane.b32.xlu1 %v2512_v21, %s3596_s18 }
 0xe10   : > { %3538 = vrot.lane.b32.xlu0 %v3537_v7, %s3597_s20 }
 0xe13   : > { %2544 = vrot.lane.b32.xlu1 %v2541_v43, %s3597_s20 }
 0xe14   : > { %2559 = vrot.lane.b32.xlu0 %v2462_v57, %s3599_s21 }
 0xe17   : > { %2561 = vrot.lane.b32.xlu1 %v2463_v37, %s3599_s21 }
 0xe18   : > { %2557 = vrot.lane.b32.xlu0 %v2461_v52, %s3599_s21 }
 0xe1b   : > { %2733 = vperm.xlu1 %3331, %v3164_v45  }
 0xe6e   : > { %v2484_v16 = vpop.permute.xlu0 %2483 }
 0xe71   : > { %v3514_v12 = vpop.permute.xlu1 %3513 }
 0xe72   : > { %v2529_v33 = vpop.permute.xlu0 %2528  ;;  %v3516_v63 = vunpack.i.h.bf16 %v3514_v12  ;;  %v3515_v22 = vunpack.i.l.bf16 %v3514_v12 }
 0xe74   : > { %v2490_v35 = vsel %vm541_vm9, %v3515_v22, %v3516_v63  ;;  %v2489_v4 = vsel %vm541_vm9, %v2484_v16, %v3515_v22 }
 0xe75   : > { %v3519_v26 = vpop.permute.xlu1 %3518 }
 0xe76   : > { %v3524_v23 = vpop.permute.xlu0 %3523 }
 0xe77   : > { %v3526_v50 = vunpack.i.h.bf16 %v3524_v23  ;;  %v3525_v53 = vunpack.i.l.bf16 %v3524_v23 }
 0xe79   : > { %v2471_v60 = vpop.permute.xlu1 %2470  ;;  %v2477_v25 = vsel %vm527_vm8, %v3525_v53, %v3526_v50  ;;  %v3521_v50 = vunpack.i.h.bf16 %v3519_v26 }
 0xe7a   : > { %v3529_v58 = vpop.permute.xlu0 %3528  ;;  %v2476_v11 = vsel %vm527_vm8, %v2471_v60, %v3525_v53  ;;  %v2566_v37 = vsel %vm624_vm11, %v2442_v20, %v2477_v25  ;;  %v3520_v53 = vunpack.i.l.bf16 %v3519_v26 }
 0xe7b   : > { %v3531_v19 = vunpack.i.h.bf16 %v3529_v58  ;;  %v3530_v6 = vunpack.i.l.bf16 %v3529_v58  ;;  %v2565_v7 = vsel %vm624_vm11, %v2441_v54, %v2476_v11 }
 0xe7c   : > { %v2535_v11 = vsel %vm590_vm13, %v3520_v53, %v3521_v50  ;;  %v2534_v54 = vsel %vm590_vm13, %v2529_v33, %v3520_v53 }
 0xe7d   : > { %v2506_v14 = vsel %vm558_vm10, %v3530_v6, %v3531_v19  ;;  %v2500_v21 = vpop.permute.xlu1 %2499 }
 0xe7e   : > { %v2505_v43 = vsel %vm558_vm10, %v2500_v21, %v3530_v6  ;;  %v3534_v57 = vpop.permute.xlu0 %3533  ;;  %v2568_v52 = vsel %vm624_vm11, %v2490_v35, %v2506_v14 }
 0xe7f   : > { %v2567_v8 = vsel %vm624_vm11, %v2489_v4, %v2505_v43  ;;  %v3536_v45 = vunpack.i.h.bf16 %v3534_v57  ;;  %v3535_v18 = vunpack.i.l.bf16 %v3534_v57  ;;  %v3246_v12 = vpack.c.bf16 %v2568_v52, %v2566_v37  ;;  %v3157_v52 = vld [vmem:[%s4830_s5 + $0x10] sm:$0xff] }
 0xe80   : > { %v3248_v23 = vpack.c.bf16 %v2567_v8, %v2565_v7 }
 0xe81   : > { %v2516_v63 = vpop.permute.xlu1 %2515  ;;  %3247 = vmatprep.subr.bf16.mxu1 %v3246_v12  ;;  %v2522_v22 = vsel %vm576_vm12, %v3535_v18, %v3536_v45  ;;  %v3156_v45 = vld [vmem:[%s4829_s4 + $0x10] sm:$0xff] }
 0xe82   : > { %v3539_v16 = vpop.permute.xlu0 %3538  ;;  %3249 = vmatpush1.bf16.msra.mxu1 %v3248_v23  ;;  %v2521_v25 = vsel %vm576_vm12, %v2516_v63, %v3535_v18  ;;  %v2570_v35 = vsel %vm624_vm11, %v4588_v17, %v2522_v22 }
 0xe83   : > { %v3541_v60 = vunpack.i.h.bf16 %v3539_v16  ;;  %v3540_v58 = vunpack.i.l.bf16 %v3539_v16  ;;  %v2569_v21 = vsel %vm624_vm11, %v4584_v5, %v2521_v25 }
 0xe85   : > { %v2551_v19 = vsel %vm607_vm14, %v3540_v58, %v3541_v60  ;;  %v2545_v6 = vpop.permute.xlu1 %2544 }
 0xe86   : > { %v2550_v20 = vsel %vm607_vm14, %v2545_v6, %v3540_v58  ;;  %v2560_v26 = vpop.permute.xlu0 %2559  ;;  %v2572_v14 = vsel %vm624_vm11, %v2535_v11, %v2551_v19 }
 0xe87   : > { %v2571_v4 = vsel %vm624_vm11, %v2534_v54, %v2550_v20  ;;  %v3250_v7 = vpack.c.bf16 %v2572_v14, %v2570_v35 }
 0xe88   : > { %v3252_v43 = vpack.c.bf16 %v2571_v4, %v2569_v21 }
 0xe89   : > { %v2562_v57 = vpop.permute.xlu1 %2561  ;;  %3251 = vmatprep.subr.bf16.mxu1 %v3250_v7 }
 0xe8a   : > { %v2564_v37 = vsel %vm621_vm15, %v2560_v26, %v2562_v57  ;;  %v2558_v33 = vpop.permute.xlu0 %2557  ;;  %3253 = vmatpush1.bf16.msra.mxu1 %v3252_v43 }
 0xe8b   : > { %3158 = vmatprep.subr.msk.mxu1 %vm624_vm11, %v2564_v37  ;;  %v2563_v8 = vsel %vm621_vm15, %v2558_v33, %v2560_v26 }
 0xe8e   : > { %3159 = vmatpush1.msk.msra.mxu1 %vm624_vm11, %v2563_v8 }
 0xe8f   : > { %3255 = vmatprep.subr.bf16.mxu1 %v4545_v3  ;;  %3160 = vmatmul.mubr.msk.f32.vlgmr.msra.gmra.mrb[4].mxu1 %vm640_vm1, %v3157_v52  ;;  %v2744_v3 = vrot.slane %v4584_v5, 4 }
 0xe90   : > { %3257 = vmatpush1.bf16.msra.mxu1 %v4547_v62  ;;  %2722 = vmatprep.mubr.f32.mxu1 %v3598_v42  ;;  %v2745_v42 = vrot.slane %v4588_v17, 4 }
 0xe91   : > { %3259 = vmatprep.subr.bf16.mxu1 %v4563_v1  ;;  %v2748_v62 = vsel %vm624_vm11, %v4462_v29, %v2744_v3 }
 0xe92   : > { %v2749_v1 = vsel %vm624_vm11, %v4465_v61, %v2745_v42 }
 0xe94   : > { %3261 = vmatpush1.bf16.msra.mxu1 %v4565_v47  ;;  %v2752_v47 = vrot.slane %v2748_v62, 1 }
 0xe95   : > { %3161 = vmatprep.subr.msk.mxu1 %vm624_vm11, %v4569_v40  ;;  %v2753_v40 = vrot.slane %v2749_v1, 1 }
 0xe96   : > { %v2756_v18 = vmax.f32 %v2748_v62, %v2752_v47 }
 0xe97   : > { %v2757_v12 = vmax.f32 %v2749_v1, %v2753_v40 }
 0xe98   : > { %3162 = vmatpush1.msk.msra.mxu1 %vm624_vm11, %v4578_v24  ;;  %v2760_v16 = vrot.slane %v2756_v18, 2 }
 0xe99   : > { %3163 = vmatmul.mubr.msk.f32.vlgmr.msra.gmra.mrb[4].mxu1 %vm640_vm1, %v3156_v45  ;;  %v2761_v22 = vrot.slane %v2757_v12, 2 }
 0xe9a   : > { %v2734_v23 = vpop.permute.xlu1 %2733  ;;  %v2764_v19 = vmax.f32 %v2756_v18, %v2760_v16 }
 0xe9b   : > { %v2765_v54 = vmax.f32 %v2757_v12, %v2761_v22 }
 0xe9c   : > { %v2784_v14 = vrot.slane %v2764_v19, 3 }
 0xe9d   : > { %v2785_v4 = vrot.slane %v2765_v54, 3 }
 0xe9e   : > { %v2798_v33 = vsel %vm1091_vm6, %v2764_v19, %v2784_v14 }
 0xe9f   : > { %v2799_v45 = vsel %vm1091_vm6, %v2765_v54, %v2785_v4 }
 0xf6c   : > { %v2724_v50 = vpop.f32.mrb[4].mxu1 }
 0xf6d   : > { %v2736_v53 = vadd.f32 %v2734_v23, %v2724_v50  ;;  %v2726_v24 = vpop.f32.mrb[5].mxu1 }
 0xf6e   : > { %v2737_v63 = vadd.f32 %v2734_v23, %v2726_v24 }
 0xf6f   : > { %vm2738_vm4 = vcmp.ge.f32.partialorder %v2736_v53, 0.0  ;;  %v2740_v5 = vmul.f32 0.25, %v2736_v53 }
 0xf70   : > { %vm2739_vm5 = vcmp.ge.f32.partialorder %v2737_v63, 0.0  ;;  %v2741_v17 = vmul.f32 0.25, %v2737_v63 }
 0xf71   : > { %v2742_v60 = vsel %vm2738_vm4, %v2736_v53, %v2740_v5 }
 0xf72   : > { %v2768_v58 = vrot.slane %v2742_v60, 1  ;;  %v2743_v25 = vsel %vm2739_vm5, %v2737_v63, %v2741_v17 }
 0xf73   : > { %v2769_v11 = vrot.slane %v2743_v25, 1 }
 0xf74   : > { %v2772_v6 = vmax.f32 %v2742_v60, %v2768_v58 }
 0xf75   : > { %v2773_v20 = vmax.f32 %v2743_v25, %v2769_v11 }
 0xf76   : > { %v2776_v26 = vrot.slane %v2772_v6, 2 }
 0xf77   : > { %v2777_v35 = vrot.slane %v2773_v20, 2 }
 0xf78   : > { %v2780_v21 = vmax.f32 %v2772_v6, %v2776_v26 }
 0xf79   : > { %v2781_v7 = vmax.f32 %v2773_v20, %v2777_v35 }
 0xf7a   : > { %v2790_v43 = vrot.slane %v2780_v21, 6  ;;  %v2794_v57 = vrot.slane %v2780_v21, 1 }
 0xf7b   : > { %v2791_v37 = vrot.slane %v2781_v7, 6  ;;  %v2795_v52 = vrot.slane %v2781_v7, 1 }
 0xf7c   : > { %v2800_v8 = vsel %vm1094_vm7, %v2798_v33, %v2790_v43 }
 0xf7d   : > { %v4709_v3 = vsel %vm1097_vm2, %v2800_v8, %v2794_v57  ;;  %v2801_v42 = vsel %vm1094_vm7, %v2799_v45, %v2791_v37 }
 0xf7e   : > { %2808 = vrot.lane.b32.xlu0 %v4709_v3, %s3584_s19  ;;  %v4715_v62 = vsel %vm1097_vm2, %v2801_v42, %v2795_v52 }
 0xf7f   : > { %2810 = vrot.lane.b32.xlu1 %v4715_v62, %s3584_s19 }
 0xff0   : > { %v2809_v1 = vpop.permute.xlu0 %2808 }
 0xff1   : > { %v4720_v47 = vsel %vm344_vm0, 0.0, %v2809_v1  ;;  %v2811_v40 = vpop.permute.xlu1 %2810 }
 0xff2   : > { %v4723_v18 = vsel %vm344_vm0, %v2809_v1, %v2811_v40  ;;  %v2817_v12 = vsel %vm344_vm0, %v2811_v40, 0.0  ;;  %v2823_v23 = vmul.f32 %v4720_v47, %v3707_v36  ;;  %v2826_v25 = vmul.f32 %v4720_v47, %v3698_v31 }
 0xff3   : > { %v2824_v50 = vmul.f32 %v4723_v18, %v3721_v41  ;;  %v2825_v53 = vmul.f32 %v2817_v12, %v3712_v38  ;;  %v2821_v24 = vmul.f32 %v4723_v18, %v3736_v48  ;;  %v2822_v63 = vmul.f32 %v2817_v12, %v3700_v32 }
 0xff4   : > { %2860 = vrot.lane.b32.xlu0 %v2823_v23, %s3592_s12  ;;  %v2833_v5 = vmul.f32 %v4723_v18, %v3766_v0  ;;  %v2834_v22 = vmul.f32 %v2817_v12, %v3760_v59  ;;  %v2827_v36 = vmul.f32 %v4723_v18, %v3751_v55  ;;  %v2832_v41 = vmul.f32 %v4720_v47, %v3754_v56 }
 0xff5   : > { %v3542_v16 = vpack.i.bf16 %v2825_v53, %v2824_v50  ;;  %v2845_v38 = vrot.slane %v2821_v24, 4  ;;  %v2846_v17 = vrot.slane %v2822_v63, 4  ;;  %v2828_v60 = vmul.f32 %v2817_v12, %v3702_v34 }
 0xff6   : > { %v3547_v32 = vpack.i.bf16 %v2834_v22, %v2833_v5  ;;  %v2820_v48 = vmul.f32 %v4720_v47, %v3696_v30  ;;  %v2874_v0 = vrot.slane %v2827_v36, 4  ;;  %v2830_v55 = vmul.f32 %v4723_v18, %v3772_v2 }
 0xff7   : > { %3543 = vrot.lane.b32.xlu1 %v3542_v16, %s3592_s12  ;;  %v3552_v59 = vpack.i.bf16 %v2846_v17, %v2845_v38  ;;  %v2875_v58 = vrot.slane %v2828_v60, 4  ;;  %v2831_v56 = vmul.f32 %v2817_v12, %v3732_v46  ;;  %v2836_v11 = vmul.f32 %v4723_v18, %v3786_v15 }
 0xff8   : > { %2905 = vrot.lane.b32.xlu0 %v2832_v41, %s3595_s17  ;;  %v2844_v34 = vrot.slane %v2820_v48, 4  ;;  %v2890_v19 = vrot.slane %v2830_v55, 4  ;;  %v2837_v54 = vmul.f32 %v2817_v12, %v3741_v51  ;;  %v2873_v46 = vrot.slane %v2826_v25, 4 }
 0xff9   : > { %v3557_v30 = vpack.i.bf16 %v2875_v58, %v2874_v0  ;;  %v2891_v6 = vrot.slane %v2831_v56, 4  ;;  %v2829_v2 = vmul.f32 %v4720_v47, %v3728_v44  ;;  %v2919_v26 = vrot.slane %v2836_v11, 4 }
 0xffa   : > { %v2920_v35 = vrot.slane %v2837_v54, 4  ;;  %v2835_v15 = vmul.f32 %v4720_v47, %v3739_v49  ;;  %v2839_v44 = vmul.f32 %v4723_v18, %v3808_v39  ;;  %v2840_v21 = vmul.f32 %v2817_v12, %v3798_v27  ;;  %v3166_v49 = vld [vmem:[%s4833_s8 + $0x8] sm:$0xf] }
 0xffb   : > { %3548 = vrot.lane.b32.xlu1 %v3547_v32, %s3595_s17  ;;  %v3562_v20 = vpack.i.bf16 %v2891_v6, %v2890_v19  ;;  %v2889_v31 = vrot.slane %v2829_v2, 4  ;;  %v2838_v4 = vmul.f32 %v4720_v47, %v3800_v28  ;;  %v2818_v23 = vmul.f32 %v4720_v47, %v3678_v9 }
 0xffc   : > { %3553 = vrot.lane.b32.xlu0 %v3552_v59, %s3593_s14  ;;  %v3567_v51 = vpack.i.bf16 %v2920_v35, %v2919_v26  ;;  %v2918_v14 = vrot.slane %v2835_v15, 4  ;;  %v2819_v50 = vmul.f32 %v4723_v18, %v3680_v10 }
 0xfff   : > { %2847 = vrot.lane.b32.xlu1 %v2844_v34, %s3593_s14 }
0x1000   : > { %3558 = vrot.lane.b32.xlu0 %v3557_v30, %s3594_s15 }
0x1003   : > { %2876 = vrot.lane.b32.xlu1 %v2873_v46, %s3594_s15 }
0x1004   : > { %3563 = vrot.lane.b32.xlu0 %v3562_v20, %s3596_s18 }
0x1007   : > { %2892 = vrot.lane.b32.xlu1 %v2889_v31, %s3596_s18 }
0x1008   : > { %3568 = vrot.lane.b32.xlu0 %v3567_v51, %s3597_s20 }
0x100b   : > { %2921 = vrot.lane.b32.xlu1 %v2918_v14, %s3597_s20  ;;  %s332_s20 = scalar_lea.vmem %s4834_s9, %s3172_s13 }
0x100c   : > { %2936 = vrot.lane.b32.xlu0 %v2839_v44, %s3599_s21 }
0x100f   : > { %2938 = vrot.lane.b32.xlu1 %v2840_v21, %s3599_s21 }
0x1010   : > { %2934 = vrot.lane.b32.xlu0 %v2838_v4, %s3599_s21 }
0x1013   : > { %2954 = vperm.xlu1 %3331, %v3166_v49  }
0x1066   : > { %v2861_v7 = vpop.permute.xlu0 %2860 }
0x1069   : > { %v3544_v39 = vpop.permute.xlu1 %3543 }
0x106a   : > { %v2906_v43 = vpop.permute.xlu0 %2905  ;;  %v3546_v27 = vunpack.i.h.bf16 %v3544_v39  ;;  %v3545_v8 = vunpack.i.l.bf16 %v3544_v39 }
0x106c   : > { %v2867_v53 = vsel %vm541_vm9, %v3545_v8, %v3546_v27  ;;  %v2866_v16 = vsel %vm541_vm9, %v2861_v7, %v3545_v8 }
0x106d   : > { %v3549_v57 = vpop.permute.xlu1 %3548 }
0x106e   : > { %v3554_v37 = vpop.permute.xlu0 %3553  ;;  %v3551_v60 = vunpack.i.h.bf16 %v3549_v57  ;;  %v3550_v32 = vunpack.i.l.bf16 %v3549_v57 }
0x106f   : > { %v3556_v33 = vunpack.i.h.bf16 %v3554_v37  ;;  %v3555_v52 = vunpack.i.l.bf16 %v3554_v37 }
0x1070   : > { %v2912_v34 = vsel %vm590_vm13, %v3550_v32, %v3551_v60  ;;  %v2911_v30 = vsel %vm590_vm13, %v2906_v43, %v3550_v32 }
0x1071   : > { %v2848_v45 = vpop.permute.xlu1 %2847  ;;  %v2854_v42 = vsel %vm527_vm8, %v3555_v52, %v3556_v33 }
0x1072   : > { %v3559_v28 = vpop.permute.xlu0 %3558  ;;  %v2853_v1 = vsel %vm527_vm8, %v2848_v45, %v3555_v52  ;;  %v2943_v41 = vsel %vm624_vm11, %v2819_v50, %v2854_v42 }
0x1073   : > { %v3561_v40 = vunpack.i.h.bf16 %v3559_v28  ;;  %v3560_v12 = vunpack.i.l.bf16 %v3559_v28  ;;  %v2942_v5 = vsel %vm624_vm11, %v2818_v23, %v2853_v1  ;;  %v3575_v28 = vld [vmem:[%s3670_s16] sm:$0xff] }
0x1075   : > { %v2883_v24 = vsel %vm558_vm10, %v3560_v12, %v3561_v40  ;;  %v2877_v63 = vpop.permute.xlu1 %2876 }
0x1076   : > { %v2882_v22 = vsel %vm558_vm10, %v2877_v63, %v3560_v12  ;;  %v3564_v36 = vpop.permute.xlu0 %3563  ;;  %v2945_v38 = vsel %vm624_vm11, %v2867_v53, %v2883_v24 }
0x1077   : > { %v2944_v9 = vsel %vm624_vm11, %v2866_v16, %v2882_v22  ;;  %v3566_v47 = vunpack.i.h.bf16 %v3564_v36  ;;  %v3565_v10 = vunpack.i.l.bf16 %v3564_v36  ;;  %v3262_v18 = vpack.c.bf16 %v2945_v38, %v2943_v41 }
0x1078   : > { %v3264_v17 = vpack.c.bf16 %v2944_v9, %v2942_v5 }
0x1079   : > { %v2893_v48 = vpop.permute.xlu1 %2892  ;;  %3263 = vmatprep.subr.bf16.mxu0 %v3262_v18  ;;  %v2899_v59 = vsel %vm576_vm12, %v3565_v10, %v3566_v47 }
0x107a   : > { %v3569_v0 = vpop.permute.xlu0 %3568  ;;  %3265 = vmatpush1.bf16.msra.mxu0 %v3264_v17  ;;  %v2898_v56 = vsel %vm576_vm12, %v2893_v48, %v3565_v10  ;;  %v2947_v54 = vsel %vm624_vm11, %v4715_v62, %v2899_v59  ;;  %v3165_v62 = vld [vmem:[%s4832_s7 + $0x8] sm:$0xf] }
0x107b   : > { %v3571_v58 = vunpack.i.h.bf16 %v3569_v0  ;;  %v3570_v55 = vunpack.i.l.bf16 %v3569_v0  ;;  %v2946_v2 = vsel %vm624_vm11, %v4709_v3, %v2898_v56 }
0x107d   : > { %v2928_v25 = vsel %vm607_vm14, %v3570_v55, %v3571_v58  ;;  %v2922_v11 = vpop.permute.xlu1 %2921 }
0x107e   : > { %v2927_v19 = vsel %vm607_vm14, %v2922_v11, %v3570_v55  ;;  %v2937_v6 = vpop.permute.xlu0 %2936  ;;  %v2949_v46 = vsel %vm624_vm11, %v2912_v34, %v2928_v25 }
0x107f   : > { %v2948_v20 = vsel %vm624_vm11, %v2911_v30, %v2927_v19  ;;  %v3266_v26 = vpack.c.bf16 %v2949_v46, %v2947_v54 }
0x1080   : > { %v3268_v35 = vpack.c.bf16 %v2948_v20, %v2946_v2 }
0x1081   : > { %v2939_v31 = vpop.permute.xlu1 %2938  ;;  %3267 = vmatprep.subr.bf16.mxu0 %v3266_v26 }
0x1082   : > { %v2941_v15 = vsel %vm621_vm15, %v2937_v6, %v2939_v31  ;;  %v2935_v51 = vpop.permute.xlu0 %2934  ;;  %3269 = vmatpush1.bf16.msra.mxu0 %v3268_v35 }
0x1083   : > { %3167 = vmatprep.subr.msk.mxu0 %vm624_vm11, %v2941_v15  ;;  %v2940_v14 = vsel %vm621_vm15, %v2935_v51, %v2937_v6 }
0x1086   : > { %3168 = vmatpush1.msk.msra.mxu0 %vm624_vm11, %v2940_v14 }
0x1087   : > { %3169 = vmatmul.mubr.msk.f32.vlgmr.msra.gmra.mrb[10].mxu0 %vm640_vm1, %v3165_v62 }
0x1092   : > { %v2955_v3 = vpop.permute.xlu1 %2954 }
0x115a   : > { %v3030_v44 = vpop.f32.mrb[10].mxu0 }
0x115b   : > { %v3031_v21 = vadd.f32 %v3030_v44, %v2955_v3  ;;  %v3032_v4 = vpop.f32.mrb[11].mxu0 }
0x115c   : > { %v3033_v49 = vadd.f32 %v3032_v4, %v2955_v3 }
0x115d   : > { %vm3035_vm0 = vcmp.ge.f32.partialorder %v3031_v21, 0.0  ;;  %v3037_v7 = vmul.f32 0.25, %v3031_v21 }
0x115e   : > { %vm3036_vm8 = vcmp.ge.f32.partialorder %v3033_v49, 0.0  ;;  %v3038_v39 = vmul.f32 0.25, %v3033_v49 }
0x115f   : > { %v3039_v43 = vsel %vm3035_vm0, %v3031_v21, %v3037_v7 }
0x1160   : > { %v3041_v57 = vmul.f32 0.2, %v3039_v43  ;;  %v3040_v37 = vsel %vm3036_vm8, %v3033_v49, %v3038_v39 }
0x1161   : > { %v3042_v33 = vmul.f32 0.2, %v3040_v37 }
0x1162   : > { %v3043_v52 = vadd.f32 %v3041_v57, %v4462_v29 }
0x1163   : > { %v3044_v27 = vadd.f32 %v3042_v33, %v4465_v61 }
0x1164   : > { %v3045_v8 = vmul.f32 0.2, %v3043_v52 }
0x1165   : > { %v3046_v45 = vmul.f32 0.2, %v3044_v27 }
0x1166   : > { %v3047_v42 = vadd.f32 %v3575_v28, %v3045_v8 }
0x1167   : > { %v3048_v1 = vadd.f32 %v3046_v45, %v3686_v13 }
0x1169   : > { %v3051_v40 = vcombine.low %v3047_v42, %v3048_v1 }
0x116b   : > { %3053 = vst [vmem:[%s332_s20] sm:$0xff] %v3051_v40 }
0x116c PF: > { %s19_s30 = sadd.s32 1, %s3582_s30  }
0x116d   : > { %p16_p4 = scmp.ge.s32.totalorder %s19_s30, 4  }
0x116f   :  { %18 = sbr.rel (!%p16_p4) target bundleno = 1 (0x1), region = 100 }

</bundles_post_ra>
